<compile_context>
chip_gen: v7x
topology: tpu7x:2x2x1
jax: 0.10.0
libtpu: 0.0.40
codegen_flags: <defaults>
</compile_context>

<pallas_src>
import functools
import jax
import jax.numpy as jnp
from jax.experimental import pallas as pl
from jax.experimental.pallas import tpu as pltpu  # noqa: F401  (imported per template)

# ----- synthetic "ViLT" config (small) -----
HIDDEN = 32
HEADS = 4
HEAD_DIM = HIDDEN // HEADS
MLP = 64
LAYERS = 2
VOCAB = 100
MAX_POS = 64
NUM_CLASSES = 5
PATCH = 32
EPS = 1e-12
LANE = 128  # lane-dense padding for the logits output


def _ln(x, g, b):
    mu = jnp.mean(x, axis=-1, keepdims=True)
    xc = x - mu
    var = jnp.mean(xc * xc, axis=-1, keepdims=True)
    return xc * jax.lax.rsqrt(var + EPS) * g + b


# ---------------- fused Pallas kernel (single launch, no grid) ----------------

def fused_vilt_kernel(B, Lt, P,
                      txt_ref, patches_ref, img_bias_ref, block_bias_ref,
                      txt_ln_g_ref, txt_ln_b_ref, patch_wt_ref, patch_b_ref,
                      ln1_g_ref, ln1_b_ref,
                      wq_ref, bq_ref, wk_ref, bk_ref, wv_ref, bv_ref,
                      wo_ref, bo_ref,
                      ln2_g_ref, ln2_b_ref,
                      w1_ref, b1_ref, w2_ref, b2_ref,
                      fin_g_ref, fin_b_ref, cls_w_ref, cls_b_ref,
                      out_ref):
    N = B * (Lt + P)

    # ---- embeddings ----
    # text: LayerNorm over the pre-computed (word + pos + type) embeddings
    txt = _ln(txt_ref[...], txt_ln_g_ref[...], txt_ln_b_ref[...])            # (B*Lt, D)
    # image: patch projection (bf16 MXU, f32 accumulate), K=3072 on lanes for both operands
    img = jax.lax.dot_general(patches_ref[...], patch_wt_ref[...],
                              (((1,), (1,)), ((), ())),
                              preferred_element_type=jnp.float32)
    img = img + patch_b_ref[...] + img_bias_ref[...]                         # (B*P, D)
    # activation slab: [text rows | image rows]; ordering is irrelevant because
    # attention is made block-diagonal per batch element via block_bias.
    x = jnp.concatenate([txt, img], axis=0)                                  # (N, D)

    block_bias = block_bias_ref[...]                                         # (N, N)
    lane = jax.lax.broadcasted_iota(jnp.int32, (1, HIDDEN), 1)
    scale = 1.0 / (HEAD_DIM ** 0.5)

    for l in range(LAYERS):                      # static unroll, weights indexed once each
        # ---- self-attention (pre-LN) ----
        h = _ln(x, ln1_g_ref[l], ln1_b_ref[l])
        q = jnp.dot(h, wq_ref[l], preferred_element_type=jnp.float32) + bq_ref[l]
        k = jnp.dot(h, wk_ref[l], preferred_element_type=jnp.float32) + bk_ref[l]
        v = jnp.dot(h, wv_ref[l], preferred_element_type=jnp.float32) + bv_ref[l]

        attn = jnp.zeros((N, HIDDEN), jnp.float32)
        for head in range(HEADS):                # static; full-width ops, no lane slicing
            m = ((lane >= head * HEAD_DIM) &
                 (lane < (head + 1) * HEAD_DIM)).astype(jnp.float32)         # (1, D)
            kh = k * m                           # zero out other heads' columns
            vh = v * m
            # q @ kh^T == q_h @ k_h^T  (masked columns contribute 0 to the contraction)
            s = jax.lax.dot_general(q, kh, (((1,), (1,)), ((), ())),
                                    preferred_element_type=jnp.float32) * scale
            s = s + block_bias                   # -1e9 on cross-batch pairs
            s = s - jnp.max(s, axis=-1, keepdims=True)
            p = jnp.exp(s)
            p = p * pl.reciprocal(jnp.sum(p, axis=-1, keepdims=True), approx=True)
            # p @ vh lands head `head`'s output in its own columns; sum over heads == concat
            attn = attn + jnp.dot(p, vh, preferred_element_type=jnp.float32)

        attn = jnp.dot(attn, wo_ref[l], preferred_element_type=jnp.float32) + bo_ref[l]
        x = x + attn

        # ---- MLP (pre-LN) ----
        h2 = _ln(x, ln2_g_ref[l], ln2_b_ref[l])
        mm = jnp.dot(h2, w1_ref[l], preferred_element_type=jnp.float32) + b1_ref[l]
        mm = jax.nn.gelu(mm, approximate=True)   # TODO(synk): HF ViLT uses exact (erf) GELU
        mm = jnp.dot(mm, w2_ref[l], preferred_element_type=jnp.float32) + b2_ref[l]
        x = x + mm

    # ---- final LayerNorm on CLS rows + classifier (lane-dense padded output) ----
    # text CLS of batch b is row b*Lt (text-first layout, token 0 == CLS)
    pooled = jnp.concatenate([x[b * Lt:b * Lt + 1] for b in range(B)], axis=0)   # (B, D)
    pooled = _ln(pooled, fin_g_ref[...], fin_b_ref[...])
    logits = jnp.dot(pooled, cls_w_ref[...],
                     preferred_element_type=jnp.float32) + cls_b_ref[...]        # (B, 128)
    out_ref[...] = logits.astype(out_ref.dtype)


# ---------------- parameter init (deterministic, synthetic) ----------------

def init_params(key, num_classes):
    keys = iter(jax.random.split(key, 32))

    def nrm(shape, scale=0.02):
        return scale * jax.random.normal(next(keys), shape, jnp.float32)

    params = {
        'word_emb': nrm((VOCAB, HIDDEN)),
        'txt_pos': nrm((MAX_POS, HIDDEN)),
        'img_pos': nrm((MAX_POS, HIDDEN)),
        'type_emb': nrm((2, HIDDEN)),
        'txt_ln_g': jnp.ones((1, HIDDEN), jnp.float32),
        'txt_ln_b': jnp.zeros((1, HIDDEN), jnp.float32),
        # patch projection weight stored transposed (D, 3*32*32) -> lane-dense K
        'patch_w_t': nrm((HIDDEN, 3 * PATCH * PATCH)),
        'patch_b': jnp.zeros((1, HIDDEN), jnp.float32),
        'final_ln_g': jnp.ones((1, HIDDEN), jnp.float32),
        'final_ln_b': jnp.zeros((1, HIDDEN), jnp.float32),
        # classifier pre-padded to 128 lanes so the kernel output is lane-dense
        'cls_w': jnp.zeros((HIDDEN, LANE), jnp.float32)
                   .at[:, :num_classes].set(nrm((HIDDEN, num_classes))),
        'cls_b': jnp.zeros((1, LANE), jnp.float32),
        # stacked per-layer weights (leading dim = LAYERS); one fused kernel loads all once
        'ln1_g': jnp.ones((LAYERS, 1, HIDDEN), jnp.float32),
        'ln1_b': jnp.zeros((LAYERS, 1, HIDDEN), jnp.float32),
        'wq': nrm((LAYERS, HIDDEN, HIDDEN)),
        'bq': jnp.zeros((LAYERS, 1, HIDDEN), jnp.float32),
        'wk': nrm((LAYERS, HIDDEN, HIDDEN)),
        'bk': jnp.zeros((LAYERS, 1, HIDDEN), jnp.float32),
        'wv': nrm((LAYERS, HIDDEN, HIDDEN)),
        'bv': jnp.zeros((LAYERS, 1, HIDDEN), jnp.float32),
        'wo': nrm((LAYERS, HIDDEN, HIDDEN)),
        'bo': jnp.zeros((LAYERS, 1, HIDDEN), jnp.float32),
        'ln2_g': jnp.ones((LAYERS, 1, HIDDEN), jnp.float32),
        'ln2_b': jnp.zeros((LAYERS, 1, HIDDEN), jnp.float32),
        'w1': nrm((LAYERS, HIDDEN, MLP)),
        'b1': jnp.zeros((LAYERS, 1, MLP), jnp.float32),
        'w2': nrm((LAYERS, MLP, HIDDEN)),
        'b2': jnp.zeros((LAYERS, 1, HIDDEN), jnp.float32),
    }
    return params


# ---------------- forward: JAX glue (gathers / patchify) + ONE pallas_call ----------------

@jax.jit
def forward(params, input_ids, pixel_values):
    B, Lt = input_ids.shape
    _, C, H, W = pixel_values.shape
    ph, pw = H // PATCH, W // PATCH
    P = ph * pw
    N = B * (Lt + P)

    # --- embedding gathers & patchification stay in JAX ---
    txt = (params['word_emb'][input_ids]
           + params['txt_pos'][:Lt][None]
           + params['type_emb'][0][None, None]).reshape(B * Lt, HIDDEN)
    patches = pixel_values.reshape(B, C, ph, PATCH, pw, PATCH)
    patches = patches.transpose(0, 2, 4, 1, 3, 5).reshape(B * P, C * PATCH * PATCH)
    img_bias = jnp.tile(params['img_pos'][:P] + params['type_emb'][1][None], (B, 1))  # (B*P, D)
    # TODO(synk): ViLT also prepends an image-CLS token to the patch sequence; omitted here.

    # row -> batch id for the [text | image] layout; additive block-diagonal attention bias
    row_batch = jnp.concatenate([jnp.repeat(jnp.arange(B), Lt),
                                 jnp.repeat(jnp.arange(B), P)])
    block_bias = jnp.where(row_batch[:, None] == row_batch[None, :],
                           0.0, -1e9).astype(jnp.float32)                     # (N, N)

    kernel = functools.partial(fused_vilt_kernel, B, Lt, P)
    logits_pad = pl.pallas_call(
        kernel,
        out_shape=jax.ShapeDtypeStruct((B, LANE), jnp.float32),
    )(txt,
      patches.astype(jnp.bfloat16), img_bias, block_bias,
      params['txt_ln_g'], params['txt_ln_b'],
      params['patch_w_t'].astype(jnp.bfloat16), params['patch_b'],
      params['ln1_g'], params['ln1_b'],
      params['wq'], params['bq'], params['wk'], params['bk'],
      params['wv'], params['bv'], params['wo'], params['bo'],
      params['ln2_g'], params['ln2_b'],
      params['w1'], params['b1'], params['w2'], params['b2'],
      params['final_ln_g'], params['final_ln_b'],
      params['cls_w'], params['cls_b'])

    return logits_pad[:, :NUM_CLASSES]


if __name__ == "__main__":
    key = jax.random.PRNGKey(0)
    kp, ki, kx = jax.random.split(key, 3)
    params = init_params(kp, NUM_CLASSES)

    B, Lt = 2, 8
    input_ids = jax.random.randint(ki, (B, Lt), 0, VOCAB, dtype=jnp.int32)
    pixel_values = jax.random.normal(kx, (B, 3, 64, 64), jnp.float32)   # NCHW

    logits = forward(params, input_ids, pixel_values)
    jax.block_until_ready(logits)
    assert logits.shape == (B, NUM_CLASSES)
    assert bool(jnp.all(jnp.isfinite(logits)))
    print("KERNEL_OK")
</pallas_src>

<mosaic_0001>
module attributes {stable_mosaic.version = 11 : i64} {
  func.func @fused_vilt_kernel(%arg0: memref<16x32xf32, #tpu.memory_space<vmem>>, %arg1: memref<8x3072xbf16, #tpu.memory_space<vmem>>, %arg2: memref<8x32xf32, #tpu.memory_space<vmem>>, %arg3: memref<24x24xf32, #tpu.memory_space<vmem>>, %arg4: memref<1x32xf32, #tpu.memory_space<vmem>>, %arg5: memref<1x32xf32, #tpu.memory_space<vmem>>, %arg6: memref<32x3072xbf16, #tpu.memory_space<vmem>>, %arg7: memref<1x32xf32, #tpu.memory_space<vmem>>, %arg8: memref<2x1x32xf32, #tpu.memory_space<vmem>>, %arg9: memref<2x1x32xf32, #tpu.memory_space<vmem>>, %arg10: memref<2x32x32xf32, #tpu.memory_space<vmem>>, %arg11: memref<2x1x32xf32, #tpu.memory_space<vmem>>, %arg12: memref<2x32x32xf32, #tpu.memory_space<vmem>>, %arg13: memref<2x1x32xf32, #tpu.memory_space<vmem>>, %arg14: memref<2x32x32xf32, #tpu.memory_space<vmem>>, %arg15: memref<2x1x32xf32, #tpu.memory_space<vmem>>, %arg16: memref<2x32x32xf32, #tpu.memory_space<vmem>>, %arg17: memref<2x1x32xf32, #tpu.memory_space<vmem>>, %arg18: memref<2x1x32xf32, #tpu.memory_space<vmem>>, %arg19: memref<2x1x32xf32, #tpu.memory_space<vmem>>, %arg20: memref<2x32x64xf32, #tpu.memory_space<vmem>>, %arg21: memref<2x1x64xf32, #tpu.memory_space<vmem>>, %arg22: memref<2x64x32xf32, #tpu.memory_space<vmem>>, %arg23: memref<2x1x32xf32, #tpu.memory_space<vmem>>, %arg24: memref<1x32xf32, #tpu.memory_space<vmem>>, %arg25: memref<1x32xf32, #tpu.memory_space<vmem>>, %arg26: memref<32x128xf32, #tpu.memory_space<vmem>>, %arg27: memref<1x128xf32, #tpu.memory_space<vmem>>, %arg28: memref<2x128xf32, #tpu.memory_space<vmem>>) attributes {dimension_semantics = [], scalar_prefetch = 0 : i64, scratch_operands = 0 : i64, tpu.core_type = #tpu.core_type<tc>} {
    %c0 = arith.constant 0 : index
    %c0_0 = arith.constant 0 : index
    %0 = vector.load %arg0[%c0, %c0_0] : memref<16x32xf32, #tpu.memory_space<vmem>>, vector<16x32xf32>
    %c0_1 = arith.constant 0 : index
    %c0_2 = arith.constant 0 : index
    %1 = vector.load %arg4[%c0_1, %c0_2] : memref<1x32xf32, #tpu.memory_space<vmem>>, vector<1x32xf32>
    %c0_3 = arith.constant 0 : index
    %c0_4 = arith.constant 0 : index
    %2 = vector.load %arg5[%c0_3, %c0_4] : memref<1x32xf32, #tpu.memory_space<vmem>>, vector<1x32xf32>
    %cst = arith.constant dense<0.000000e+00> : vector<16xf32>
    %3 = vector.multi_reduction <add>, %0, %cst [1] : vector<16x32xf32> to vector<16xf32>
    %4 = vector.shape_cast %3 : vector<16xf32> to vector<16x1xf32>
    %cst_5 = arith.constant 3.200000e+01 : f32
    %5 = vector.broadcast %cst_5 : f32 to vector<16x1xf32>
    %6 = arith.divf %4, %5 : vector<16x1xf32>
    %7 = vector.broadcast %6 : vector<16x1xf32> to vector<16x32xf32>
    %8 = arith.subf %0, %7 : vector<16x32xf32>
    %9 = arith.mulf %8, %8 : vector<16x32xf32>
    %cst_6 = arith.constant dense<0.000000e+00> : vector<16xf32>
    %10 = vector.multi_reduction <add>, %9, %cst_6 [1] : vector<16x32xf32> to vector<16xf32>
    %11 = vector.shape_cast %10 : vector<16xf32> to vector<16x1xf32>
    %cst_7 = arith.constant 3.200000e+01 : f32
    %12 = vector.broadcast %cst_7 : f32 to vector<16x1xf32>
    %13 = arith.divf %11, %12 : vector<16x1xf32>
    %cst_8 = arith.constant 9.99999996E-13 : f32
    %14 = vector.broadcast %cst_8 : f32 to vector<16x1xf32>
    %15 = arith.addf %13, %14 : vector<16x1xf32>
    %16 = math.rsqrt %15 : vector<16x1xf32>
    %17 = vector.broadcast %16 : vector<16x1xf32> to vector<16x32xf32>
    %18 = arith.mulf %8, %17 : vector<16x32xf32>
    %19 = vector.broadcast %1 : vector<1x32xf32> to vector<16x32xf32>
    %20 = arith.mulf %18, %19 : vector<16x32xf32>
    %21 = vector.broadcast %2 : vector<1x32xf32> to vector<16x32xf32>
    %22 = arith.addf %20, %21 : vector<16x32xf32>
    %c0_9 = arith.constant 0 : index
    %c0_10 = arith.constant 0 : index
    %23 = vector.load %arg1[%c0_9, %c0_10] : memref<8x3072xbf16, #tpu.memory_space<vmem>>, vector<8x3072xbf16>
    %c0_11 = arith.constant 0 : index
    %c0_12 = arith.constant 0 : index
    %24 = vector.load %arg6[%c0_11, %c0_12] : memref<32x3072xbf16, #tpu.memory_space<vmem>>, vector<32x3072xbf16>
    %cst_13 = arith.constant dense<0.000000e+00> : vector<8x32xf32>
    %25 = tpu.matmul %23, %24, %cst_13 {dimension_numbers = #tpu.dot_dimension_numbers<[1], [1], [0], [0], [0, 0, 1, 0], [], []>} : vector<8x3072xbf16>, vector<32x3072xbf16>, vector<8x32xf32> -> vector<8x32xf32>
    %c0_14 = arith.constant 0 : index
    %c0_15 = arith.constant 0 : index
    %26 = vector.load %arg7[%c0_14, %c0_15] : memref<1x32xf32, #tpu.memory_space<vmem>>, vector<1x32xf32>
    %27 = vector.broadcast %26 : vector<1x32xf32> to vector<8x32xf32>
    %28 = arith.addf %25, %27 : vector<8x32xf32>
    %c0_16 = arith.constant 0 : index
    %c0_17 = arith.constant 0 : index
    %29 = vector.load %arg2[%c0_16, %c0_17] : memref<8x32xf32, #tpu.memory_space<vmem>>, vector<8x32xf32>
    %30 = arith.addf %28, %29 : vector<8x32xf32>
    %31 = tpu.concatenate %22, %30 in 0 : vector<16x32xf32>, vector<8x32xf32> -> vector<24x32xf32>
    %c0_18 = arith.constant 0 : index
    %c0_19 = arith.constant 0 : index
    %32 = vector.load %arg3[%c0_18, %c0_19] : memref<24x24xf32, #tpu.memory_space<vmem>>, vector<24x24xf32>
    %33 = tpu.iota {dimensions = array<i32: 1>} : vector<1x32xi32>
    %c0_20 = arith.constant 0 : index
    %c0_21 = arith.constant 0 : index
    %c0_22 = arith.constant 0 : index
    %34 = vector.load %arg8[%c0_20, %c0_21, %c0_22] : memref<2x1x32xf32, #tpu.memory_space<vmem>>, vector<1x1x32xf32>
    %35 = vector.shape_cast %34 : vector<1x1x32xf32> to vector<1x32xf32>
    %c0_23 = arith.constant 0 : index
    %c0_24 = arith.constant 0 : index
    %c0_25 = arith.constant 0 : index
    %36 = vector.load %arg9[%c0_23, %c0_24, %c0_25] : memref<2x1x32xf32, #tpu.memory_space<vmem>>, vector<1x1x32xf32>
    %37 = vector.shape_cast %36 : vector<1x1x32xf32> to vector<1x32xf32>
    %cst_26 = arith.constant dense<0.000000e+00> : vector<24xf32>
    %38 = vector.multi_reduction <add>, %31, %cst_26 [1] : vector<24x32xf32> to vector<24xf32>
    %39 = vector.shape_cast %38 : vector<24xf32> to vector<24x1xf32>
    %cst_27 = arith.constant 3.200000e+01 : f32
    %40 = vector.broadcast %cst_27 : f32 to vector<24x1xf32>
    %41 = arith.divf %39, %40 : vector<24x1xf32>
    %42 = vector.broadcast %41 : vector<24x1xf32> to vector<24x32xf32>
    %43 = arith.subf %31, %42 : vector<24x32xf32>
    %44 = arith.mulf %43, %43 : vector<24x32xf32>
    %cst_28 = arith.constant dense<0.000000e+00> : vector<24xf32>
    %45 = vector.multi_reduction <add>, %44, %cst_28 [1] : vector<24x32xf32> to vector<24xf32>
    %46 = vector.shape_cast %45 : vector<24xf32> to vector<24x1xf32>
    %cst_29 = arith.constant 3.200000e+01 : f32
    %47 = vector.broadcast %cst_29 : f32 to vector<24x1xf32>
    %48 = arith.divf %46, %47 : vector<24x1xf32>
    %cst_30 = arith.constant 9.99999996E-13 : f32
    %49 = vector.broadcast %cst_30 : f32 to vector<24x1xf32>
    %50 = arith.addf %48, %49 : vector<24x1xf32>
    %51 = math.rsqrt %50 : vector<24x1xf32>
    %52 = vector.broadcast %51 : vector<24x1xf32> to vector<24x32xf32>
    %53 = arith.mulf %43, %52 : vector<24x32xf32>
    %54 = vector.broadcast %35 : vector<1x32xf32> to vector<24x32xf32>
    %55 = arith.mulf %53, %54 : vector<24x32xf32>
    %56 = vector.broadcast %37 : vector<1x32xf32> to vector<24x32xf32>
    %57 = arith.addf %55, %56 : vector<24x32xf32>
    %c0_31 = arith.constant 0 : index
    %c0_32 = arith.constant 0 : index
    %c0_33 = arith.constant 0 : index
    %58 = vector.load %arg10[%c0_31, %c0_32, %c0_33] : memref<2x32x32xf32, #tpu.memory_space<vmem>>, vector<1x32x32xf32>
    %59 = vector.shape_cast %58 : vector<1x32x32xf32> to vector<32x32xf32>
    %cst_34 = arith.constant dense<0.000000e+00> : vector<24x32xf32>
    %60 = tpu.matmul %57, %59, %cst_34 {dimension_numbers = #tpu.dot_dimension_numbers<[1], [0], [0], [1], [0, 0, 1, 1], [], []>} : vector<24x32xf32>, vector<32x32xf32>, vector<24x32xf32> -> vector<24x32xf32>
    %c0_35 = arith.constant 0 : index
    %c0_36 = arith.constant 0 : index
    %c0_37 = arith.constant 0 : index
    %61 = vector.load %arg11[%c0_35, %c0_36, %c0_37] : memref<2x1x32xf32, #tpu.memory_space<vmem>>, vector<1x1x32xf32>
    %62 = vector.shape_cast %61 : vector<1x1x32xf32> to vector<1x32xf32>
    %63 = vector.broadcast %62 : vector<1x32xf32> to vector<24x32xf32>
    %64 = arith.addf %60, %63 : vector<24x32xf32>
    %c0_38 = arith.constant 0 : index
    %c0_39 = arith.constant 0 : index
    %c0_40 = arith.constant 0 : index
    %65 = vector.load %arg12[%c0_38, %c0_39, %c0_40] : memref<2x32x32xf32, #tpu.memory_space<vmem>>, vector<1x32x32xf32>
    %66 = vector.shape_cast %65 : vector<1x32x32xf32> to vector<32x32xf32>
    %cst_41 = arith.constant dense<0.000000e+00> : vector<24x32xf32>
    %67 = tpu.matmul %57, %66, %cst_41 {dimension_numbers = #tpu.dot_dimension_numbers<[1], [0], [0], [1], [0, 0, 1, 1], [], []>} : vector<24x32xf32>, vector<32x32xf32>, vector<24x32xf32> -> vector<24x32xf32>
    %c0_42 = arith.constant 0 : index
    %c0_43 = arith.constant 0 : index
    %c0_44 = arith.constant 0 : index
    %68 = vector.load %arg13[%c0_42, %c0_43, %c0_44] : memref<2x1x32xf32, #tpu.memory_space<vmem>>, vector<1x1x32xf32>
    %69 = vector.shape_cast %68 : vector<1x1x32xf32> to vector<1x32xf32>
    %70 = vector.broadcast %69 : vector<1x32xf32> to vector<24x32xf32>
    %71 = arith.addf %67, %70 : vector<24x32xf32>
    %c0_45 = arith.constant 0 : index
    %c0_46 = arith.constant 0 : index
    %c0_47 = arith.constant 0 : index
    %72 = vector.load %arg14[%c0_45, %c0_46, %c0_47] : memref<2x32x32xf32, #tpu.memory_space<vmem>>, vector<1x32x32xf32>
    %73 = vector.shape_cast %72 : vector<1x32x32xf32> to vector<32x32xf32>
    %cst_48 = arith.constant dense<0.000000e+00> : vector<24x32xf32>
    %74 = tpu.matmul %57, %73, %cst_48 {dimension_numbers = #tpu.dot_dimension_numbers<[1], [0], [0], [1], [0, 0, 1, 1], [], []>} : vector<24x32xf32>, vector<32x32xf32>, vector<24x32xf32> -> vector<24x32xf32>
    %c0_49 = arith.constant 0 : index
    %c0_50 = arith.constant 0 : index
    %c0_51 = arith.constant 0 : index
    %75 = vector.load %arg15[%c0_49, %c0_50, %c0_51] : memref<2x1x32xf32, #tpu.memory_space<vmem>>, vector<1x1x32xf32>
    %76 = vector.shape_cast %75 : vector<1x1x32xf32> to vector<1x32xf32>
    %77 = vector.broadcast %76 : vector<1x32xf32> to vector<24x32xf32>
    %78 = arith.addf %74, %77 : vector<24x32xf32>
    %cst_52 = arith.constant 0.000000e+00 : f32
    %79 = vector.broadcast %cst_52 : f32 to vector<24x32xf32>
    %c0_i32 = arith.constant 0 : i32
    %80 = vector.broadcast %c0_i32 : i32 to vector<1x32xi32>
    %81 = arith.cmpi sge, %33, %80 : vector<1x32xi32>
    %c8_i32 = arith.constant 8 : i32
    %82 = vector.broadcast %c8_i32 : i32 to vector<1x32xi32>
    %83 = arith.cmpi slt, %33, %82 : vector<1x32xi32>
    %84 = arith.andi %81, %83 : vector<1x32xi1>
    %85 = arith.extui %84 : vector<1x32xi1> to vector<1x32xi32>
    %86 = arith.sitofp %85 : vector<1x32xi32> to vector<1x32xf32>
    %87 = vector.broadcast %86 : vector<1x32xf32> to vector<24x32xf32>
    %88 = arith.mulf %71, %87 : vector<24x32xf32>
    %89 = vector.broadcast %86 : vector<1x32xf32> to vector<24x32xf32>
    %90 = arith.mulf %78, %89 : vector<24x32xf32>
    %cst_53 = arith.constant dense<0.000000e+00> : vector<24x24xf32>
    %91 = tpu.matmul %64, %88, %cst_53 {dimension_numbers = #tpu.dot_dimension_numbers<[1], [1], [0], [0], [0, 0, 1, 0], [], []>} : vector<24x32xf32>, vector<24x32xf32>, vector<24x24xf32> -> vector<24x24xf32>
    %cst_54 = arith.constant 0.353553385 : f32
    %92 = vector.broadcast %cst_54 : f32 to vector<24x24xf32>
    %93 = arith.mulf %91, %92 : vector<24x24xf32>
    %94 = arith.addf %93, %32 : vector<24x24xf32>
    %cst_55 = arith.constant dense<0xFF800000> : vector<24xf32>
    %95 = vector.multi_reduction <maximumf>, %94, %cst_55 [1] : vector<24x24xf32> to vector<24xf32>
    %96 = vector.shape_cast %95 : vector<24xf32> to vector<24x1xf32>
    %97 = vector.broadcast %96 : vector<24x1xf32> to vector<24x24xf32>
    %98 = arith.subf %94, %97 : vector<24x24xf32>
    %99 = math.exp %98 : vector<24x24xf32>
    %cst_56 = arith.constant dense<0.000000e+00> : vector<24xf32>
    %100 = vector.multi_reduction <add>, %99, %cst_56 [1] : vector<24x24xf32> to vector<24xf32>
    %101 = vector.shape_cast %100 : vector<24xf32> to vector<24x1xf32>
    %102 = tpu.reciprocal %101 {approx = true} : vector<24x1xf32> -> vector<24x1xf32>
    %103 = vector.broadcast %102 : vector<24x1xf32> to vector<24x24xf32>
    %104 = arith.mulf %99, %103 : vector<24x24xf32>
    %cst_57 = arith.constant dense<0.000000e+00> : vector<24x32xf32>
    %105 = tpu.matmul %104, %90, %cst_57 {dimension_numbers = #tpu.dot_dimension_numbers<[1], [0], [0], [1], [0, 0, 1, 1], [], []>} : vector<24x24xf32>, vector<24x32xf32>, vector<24x32xf32> -> vector<24x32xf32>
    %106 = arith.addf %79, %105 : vector<24x32xf32>
    %c8_i32_58 = arith.constant 8 : i32
    %107 = vector.broadcast %c8_i32_58 : i32 to vector<1x32xi32>
    %108 = arith.cmpi sge, %33, %107 : vector<1x32xi32>
    %c16_i32 = arith.constant 16 : i32
    %109 = vector.broadcast %c16_i32 : i32 to vector<1x32xi32>
    %110 = arith.cmpi slt, %33, %109 : vector<1x32xi32>
    %111 = arith.andi %108, %110 : vector<1x32xi1>
    %112 = arith.extui %111 : vector<1x32xi1> to vector<1x32xi32>
    %113 = arith.sitofp %112 : vector<1x32xi32> to vector<1x32xf32>
    %114 = vector.broadcast %113 : vector<1x32xf32> to vector<24x32xf32>
    %115 = arith.mulf %71, %114 : vector<24x32xf32>
    %116 = vector.broadcast %113 : vector<1x32xf32> to vector<24x32xf32>
    %117 = arith.mulf %78, %116 : vector<24x32xf32>
    %cst_59 = arith.constant dense<0.000000e+00> : vector<24x24xf32>
    %118 = tpu.matmul %64, %115, %cst_59 {dimension_numbers = #tpu.dot_dimension_numbers<[1], [1], [0], [0], [0, 0, 1, 0], [], []>} : vector<24x32xf32>, vector<24x32xf32>, vector<24x24xf32> -> vector<24x24xf32>
    %cst_60 = arith.constant 0.353553385 : f32
    %119 = vector.broadcast %cst_60 : f32 to vector<24x24xf32>
    %120 = arith.mulf %118, %119 : vector<24x24xf32>
    %121 = arith.addf %120, %32 : vector<24x24xf32>
    %cst_61 = arith.constant dense<0xFF800000> : vector<24xf32>
    %122 = vector.multi_reduction <maximumf>, %121, %cst_61 [1] : vector<24x24xf32> to vector<24xf32>
    %123 = vector.shape_cast %122 : vector<24xf32> to vector<24x1xf32>
    %124 = vector.broadcast %123 : vector<24x1xf32> to vector<24x24xf32>
    %125 = arith.subf %121, %124 : vector<24x24xf32>
    %126 = math.exp %125 : vector<24x24xf32>
    %cst_62 = arith.constant dense<0.000000e+00> : vector<24xf32>
    %127 = vector.multi_reduction <add>, %126, %cst_62 [1] : vector<24x24xf32> to vector<24xf32>
    %128 = vector.shape_cast %127 : vector<24xf32> to vector<24x1xf32>
    %129 = tpu.reciprocal %128 {approx = true} : vector<24x1xf32> -> vector<24x1xf32>
    %130 = vector.broadcast %129 : vector<24x1xf32> to vector<24x24xf32>
    %131 = arith.mulf %126, %130 : vector<24x24xf32>
    %cst_63 = arith.constant dense<0.000000e+00> : vector<24x32xf32>
    %132 = tpu.matmul %131, %117, %cst_63 {dimension_numbers = #tpu.dot_dimension_numbers<[1], [0], [0], [1], [0, 0, 1, 1], [], []>} : vector<24x24xf32>, vector<24x32xf32>, vector<24x32xf32> -> vector<24x32xf32>
    %133 = arith.addf %106, %132 : vector<24x32xf32>
    %c16_i32_64 = arith.constant 16 : i32
    %134 = vector.broadcast %c16_i32_64 : i32 to vector<1x32xi32>
    %135 = arith.cmpi sge, %33, %134 : vector<1x32xi32>
    %c24_i32 = arith.constant 24 : i32
    %136 = vector.broadcast %c24_i32 : i32 to vector<1x32xi32>
    %137 = arith.cmpi slt, %33, %136 : vector<1x32xi32>
    %138 = arith.andi %135, %137 : vector<1x32xi1>
    %139 = arith.extui %138 : vector<1x32xi1> to vector<1x32xi32>
    %140 = arith.sitofp %139 : vector<1x32xi32> to vector<1x32xf32>
    %141 = vector.broadcast %140 : vector<1x32xf32> to vector<24x32xf32>
    %142 = arith.mulf %71, %141 : vector<24x32xf32>
    %143 = vector.broadcast %140 : vector<1x32xf32> to vector<24x32xf32>
    %144 = arith.mulf %78, %143 : vector<24x32xf32>
    %cst_65 = arith.constant dense<0.000000e+00> : vector<24x24xf32>
    %145 = tpu.matmul %64, %142, %cst_65 {dimension_numbers = #tpu.dot_dimension_numbers<[1], [1], [0], [0], [0, 0, 1, 0], [], []>} : vector<24x32xf32>, vector<24x32xf32>, vector<24x24xf32> -> vector<24x24xf32>
    %cst_66 = arith.constant 0.353553385 : f32
    %146 = vector.broadcast %cst_66 : f32 to vector<24x24xf32>
    %147 = arith.mulf %145, %146 : vector<24x24xf32>
    %148 = arith.addf %147, %32 : vector<24x24xf32>
    %cst_67 = arith.constant dense<0xFF800000> : vector<24xf32>
    %149 = vector.multi_reduction <maximumf>, %148, %cst_67 [1] : vector<24x24xf32> to vector<24xf32>
    %150 = vector.shape_cast %149 : vector<24xf32> to vector<24x1xf32>
    %151 = vector.broadcast %150 : vector<24x1xf32> to vector<24x24xf32>
    %152 = arith.subf %148, %151 : vector<24x24xf32>
    %153 = math.exp %152 : vector<24x24xf32>
    %cst_68 = arith.constant dense<0.000000e+00> : vector<24xf32>
    %154 = vector.multi_reduction <add>, %153, %cst_68 [1] : vector<24x24xf32> to vector<24xf32>
    %155 = vector.shape_cast %154 : vector<24xf32> to vector<24x1xf32>
    %156 = tpu.reciprocal %155 {approx = true} : vector<24x1xf32> -> vector<24x1xf32>
    %157 = vector.broadcast %156 : vector<24x1xf32> to vector<24x24xf32>
    %158 = arith.mulf %153, %157 : vector<24x24xf32>
    %cst_69 = arith.constant dense<0.000000e+00> : vector<24x32xf32>
    %159 = tpu.matmul %158, %144, %cst_69 {dimension_numbers = #tpu.dot_dimension_numbers<[1], [0], [0], [1], [0, 0, 1, 1], [], []>} : vector<24x24xf32>, vector<24x32xf32>, vector<24x32xf32> -> vector<24x32xf32>
    %160 = arith.addf %133, %159 : vector<24x32xf32>
    %c24_i32_70 = arith.constant 24 : i32
    %161 = vector.broadcast %c24_i32_70 : i32 to vector<1x32xi32>
    %162 = arith.cmpi sge, %33, %161 : vector<1x32xi32>
    %c32_i32 = arith.constant 32 : i32
    %163 = vector.broadcast %c32_i32 : i32 to vector<1x32xi32>
    %164 = arith.cmpi slt, %33, %163 : vector<1x32xi32>
    %165 = arith.andi %162, %164 : vector<1x32xi1>
    %166 = arith.extui %165 : vector<1x32xi1> to vector<1x32xi32>
    %167 = arith.sitofp %166 : vector<1x32xi32> to vector<1x32xf32>
    %168 = vector.broadcast %167 : vector<1x32xf32> to vector<24x32xf32>
    %169 = arith.mulf %71, %168 : vector<24x32xf32>
    %170 = vector.broadcast %167 : vector<1x32xf32> to vector<24x32xf32>
    %171 = arith.mulf %78, %170 : vector<24x32xf32>
    %cst_71 = arith.constant dense<0.000000e+00> : vector<24x24xf32>
    %172 = tpu.matmul %64, %169, %cst_71 {dimension_numbers = #tpu.dot_dimension_numbers<[1], [1], [0], [0], [0, 0, 1, 0], [], []>} : vector<24x32xf32>, vector<24x32xf32>, vector<24x24xf32> -> vector<24x24xf32>
    %cst_72 = arith.constant 0.353553385 : f32
    %173 = vector.broadcast %cst_72 : f32 to vector<24x24xf32>
    %174 = arith.mulf %172, %173 : vector<24x24xf32>
    %175 = arith.addf %174, %32 : vector<24x24xf32>
    %cst_73 = arith.constant dense<0xFF800000> : vector<24xf32>
    %176 = vector.multi_reduction <maximumf>, %175, %cst_73 [1] : vector<24x24xf32> to vector<24xf32>
    %177 = vector.shape_cast %176 : vector<24xf32> to vector<24x1xf32>
    %178 = vector.broadcast %177 : vector<24x1xf32> to vector<24x24xf32>
    %179 = arith.subf %175, %178 : vector<24x24xf32>
    %180 = math.exp %179 : vector<24x24xf32>
    %cst_74 = arith.constant dense<0.000000e+00> : vector<24xf32>
    %181 = vector.multi_reduction <add>, %180, %cst_74 [1] : vector<24x24xf32> to vector<24xf32>
    %182 = vector.shape_cast %181 : vector<24xf32> to vector<24x1xf32>
    %183 = tpu.reciprocal %182 {approx = true} : vector<24x1xf32> -> vector<24x1xf32>
    %184 = vector.broadcast %183 : vector<24x1xf32> to vector<24x24xf32>
    %185 = arith.mulf %180, %184 : vector<24x24xf32>
    %cst_75 = arith.constant dense<0.000000e+00> : vector<24x32xf32>
    %186 = tpu.matmul %185, %171, %cst_75 {dimension_numbers = #tpu.dot_dimension_numbers<[1], [0], [0], [1], [0, 0, 1, 1], [], []>} : vector<24x24xf32>, vector<24x32xf32>, vector<24x32xf32> -> vector<24x32xf32>
    %187 = arith.addf %160, %186 : vector<24x32xf32>
    %c0_76 = arith.constant 0 : index
    %c0_77 = arith.constant 0 : index
    %c0_78 = arith.constant 0 : index
    %188 = vector.load %arg16[%c0_76, %c0_77, %c0_78] : memref<2x32x32xf32, #tpu.memory_space<vmem>>, vector<1x32x32xf32>
    %189 = vector.shape_cast %188 : vector<1x32x32xf32> to vector<32x32xf32>
    %cst_79 = arith.constant dense<0.000000e+00> : vector<24x32xf32>
    %190 = tpu.matmul %187, %189, %cst_79 {dimension_numbers = #tpu.dot_dimension_numbers<[1], [0], [0], [1], [0, 0, 1, 1], [], []>} : vector<24x32xf32>, vector<32x32xf32>, vector<24x32xf32> -> vector<24x32xf32>
    %c0_80 = arith.constant 0 : index
    %c0_81 = arith.constant 0 : index
    %c0_82 = arith.constant 0 : index
    %191 = vector.load %arg17[%c0_80, %c0_81, %c0_82] : memref<2x1x32xf32, #tpu.memory_space<vmem>>, vector<1x1x32xf32>
    %192 = vector.shape_cast %191 : vector<1x1x32xf32> to vector<1x32xf32>
    %193 = vector.broadcast %192 : vector<1x32xf32> to vector<24x32xf32>
    %194 = arith.addf %190, %193 : vector<24x32xf32>
    %195 = arith.addf %31, %194 : vector<24x32xf32>
    %c0_83 = arith.constant 0 : index
    %c0_84 = arith.constant 0 : index
    %c0_85 = arith.constant 0 : index
    %196 = vector.load %arg18[%c0_83, %c0_84, %c0_85] : memref<2x1x32xf32, #tpu.memory_space<vmem>>, vector<1x1x32xf32>
    %197 = vector.shape_cast %196 : vector<1x1x32xf32> to vector<1x32xf32>
    %c0_86 = arith.constant 0 : index
    %c0_87 = arith.constant 0 : index
    %c0_88 = arith.constant 0 : index
    %198 = vector.load %arg19[%c0_86, %c0_87, %c0_88] : memref<2x1x32xf32, #tpu.memory_space<vmem>>, vector<1x1x32xf32>
    %199 = vector.shape_cast %198 : vector<1x1x32xf32> to vector<1x32xf32>
    %cst_89 = arith.constant dense<0.000000e+00> : vector<24xf32>
    %200 = vector.multi_reduction <add>, %195, %cst_89 [1] : vector<24x32xf32> to vector<24xf32>
    %201 = vector.shape_cast %200 : vector<24xf32> to vector<24x1xf32>
    %cst_90 = arith.constant 3.200000e+01 : f32
    %202 = vector.broadcast %cst_90 : f32 to vector<24x1xf32>
    %203 = arith.divf %201, %202 : vector<24x1xf32>
    %204 = vector.broadcast %203 : vector<24x1xf32> to vector<24x32xf32>
    %205 = arith.subf %195, %204 : vector<24x32xf32>
    %206 = arith.mulf %205, %205 : vector<24x32xf32>
    %cst_91 = arith.constant dense<0.000000e+00> : vector<24xf32>
    %207 = vector.multi_reduction <add>, %206, %cst_91 [1] : vector<24x32xf32> to vector<24xf32>
    %208 = vector.shape_cast %207 : vector<24xf32> to vector<24x1xf32>
    %cst_92 = arith.constant 3.200000e+01 : f32
    %209 = vector.broadcast %cst_92 : f32 to vector<24x1xf32>
    %210 = arith.divf %208, %209 : vector<24x1xf32>
    %cst_93 = arith.constant 9.99999996E-13 : f32
    %211 = vector.broadcast %cst_93 : f32 to vector<24x1xf32>
    %212 = arith.addf %210, %211 : vector<24x1xf32>
    %213 = math.rsqrt %212 : vector<24x1xf32>
    %214 = vector.broadcast %213 : vector<24x1xf32> to vector<24x32xf32>
    %215 = arith.mulf %205, %214 : vector<24x32xf32>
    %216 = vector.broadcast %197 : vector<1x32xf32> to vector<24x32xf32>
    %217 = arith.mulf %215, %216 : vector<24x32xf32>
    %218 = vector.broadcast %199 : vector<1x32xf32> to vector<24x32xf32>
    %219 = arith.addf %217, %218 : vector<24x32xf32>
    %c0_94 = arith.constant 0 : index
    %c0_95 = arith.constant 0 : index
    %c0_96 = arith.constant 0 : index
    %220 = vector.load %arg20[%c0_94, %c0_95, %c0_96] : memref<2x32x64xf32, #tpu.memory_space<vmem>>, vector<1x32x64xf32>
    %221 = vector.shape_cast %220 : vector<1x32x64xf32> to vector<32x64xf32>
    %cst_97 = arith.constant dense<0.000000e+00> : vector<24x64xf32>
    %222 = tpu.matmul %219, %221, %cst_97 {dimension_numbers = #tpu.dot_dimension_numbers<[1], [0], [0], [1], [0, 0, 1, 1], [], []>} : vector<24x32xf32>, vector<32x64xf32>, vector<24x64xf32> -> vector<24x64xf32>
    %c0_98 = arith.constant 0 : index
    %c0_99 = arith.constant 0 : index
    %c0_100 = arith.constant 0 : index
    %223 = vector.load %arg21[%c0_98, %c0_99, %c0_100] : memref<2x1x64xf32, #tpu.memory_space<vmem>>, vector<1x1x64xf32>
    %224 = vector.shape_cast %223 : vector<1x1x64xf32> to vector<1x64xf32>
    %225 = vector.broadcast %224 : vector<1x64xf32> to vector<24x64xf32>
    %226 = arith.addf %222, %225 : vector<24x64xf32>
    %227 = arith.mulf %226, %226 : vector<24x64xf32>
    %228 = arith.mulf %226, %227 : vector<24x64xf32>
    %cst_101 = arith.constant 4.471500e-02 : f32
    %229 = vector.broadcast %cst_101 : f32 to vector<24x64xf32>
    %230 = arith.mulf %229, %228 : vector<24x64xf32>
    %231 = arith.addf %226, %230 : vector<24x64xf32>
    %cst_102 = arith.constant 0.797884583 : f32
    %232 = vector.broadcast %cst_102 : f32 to vector<24x64xf32>
    %233 = arith.mulf %232, %231 : vector<24x64xf32>
    %234 = math.tanh %233 : vector<24x64xf32>
    %cst_103 = arith.constant 1.000000e+00 : f32
    %235 = vector.broadcast %cst_103 : f32 to vector<24x64xf32>
    %236 = arith.addf %235, %234 : vector<24x64xf32>
    %cst_104 = arith.constant 5.000000e-01 : f32
    %237 = vector.broadcast %cst_104 : f32 to vector<24x64xf32>
    %238 = arith.mulf %237, %236 : vector<24x64xf32>
    %239 = arith.mulf %226, %238 : vector<24x64xf32>
    %c0_105 = arith.constant 0 : index
    %c0_106 = arith.constant 0 : index
    %c0_107 = arith.constant 0 : index
    %240 = vector.load %arg22[%c0_105, %c0_106, %c0_107] : memref<2x64x32xf32, #tpu.memory_space<vmem>>, vector<1x64x32xf32>
    %241 = vector.shape_cast %240 : vector<1x64x32xf32> to vector<64x32xf32>
    %cst_108 = arith.constant dense<0.000000e+00> : vector<24x32xf32>
    %242 = tpu.matmul %239, %241, %cst_108 {dimension_numbers = #tpu.dot_dimension_numbers<[1], [0], [0], [1], [0, 0, 1, 1], [], []>} : vector<24x64xf32>, vector<64x32xf32>, vector<24x32xf32> -> vector<24x32xf32>
    %c0_109 = arith.constant 0 : index
    %c0_110 = arith.constant 0 : index
    %c0_111 = arith.constant 0 : index
    %243 = vector.load %arg23[%c0_109, %c0_110, %c0_111] : memref<2x1x32xf32, #tpu.memory_space<vmem>>, vector<1x1x32xf32>
    %244 = vector.shape_cast %243 : vector<1x1x32xf32> to vector<1x32xf32>
    %245 = vector.broadcast %244 : vector<1x32xf32> to vector<24x32xf32>
    %246 = arith.addf %242, %245 : vector<24x32xf32>
    %247 = arith.addf %195, %246 : vector<24x32xf32>
    %c1 = arith.constant 1 : index
    %c0_112 = arith.constant 0 : index
    %c0_113 = arith.constant 0 : index
    %248 = vector.load %arg8[%c1, %c0_112, %c0_113] : memref<2x1x32xf32, #tpu.memory_space<vmem>>, vector<1x1x32xf32>
    %249 = vector.shape_cast %248 : vector<1x1x32xf32> to vector<1x32xf32>
    %c1_114 = arith.constant 1 : index
    %c0_115 = arith.constant 0 : index
    %c0_116 = arith.constant 0 : index
    %250 = vector.load %arg9[%c1_114, %c0_115, %c0_116] : memref<2x1x32xf32, #tpu.memory_space<vmem>>, vector<1x1x32xf32>
    %251 = vector.shape_cast %250 : vector<1x1x32xf32> to vector<1x32xf32>
    %cst_117 = arith.constant dense<0.000000e+00> : vector<24xf32>
    %252 = vector.multi_reduction <add>, %247, %cst_117 [1] : vector<24x32xf32> to vector<24xf32>
    %253 = vector.shape_cast %252 : vector<24xf32> to vector<24x1xf32>
    %cst_118 = arith.constant 3.200000e+01 : f32
    %254 = vector.broadcast %cst_118 : f32 to vector<24x1xf32>
    %255 = arith.divf %253, %254 : vector<24x1xf32>
    %256 = vector.broadcast %255 : vector<24x1xf32> to vector<24x32xf32>
    %257 = arith.subf %247, %256 : vector<24x32xf32>
    %258 = arith.mulf %257, %257 : vector<24x32xf32>
    %cst_119 = arith.constant dense<0.000000e+00> : vector<24xf32>
    %259 = vector.multi_reduction <add>, %258, %cst_119 [1] : vector<24x32xf32> to vector<24xf32>
    %260 = vector.shape_cast %259 : vector<24xf32> to vector<24x1xf32>
    %cst_120 = arith.constant 3.200000e+01 : f32
    %261 = vector.broadcast %cst_120 : f32 to vector<24x1xf32>
    %262 = arith.divf %260, %261 : vector<24x1xf32>
    %cst_121 = arith.constant 9.99999996E-13 : f32
    %263 = vector.broadcast %cst_121 : f32 to vector<24x1xf32>
    %264 = arith.addf %262, %263 : vector<24x1xf32>
    %265 = math.rsqrt %264 : vector<24x1xf32>
    %266 = vector.broadcast %265 : vector<24x1xf32> to vector<24x32xf32>
    %267 = arith.mulf %257, %266 : vector<24x32xf32>
    %268 = vector.broadcast %249 : vector<1x32xf32> to vector<24x32xf32>
    %269 = arith.mulf %267, %268 : vector<24x32xf32>
    %270 = vector.broadcast %251 : vector<1x32xf32> to vector<24x32xf32>
    %271 = arith.addf %269, %270 : vector<24x32xf32>
    %c1_122 = arith.constant 1 : index
    %c0_123 = arith.constant 0 : index
    %c0_124 = arith.constant 0 : index
    %272 = vector.load %arg10[%c1_122, %c0_123, %c0_124] : memref<2x32x32xf32, #tpu.memory_space<vmem>>, vector<1x32x32xf32>
    %273 = vector.shape_cast %272 : vector<1x32x32xf32> to vector<32x32xf32>
    %cst_125 = arith.constant dense<0.000000e+00> : vector<24x32xf32>
    %274 = tpu.matmul %271, %273, %cst_125 {dimension_numbers = #tpu.dot_dimension_numbers<[1], [0], [0], [1], [0, 0, 1, 1], [], []>} : vector<24x32xf32>, vector<32x32xf32>, vector<24x32xf32> -> vector<24x32xf32>
    %c1_126 = arith.constant 1 : index
    %c0_127 = arith.constant 0 : index
    %c0_128 = arith.constant 0 : index
    %275 = vector.load %arg11[%c1_126, %c0_127, %c0_128] : memref<2x1x32xf32, #tpu.memory_space<vmem>>, vector<1x1x32xf32>
    %276 = vector.shape_cast %275 : vector<1x1x32xf32> to vector<1x32xf32>
    %277 = vector.broadcast %276 : vector<1x32xf32> to vector<24x32xf32>
    %278 = arith.addf %274, %277 : vector<24x32xf32>
    %c1_129 = arith.constant 1 : index
    %c0_130 = arith.constant 0 : index
    %c0_131 = arith.constant 0 : index
    %279 = vector.load %arg12[%c1_129, %c0_130, %c0_131] : memref<2x32x32xf32, #tpu.memory_space<vmem>>, vector<1x32x32xf32>
    %280 = vector.shape_cast %279 : vector<1x32x32xf32> to vector<32x32xf32>
    %cst_132 = arith.constant dense<0.000000e+00> : vector<24x32xf32>
    %281 = tpu.matmul %271, %280, %cst_132 {dimension_numbers = #tpu.dot_dimension_numbers<[1], [0], [0], [1], [0, 0, 1, 1], [], []>} : vector<24x32xf32>, vector<32x32xf32>, vector<24x32xf32> -> vector<24x32xf32>
    %c1_133 = arith.constant 1 : index
    %c0_134 = arith.constant 0 : index
    %c0_135 = arith.constant 0 : index
    %282 = vector.load %arg13[%c1_133, %c0_134, %c0_135] : memref<2x1x32xf32, #tpu.memory_space<vmem>>, vector<1x1x32xf32>
    %283 = vector.shape_cast %282 : vector<1x1x32xf32> to vector<1x32xf32>
    %284 = vector.broadcast %283 : vector<1x32xf32> to vector<24x32xf32>
    %285 = arith.addf %281, %284 : vector<24x32xf32>
    %c1_136 = arith.constant 1 : index
    %c0_137 = arith.constant 0 : index
    %c0_138 = arith.constant 0 : index
    %286 = vector.load %arg14[%c1_136, %c0_137, %c0_138] : memref<2x32x32xf32, #tpu.memory_space<vmem>>, vector<1x32x32xf32>
    %287 = vector.shape_cast %286 : vector<1x32x32xf32> to vector<32x32xf32>
    %cst_139 = arith.constant dense<0.000000e+00> : vector<24x32xf32>
    %288 = tpu.matmul %271, %287, %cst_139 {dimension_numbers = #tpu.dot_dimension_numbers<[1], [0], [0], [1], [0, 0, 1, 1], [], []>} : vector<24x32xf32>, vector<32x32xf32>, vector<24x32xf32> -> vector<24x32xf32>
    %c1_140 = arith.constant 1 : index
    %c0_141 = arith.constant 0 : index
    %c0_142 = arith.constant 0 : index
    %289 = vector.load %arg15[%c1_140, %c0_141, %c0_142] : memref<2x1x32xf32, #tpu.memory_space<vmem>>, vector<1x1x32xf32>
    %290 = vector.shape_cast %289 : vector<1x1x32xf32> to vector<1x32xf32>
    %291 = vector.broadcast %290 : vector<1x32xf32> to vector<24x32xf32>
    %292 = arith.addf %288, %291 : vector<24x32xf32>
    %cst_143 = arith.constant 0.000000e+00 : f32
    %293 = vector.broadcast %cst_143 : f32 to vector<24x32xf32>
    %c0_i32_144 = arith.constant 0 : i32
    %294 = vector.broadcast %c0_i32_144 : i32 to vector<1x32xi32>
    %295 = arith.cmpi sge, %33, %294 : vector<1x32xi32>
    %c8_i32_145 = arith.constant 8 : i32
    %296 = vector.broadcast %c8_i32_145 : i32 to vector<1x32xi32>
    %297 = arith.cmpi slt, %33, %296 : vector<1x32xi32>
    %298 = arith.andi %295, %297 : vector<1x32xi1>
    %299 = arith.extui %298 : vector<1x32xi1> to vector<1x32xi32>
    %300 = arith.sitofp %299 : vector<1x32xi32> to vector<1x32xf32>
    %301 = vector.broadcast %300 : vector<1x32xf32> to vector<24x32xf32>
    %302 = arith.mulf %285, %301 : vector<24x32xf32>
    %303 = vector.broadcast %300 : vector<1x32xf32> to vector<24x32xf32>
    %304 = arith.mulf %292, %303 : vector<24x32xf32>
    %cst_146 = arith.constant dense<0.000000e+00> : vector<24x24xf32>
    %305 = tpu.matmul %278, %302, %cst_146 {dimension_numbers = #tpu.dot_dimension_numbers<[1], [1], [0], [0], [0, 0, 1, 0], [], []>} : vector<24x32xf32>, vector<24x32xf32>, vector<24x24xf32> -> vector<24x24xf32>
    %cst_147 = arith.constant 0.353553385 : f32
    %306 = vector.broadcast %cst_147 : f32 to vector<24x24xf32>
    %307 = arith.mulf %305, %306 : vector<24x24xf32>
    %308 = arith.addf %307, %32 : vector<24x24xf32>
    %cst_148 = arith.constant dense<0xFF800000> : vector<24xf32>
    %309 = vector.multi_reduction <maximumf>, %308, %cst_148 [1] : vector<24x24xf32> to vector<24xf32>
    %310 = vector.shape_cast %309 : vector<24xf32> to vector<24x1xf32>
    %311 = vector.broadcast %310 : vector<24x1xf32> to vector<24x24xf32>
    %312 = arith.subf %308, %311 : vector<24x24xf32>
    %313 = math.exp %312 : vector<24x24xf32>
    %cst_149 = arith.constant dense<0.000000e+00> : vector<24xf32>
    %314 = vector.multi_reduction <add>, %313, %cst_149 [1] : vector<24x24xf32> to vector<24xf32>
    %315 = vector.shape_cast %314 : vector<24xf32> to vector<24x1xf32>
    %316 = tpu.reciprocal %315 {approx = true} : vector<24x1xf32> -> vector<24x1xf32>
    %317 = vector.broadcast %316 : vector<24x1xf32> to vector<24x24xf32>
    %318 = arith.mulf %313, %317 : vector<24x24xf32>
    %cst_150 = arith.constant dense<0.000000e+00> : vector<24x32xf32>
    %319 = tpu.matmul %318, %304, %cst_150 {dimension_numbers = #tpu.dot_dimension_numbers<[1], [0], [0], [1], [0, 0, 1, 1], [], []>} : vector<24x24xf32>, vector<24x32xf32>, vector<24x32xf32> -> vector<24x32xf32>
    %320 = arith.addf %293, %319 : vector<24x32xf32>
    %c8_i32_151 = arith.constant 8 : i32
    %321 = vector.broadcast %c8_i32_151 : i32 to vector<1x32xi32>
    %322 = arith.cmpi sge, %33, %321 : vector<1x32xi32>
    %c16_i32_152 = arith.constant 16 : i32
    %323 = vector.broadcast %c16_i32_152 : i32 to vector<1x32xi32>
    %324 = arith.cmpi slt, %33, %323 : vector<1x32xi32>
    %325 = arith.andi %322, %324 : vector<1x32xi1>
    %326 = arith.extui %325 : vector<1x32xi1> to vector<1x32xi32>
    %327 = arith.sitofp %326 : vector<1x32xi32> to vector<1x32xf32>
    %328 = vector.broadcast %327 : vector<1x32xf32> to vector<24x32xf32>
    %329 = arith.mulf %285, %328 : vector<24x32xf32>
    %330 = vector.broadcast %327 : vector<1x32xf32> to vector<24x32xf32>
    %331 = arith.mulf %292, %330 : vector<24x32xf32>
    %cst_153 = arith.constant dense<0.000000e+00> : vector<24x24xf32>
    %332 = tpu.matmul %278, %329, %cst_153 {dimension_numbers = #tpu.dot_dimension_numbers<[1], [1], [0], [0], [0, 0, 1, 0], [], []>} : vector<24x32xf32>, vector<24x32xf32>, vector<24x24xf32> -> vector<24x24xf32>
    %cst_154 = arith.constant 0.353553385 : f32
    %333 = vector.broadcast %cst_154 : f32 to vector<24x24xf32>
    %334 = arith.mulf %332, %333 : vector<24x24xf32>
    %335 = arith.addf %334, %32 : vector<24x24xf32>
    %cst_155 = arith.constant dense<0xFF800000> : vector<24xf32>
    %336 = vector.multi_reduction <maximumf>, %335, %cst_155 [1] : vector<24x24xf32> to vector<24xf32>
    %337 = vector.shape_cast %336 : vector<24xf32> to vector<24x1xf32>
    %338 = vector.broadcast %337 : vector<24x1xf32> to vector<24x24xf32>
    %339 = arith.subf %335, %338 : vector<24x24xf32>
    %340 = math.exp %339 : vector<24x24xf32>
    %cst_156 = arith.constant dense<0.000000e+00> : vector<24xf32>
    %341 = vector.multi_reduction <add>, %340, %cst_156 [1] : vector<24x24xf32> to vector<24xf32>
    %342 = vector.shape_cast %341 : vector<24xf32> to vector<24x1xf32>
    %343 = tpu.reciprocal %342 {approx = true} : vector<24x1xf32> -> vector<24x1xf32>
    %344 = vector.broadcast %343 : vector<24x1xf32> to vector<24x24xf32>
    %345 = arith.mulf %340, %344 : vector<24x24xf32>
    %cst_157 = arith.constant dense<0.000000e+00> : vector<24x32xf32>
    %346 = tpu.matmul %345, %331, %cst_157 {dimension_numbers = #tpu.dot_dimension_numbers<[1], [0], [0], [1], [0, 0, 1, 1], [], []>} : vector<24x24xf32>, vector<24x32xf32>, vector<24x32xf32> -> vector<24x32xf32>
    %347 = arith.addf %320, %346 : vector<24x32xf32>
    %c16_i32_158 = arith.constant 16 : i32
    %348 = vector.broadcast %c16_i32_158 : i32 to vector<1x32xi32>
    %349 = arith.cmpi sge, %33, %348 : vector<1x32xi32>
    %c24_i32_159 = arith.constant 24 : i32
    %350 = vector.broadcast %c24_i32_159 : i32 to vector<1x32xi32>
    %351 = arith.cmpi slt, %33, %350 : vector<1x32xi32>
    %352 = arith.andi %349, %351 : vector<1x32xi1>
    %353 = arith.extui %352 : vector<1x32xi1> to vector<1x32xi32>
    %354 = arith.sitofp %353 : vector<1x32xi32> to vector<1x32xf32>
    %355 = vector.broadcast %354 : vector<1x32xf32> to vector<24x32xf32>
    %356 = arith.mulf %285, %355 : vector<24x32xf32>
    %357 = vector.broadcast %354 : vector<1x32xf32> to vector<24x32xf32>
    %358 = arith.mulf %292, %357 : vector<24x32xf32>
    %cst_160 = arith.constant dense<0.000000e+00> : vector<24x24xf32>
    %359 = tpu.matmul %278, %356, %cst_160 {dimension_numbers = #tpu.dot_dimension_numbers<[1], [1], [0], [0], [0, 0, 1, 0], [], []>} : vector<24x32xf32>, vector<24x32xf32>, vector<24x24xf32> -> vector<24x24xf32>
    %cst_161 = arith.constant 0.353553385 : f32
    %360 = vector.broadcast %cst_161 : f32 to vector<24x24xf32>
    %361 = arith.mulf %359, %360 : vector<24x24xf32>
    %362 = arith.addf %361, %32 : vector<24x24xf32>
    %cst_162 = arith.constant dense<0xFF800000> : vector<24xf32>
    %363 = vector.multi_reduction <maximumf>, %362, %cst_162 [1] : vector<24x24xf32> to vector<24xf32>
    %364 = vector.shape_cast %363 : vector<24xf32> to vector<24x1xf32>
    %365 = vector.broadcast %364 : vector<24x1xf32> to vector<24x24xf32>
    %366 = arith.subf %362, %365 : vector<24x24xf32>
    %367 = math.exp %366 : vector<24x24xf32>
    %cst_163 = arith.constant dense<0.000000e+00> : vector<24xf32>
    %368 = vector.multi_reduction <add>, %367, %cst_163 [1] : vector<24x24xf32> to vector<24xf32>
    %369 = vector.shape_cast %368 : vector<24xf32> to vector<24x1xf32>
    %370 = tpu.reciprocal %369 {approx = true} : vector<24x1xf32> -> vector<24x1xf32>
    %371 = vector.broadcast %370 : vector<24x1xf32> to vector<24x24xf32>
    %372 = arith.mulf %367, %371 : vector<24x24xf32>
    %cst_164 = arith.constant dense<0.000000e+00> : vector<24x32xf32>
    %373 = tpu.matmul %372, %358, %cst_164 {dimension_numbers = #tpu.dot_dimension_numbers<[1], [0], [0], [1], [0, 0, 1, 1], [], []>} : vector<24x24xf32>, vector<24x32xf32>, vector<24x32xf32> -> vector<24x32xf32>
    %374 = arith.addf %347, %373 : vector<24x32xf32>
    %c24_i32_165 = arith.constant 24 : i32
    %375 = vector.broadcast %c24_i32_165 : i32 to vector<1x32xi32>
    %376 = arith.cmpi sge, %33, %375 : vector<1x32xi32>
    %c32_i32_166 = arith.constant 32 : i32
    %377 = vector.broadcast %c32_i32_166 : i32 to vector<1x32xi32>
    %378 = arith.cmpi slt, %33, %377 : vector<1x32xi32>
    %379 = arith.andi %376, %378 : vector<1x32xi1>
    %380 = arith.extui %379 : vector<1x32xi1> to vector<1x32xi32>
    %381 = arith.sitofp %380 : vector<1x32xi32> to vector<1x32xf32>
    %382 = vector.broadcast %381 : vector<1x32xf32> to vector<24x32xf32>
    %383 = arith.mulf %285, %382 : vector<24x32xf32>
    %384 = vector.broadcast %381 : vector<1x32xf32> to vector<24x32xf32>
    %385 = arith.mulf %292, %384 : vector<24x32xf32>
    %cst_167 = arith.constant dense<0.000000e+00> : vector<24x24xf32>
    %386 = tpu.matmul %278, %383, %cst_167 {dimension_numbers = #tpu.dot_dimension_numbers<[1], [1], [0], [0], [0, 0, 1, 0], [], []>} : vector<24x32xf32>, vector<24x32xf32>, vector<24x24xf32> -> vector<24x24xf32>
    %cst_168 = arith.constant 0.353553385 : f32
    %387 = vector.broadcast %cst_168 : f32 to vector<24x24xf32>
    %388 = arith.mulf %386, %387 : vector<24x24xf32>
    %389 = arith.addf %388, %32 : vector<24x24xf32>
    %cst_169 = arith.constant dense<0xFF800000> : vector<24xf32>
    %390 = vector.multi_reduction <maximumf>, %389, %cst_169 [1] : vector<24x24xf32> to vector<24xf32>
    %391 = vector.shape_cast %390 : vector<24xf32> to vector<24x1xf32>
    %392 = vector.broadcast %391 : vector<24x1xf32> to vector<24x24xf32>
    %393 = arith.subf %389, %392 : vector<24x24xf32>
    %394 = math.exp %393 : vector<24x24xf32>
    %cst_170 = arith.constant dense<0.000000e+00> : vector<24xf32>
    %395 = vector.multi_reduction <add>, %394, %cst_170 [1] : vector<24x24xf32> to vector<24xf32>
    %396 = vector.shape_cast %395 : vector<24xf32> to vector<24x1xf32>
    %397 = tpu.reciprocal %396 {approx = true} : vector<24x1xf32> -> vector<24x1xf32>
    %398 = vector.broadcast %397 : vector<24x1xf32> to vector<24x24xf32>
    %399 = arith.mulf %394, %398 : vector<24x24xf32>
    %cst_171 = arith.constant dense<0.000000e+00> : vector<24x32xf32>
    %400 = tpu.matmul %399, %385, %cst_171 {dimension_numbers = #tpu.dot_dimension_numbers<[1], [0], [0], [1], [0, 0, 1, 1], [], []>} : vector<24x24xf32>, vector<24x32xf32>, vector<24x32xf32> -> vector<24x32xf32>
    %401 = arith.addf %374, %400 : vector<24x32xf32>
    %c1_172 = arith.constant 1 : index
    %c0_173 = arith.constant 0 : index
    %c0_174 = arith.constant 0 : index
    %402 = vector.load %arg16[%c1_172, %c0_173, %c0_174] : memref<2x32x32xf32, #tpu.memory_space<vmem>>, vector<1x32x32xf32>
    %403 = vector.shape_cast %402 : vector<1x32x32xf32> to vector<32x32xf32>
    %cst_175 = arith.constant dense<0.000000e+00> : vector<24x32xf32>
    %404 = tpu.matmul %401, %403, %cst_175 {dimension_numbers = #tpu.dot_dimension_numbers<[1], [0], [0], [1], [0, 0, 1, 1], [], []>} : vector<24x32xf32>, vector<32x32xf32>, vector<24x32xf32> -> vector<24x32xf32>
    %c1_176 = arith.constant 1 : index
    %c0_177 = arith.constant 0 : index
    %c0_178 = arith.constant 0 : index
    %405 = vector.load %arg17[%c1_176, %c0_177, %c0_178] : memref<2x1x32xf32, #tpu.memory_space<vmem>>, vector<1x1x32xf32>
    %406 = vector.shape_cast %405 : vector<1x1x32xf32> to vector<1x32xf32>
    %407 = vector.broadcast %406 : vector<1x32xf32> to vector<24x32xf32>
    %408 = arith.addf %404, %407 : vector<24x32xf32>
    %409 = arith.addf %247, %408 : vector<24x32xf32>
    %c1_179 = arith.constant 1 : index
    %c0_180 = arith.constant 0 : index
    %c0_181 = arith.constant 0 : index
    %410 = vector.load %arg18[%c1_179, %c0_180, %c0_181] : memref<2x1x32xf32, #tpu.memory_space<vmem>>, vector<1x1x32xf32>
    %411 = vector.shape_cast %410 : vector<1x1x32xf32> to vector<1x32xf32>
    %c1_182 = arith.constant 1 : index
    %c0_183 = arith.constant 0 : index
    %c0_184 = arith.constant 0 : index
    %412 = vector.load %arg19[%c1_182, %c0_183, %c0_184] : memref<2x1x32xf32, #tpu.memory_space<vmem>>, vector<1x1x32xf32>
    %413 = vector.shape_cast %412 : vector<1x1x32xf32> to vector<1x32xf32>
    %cst_185 = arith.constant dense<0.000000e+00> : vector<24xf32>
    %414 = vector.multi_reduction <add>, %409, %cst_185 [1] : vector<24x32xf32> to vector<24xf32>
    %415 = vector.shape_cast %414 : vector<24xf32> to vector<24x1xf32>
    %cst_186 = arith.constant 3.200000e+01 : f32
    %416 = vector.broadcast %cst_186 : f32 to vector<24x1xf32>
    %417 = arith.divf %415, %416 : vector<24x1xf32>
    %418 = vector.broadcast %417 : vector<24x1xf32> to vector<24x32xf32>
    %419 = arith.subf %409, %418 : vector<24x32xf32>
    %420 = arith.mulf %419, %419 : vector<24x32xf32>
    %cst_187 = arith.constant dense<0.000000e+00> : vector<24xf32>
    %421 = vector.multi_reduction <add>, %420, %cst_187 [1] : vector<24x32xf32> to vector<24xf32>
    %422 = vector.shape_cast %421 : vector<24xf32> to vector<24x1xf32>
    %cst_188 = arith.constant 3.200000e+01 : f32
    %423 = vector.broadcast %cst_188 : f32 to vector<24x1xf32>
    %424 = arith.divf %422, %423 : vector<24x1xf32>
    %cst_189 = arith.constant 9.99999996E-13 : f32
    %425 = vector.broadcast %cst_189 : f32 to vector<24x1xf32>
    %426 = arith.addf %424, %425 : vector<24x1xf32>
    %427 = math.rsqrt %426 : vector<24x1xf32>
    %428 = vector.broadcast %427 : vector<24x1xf32> to vector<24x32xf32>
    %429 = arith.mulf %419, %428 : vector<24x32xf32>
    %430 = vector.broadcast %411 : vector<1x32xf32> to vector<24x32xf32>
    %431 = arith.mulf %429, %430 : vector<24x32xf32>
    %432 = vector.broadcast %413 : vector<1x32xf32> to vector<24x32xf32>
    %433 = arith.addf %431, %432 : vector<24x32xf32>
    %c1_190 = arith.constant 1 : index
    %c0_191 = arith.constant 0 : index
    %c0_192 = arith.constant 0 : index
    %434 = vector.load %arg20[%c1_190, %c0_191, %c0_192] : memref<2x32x64xf32, #tpu.memory_space<vmem>>, vector<1x32x64xf32>
    %435 = vector.shape_cast %434 : vector<1x32x64xf32> to vector<32x64xf32>
    %cst_193 = arith.constant dense<0.000000e+00> : vector<24x64xf32>
    %436 = tpu.matmul %433, %435, %cst_193 {dimension_numbers = #tpu.dot_dimension_numbers<[1], [0], [0], [1], [0, 0, 1, 1], [], []>} : vector<24x32xf32>, vector<32x64xf32>, vector<24x64xf32> -> vector<24x64xf32>
    %c1_194 = arith.constant 1 : index
    %c0_195 = arith.constant 0 : index
    %c0_196 = arith.constant 0 : index
    %437 = vector.load %arg21[%c1_194, %c0_195, %c0_196] : memref<2x1x64xf32, #tpu.memory_space<vmem>>, vector<1x1x64xf32>
    %438 = vector.shape_cast %437 : vector<1x1x64xf32> to vector<1x64xf32>
    %439 = vector.broadcast %438 : vector<1x64xf32> to vector<24x64xf32>
    %440 = arith.addf %436, %439 : vector<24x64xf32>
    %441 = arith.mulf %440, %440 : vector<24x64xf32>
    %442 = arith.mulf %440, %441 : vector<24x64xf32>
    %cst_197 = arith.constant 4.471500e-02 : f32
    %443 = vector.broadcast %cst_197 : f32 to vector<24x64xf32>
    %444 = arith.mulf %443, %442 : vector<24x64xf32>
    %445 = arith.addf %440, %444 : vector<24x64xf32>
    %cst_198 = arith.constant 0.797884583 : f32
    %446 = vector.broadcast %cst_198 : f32 to vector<24x64xf32>
    %447 = arith.mulf %446, %445 : vector<24x64xf32>
    %448 = math.tanh %447 : vector<24x64xf32>
    %cst_199 = arith.constant 1.000000e+00 : f32
    %449 = vector.broadcast %cst_199 : f32 to vector<24x64xf32>
    %450 = arith.addf %449, %448 : vector<24x64xf32>
    %cst_200 = arith.constant 5.000000e-01 : f32
    %451 = vector.broadcast %cst_200 : f32 to vector<24x64xf32>
    %452 = arith.mulf %451, %450 : vector<24x64xf32>
    %453 = arith.mulf %440, %452 : vector<24x64xf32>
    %c1_201 = arith.constant 1 : index
    %c0_202 = arith.constant 0 : index
    %c0_203 = arith.constant 0 : index
    %454 = vector.load %arg22[%c1_201, %c0_202, %c0_203] : memref<2x64x32xf32, #tpu.memory_space<vmem>>, vector<1x64x32xf32>
    %455 = vector.shape_cast %454 : vector<1x64x32xf32> to vector<64x32xf32>
    %cst_204 = arith.constant dense<0.000000e+00> : vector<24x32xf32>
    %456 = tpu.matmul %453, %455, %cst_204 {dimension_numbers = #tpu.dot_dimension_numbers<[1], [0], [0], [1], [0, 0, 1, 1], [], []>} : vector<24x64xf32>, vector<64x32xf32>, vector<24x32xf32> -> vector<24x32xf32>
    %c1_205 = arith.constant 1 : index
    %c0_206 = arith.constant 0 : index
    %c0_207 = arith.constant 0 : index
    %457 = vector.load %arg23[%c1_205, %c0_206, %c0_207] : memref<2x1x32xf32, #tpu.memory_space<vmem>>, vector<1x1x32xf32>
    %458 = vector.shape_cast %457 : vector<1x1x32xf32> to vector<1x32xf32>
    %459 = vector.broadcast %458 : vector<1x32xf32> to vector<24x32xf32>
    %460 = arith.addf %456, %459 : vector<24x32xf32>
    %461 = arith.addf %409, %460 : vector<24x32xf32>
    %462 = vector.extract_strided_slice %461 {offsets = [0, 0], sizes = [1, 32], strides = [1, 1]} : vector<24x32xf32> to vector<1x32xf32>
    %463 = vector.extract_strided_slice %461 {offsets = [8, 0], sizes = [1, 32], strides = [1, 1]} : vector<24x32xf32> to vector<1x32xf32>
    %464 = tpu.concatenate %462, %463 in 0 : vector<1x32xf32>, vector<1x32xf32> -> vector<2x32xf32>
    %c0_208 = arith.constant 0 : index
    %c0_209 = arith.constant 0 : index
    %465 = vector.load %arg24[%c0_208, %c0_209] : memref<1x32xf32, #tpu.memory_space<vmem>>, vector<1x32xf32>
    %c0_210 = arith.constant 0 : index
    %c0_211 = arith.constant 0 : index
    %466 = vector.load %arg25[%c0_210, %c0_211] : memref<1x32xf32, #tpu.memory_space<vmem>>, vector<1x32xf32>
    %cst_212 = arith.constant dense<0.000000e+00> : vector<2xf32>
    %467 = vector.multi_reduction <add>, %464, %cst_212 [1] : vector<2x32xf32> to vector<2xf32>
    %468 = vector.shape_cast %467 : vector<2xf32> to vector<2x1xf32>
    %cst_213 = arith.constant 3.200000e+01 : f32
    %469 = vector.broadcast %cst_213 : f32 to vector<2x1xf32>
    %470 = arith.divf %468, %469 : vector<2x1xf32>
    %471 = vector.broadcast %470 : vector<2x1xf32> to vector<2x32xf32>
    %472 = arith.subf %464, %471 : vector<2x32xf32>
    %473 = arith.mulf %472, %472 : vector<2x32xf32>
    %cst_214 = arith.constant dense<0.000000e+00> : vector<2xf32>
    %474 = vector.multi_reduction <add>, %473, %cst_214 [1] : vector<2x32xf32> to vector<2xf32>
    %475 = vector.shape_cast %474 : vector<2xf32> to vector<2x1xf32>
    %cst_215 = arith.constant 3.200000e+01 : f32
    %476 = vector.broadcast %cst_215 : f32 to vector<2x1xf32>
    %477 = arith.divf %475, %476 : vector<2x1xf32>
    %cst_216 = arith.constant 9.99999996E-13 : f32
    %478 = vector.broadcast %cst_216 : f32 to vector<2x1xf32>
    %479 = arith.addf %477, %478 : vector<2x1xf32>
    %480 = math.rsqrt %479 : vector<2x1xf32>
    %481 = vector.broadcast %480 : vector<2x1xf32> to vector<2x32xf32>
    %482 = arith.mulf %472, %481 : vector<2x32xf32>
    %483 = vector.broadcast %465 : vector<1x32xf32> to vector<2x32xf32>
    %484 = arith.mulf %482, %483 : vector<2x32xf32>
    %485 = vector.broadcast %466 : vector<1x32xf32> to vector<2x32xf32>
    %486 = arith.addf %484, %485 : vector<2x32xf32>
    %c0_217 = arith.constant 0 : index
    %c0_218 = arith.constant 0 : index
    %487 = vector.load %arg26[%c0_217, %c0_218] : memref<32x128xf32, #tpu.memory_space<vmem>>, vector<32x128xf32>
    %cst_219 = arith.constant dense<0.000000e+00> : vector<2x128xf32>
    %488 = tpu.matmul %486, %487, %cst_219 {dimension_numbers = #tpu.dot_dimension_numbers<[1], [0], [0], [1], [0, 0, 1, 1], [], []>} : vector<2x32xf32>, vector<32x128xf32>, vector<2x128xf32> -> vector<2x128xf32>
    %c0_220 = arith.constant 0 : index
    %c0_221 = arith.constant 0 : index
    %489 = vector.load %arg27[%c0_220, %c0_221] : memref<1x128xf32, #tpu.memory_space<vmem>>, vector<1x128xf32>
    %490 = vector.broadcast %489 : vector<1x128xf32> to vector<2x128xf32>
    %491 = arith.addf %488, %490 : vector<2x128xf32>
    %c0_222 = arith.constant 0 : index
    %c0_223 = arith.constant 0 : index
    %492 = vector.load %arg28[%c0_222, %c0_223] : memref<2x128xf32, #tpu.memory_space<vmem>>, vector<2x128xf32>
    tpu.vector_store %arg28[%c0_222, %c0_223], %491 {strides = array<i32>} : memref<2x128xf32, #tpu.memory_space<vmem>>, vector<2x128xf32>,
    return
  }
}

</mosaic_0001>

<bundles_post_ra>
// kernel: forward.1
= control target key start
LH: loop header
LB: loop body
LE: loop exit
PB: predicated region body
PF: predicated region fallthrough
CT: control target
= control target key end

     0   :  { %s7166_s0 = inlined_call_operand.vmem [shape: f32[16,32], index: 0, kind: input, shape index: {}]   ;;  %s7167_s1 = inlined_call_operand.vmem [shape: bf16[8,3072], index: 1, kind: input, shape index: {}]   ;;  %s7168_s2 = inlined_call_operand.vmem [shape: f32[8,32], index: 2, kind: input, shape index: {}]   ;;  %s7169_s3 = inlined_call_operand.vmem [shape: f32[24,24], index: 3, kind: input, shape index: {}]   ;;  %s7170_s4 = inlined_call_operand.vmem [shape: f32[1,32], index: 4, kind: input, shape index: {}]   ;;  %s7171_s5 = inlined_call_operand.vmem [shape: f32[1,32], index: 5, kind: input, shape index: {}]   ;;  %s7172_s6 = inlined_call_operand.vmem [shape: bf16[32,3072], index: 6, kind: input, shape index: {}]   ;;  %s7173_s7 = inlined_call_operand.vmem [shape: f32[1,32], index: 7, kind: input, shape index: {}]   ;;  %s7174_s8 = inlined_call_operand.vmem [shape: f32[2,1,32], index: 8, kind: input, shape index: {}]   ;;  %s7175_s9 = inlined_call_operand.vmem [shape: f32[2,1,32], index: 9, kind: input, shape index: {}]   ;;  %s7176_s10 = inlined_call_operand.vmem [shape: f32[2,32,32], index: 10, kind: input, shape index: {}]   ;;  %s7177_s11 = inlined_call_operand.vmem [shape: f32[2,1,32], index: 11, kind: input, shape index: {}]   ;;  %s7178_s12 = inlined_call_operand.vmem [shape: f32[2,32,32], index: 12, kind: input, shape index: {}]   ;;  %s7179_s13 = inlined_call_operand.vmem [shape: f32[2,1,32], index: 13, kind: input, shape index: {}]   ;;  %s7180_s14 = inlined_call_operand.vmem [shape: f32[2,32,32], index: 14, kind: input, shape index: {}]   ;;  %s7181_s15 = inlined_call_operand.vmem [shape: f32[2,1,32], index: 15, kind: input, shape index: {}]   ;;  %s7182_s16 = inlined_call_operand.vmem [shape: f32[2,32,32], index: 16, kind: input, shape index: {}]   ;;  %s7183_s17 = inlined_call_operand.vmem [shape: f32[2,1,32], index: 17, kind: input, shape index: {}]   ;;  %s7184_s18 = inlined_call_operand.vmem [shape: f32[2,1,32], index: 18, kind: input, shape index: {}]   ;;  %s7185_s19 = inlined_call_operand.vmem [shape: f32[2,1,32], index: 19, kind: input, shape index: {}]   ;;  %s7186_s20 = inlined_call_operand.vmem [shape: f32[2,32,64], index: 20, kind: input, shape index: {}]   ;;  %s7187_s21 = inlined_call_operand.vmem [shape: f32[2,1,64], index: 21, kind: input, shape index: {}]   ;;  %s7188_s22 = inlined_call_operand.vmem [shape: f32[2,64,32], index: 22, kind: input, shape index: {}]   ;;  %s7189_s23 = inlined_call_operand.vmem [shape: f32[2,1,32], index: 23, kind: input, shape index: {}]   ;;  %s7190_s24 = inlined_call_operand.vmem [shape: f32[1,32], index: 24, kind: input, shape index: {}]   ;;  %s7191_s25 = inlined_call_operand.vmem [shape: f32[1,32], index: 25, kind: input, shape index: {}]   ;;  %s7192_s26 = inlined_call_operand.vmem [shape: f32[32,128], index: 26, kind: input, shape index: {}]   ;;  %s7193_s27 = inlined_call_operand.vmem [shape: f32[1,128], index: 27, kind: input, shape index: {}]   ;;  %s7194_s28 = inlined_call_operand.hbm [shape: f32[2,128], index: 28, kind: output, shape index: {}]  }
   0x1   :  { %7204 = sst [smem:[#allocation5_spill]] %s7166_s0 }
   0x2   :  { %7205 = sst [smem:[#allocation6_spill]] %s7167_s1 }
   0x3   :  { %7206 = sst [smem:[#allocation7_spill]] %s7168_s2 }
   0x4   :  { %7207 = sst [smem:[#allocation8_spill]] %s7169_s3 }
   0x5   :  { %7208 = sst [smem:[#allocation9_spill]] %s7170_s4 }
   0x6   :  { %7209 = sst [smem:[#allocation10_spill]] %s7171_s5 }
   0x7   :  { %7210 = sst [smem:[#allocation11_spill]] %s7172_s6 }
   0x8   :  { %7211 = sst [smem:[#allocation12_spill]] %s7173_s7 }
   0x9   :  { %7212 = sst [smem:[#allocation13_spill]] %s7174_s8 }
   0xa   :  { %7213 = sst [smem:[#allocation14_spill]] %s7175_s9 }
   0xb   :  { %7214 = sst [smem:[#allocation15_spill]] %s7176_s10 }
   0xc   :  { %7215 = sst [smem:[#allocation16_spill]] %s7177_s11 }
   0xd   :  { %7216 = sst [smem:[#allocation17_spill]] %s7178_s12 }
   0xe   :  { %s7217_s9 = sld [smem:[#allocation5_spill]]  ;;  %vm95_vm0 = vcmask 261120   ;;  %s7218_s6 = sld [smem:[#allocation11_spill]] }
   0xf   :  { %s7219_s2 = sld [smem:[#allocation6_spill]] }
  0x14   :  { %v5915_v0 = vld [vmem:[%s7217_s9] sm:$0xff]  ;;  %v152_v6 = vld [vmem:[%s7218_s6 + $0x8] sm:$0xff]  ;;  %v153_v21 = vld [vmem:[%s7218_s6 + $0x10] sm:$0xff] }
  0x15   :  { %v151_v1 = vld [vmem:[%s7218_s6] sm:$0xff]  ;;  %v96_v3 = vsel %vm95_vm0, %v5915_v0, 0.0  ;;  %v164_v7 = vld [vmem:[%s7218_s6 + $0x68] sm:$0xff]  ;;  %v165_v22 = vld [vmem:[%s7218_s6 + $0x70] sm:$0xff] }
  0x16   :  { %v163_v2 = vld [vmem:[%s7218_s6 + $0x60] sm:$0xff]  ;;  %v5934_v8 = vld [vmem:[%s7217_s9 + $0x8] sm:$0xff]  ;;  %97 = vadd.xlane.f32.xlu0 %v96_v3  ;;  %v4505_v9 = vcombine.high %v152_v6, %v164_v7  ;;  %v4504_v10 = vcombine.low %v152_v6, %v164_v7  ;;  %v154_v24 = vld [vmem:[%s7218_s6 + $0x18] sm:$0xff]  ;;  %v4507_v28 = vcombine.high %v153_v21, %v165_v22  ;;  %v4506_v36 = vcombine.low %v153_v21, %v165_v22 }
  0x17   :  { %v4503_v4 = vcombine.high %v151_v1, %v163_v2  ;;  %v4502_v5 = vcombine.low %v151_v1, %v163_v2  ;;  %v175_v11 = vld [vmem:[%s7218_s6 + $0xc0] sm:$0xff]  ;;  %v176_v13 = vld [vmem:[%s7218_s6 + $0xc8] sm:$0xff]  ;;  %v99_v14 = vsel %vm95_vm0, %v5934_v8, 0.0  ;;  %v166_v25 = vld [vmem:[%s7218_s6 + $0x78] sm:$0xff] }
  0x18   :  { %v187_v12 = vld [vmem:[%s7218_s6 + $0x120] sm:$0xff]  ;;  %v188_v16 = vld [vmem:[%s7218_s6 + $0x128] sm:$0xff]  ;;  %570 = vmatprep.subr.bf16.mxu1 %v4505_v9  ;;  %v4509_v29 = vcombine.high %v154_v24, %v166_v25  ;;  %v177_v30 = vld [vmem:[%s7218_s6 + $0xd0] sm:$0xff]  ;;  %v4508_v39 = vcombine.low %v154_v24, %v166_v25 }
  0x19   :  { %530 = vmatprep.subr.bf16.mxu0 %v4503_v4  ;;  %v4527_v15 = vcombine.high %v175_v11, %v187_v12  ;;  %v139_v17 = vld [vmem:[%s7219_s2] sm:$0xff]  ;;  %v4529_v18 = vcombine.high %v176_v13, %v188_v16  ;;  %v140_v19 = vld [vmem:[%s7219_s2 + $0x8] sm:$0xff]  ;;  %571 = vmatpush1.bf16.xpose.msra.mxu1 %v4504_v10  ;;  %v4526_v26 = vcombine.low %v175_v11, %v187_v12  ;;  %v189_v31 = vld [vmem:[%s7218_s6 + $0x130] sm:$0xff] }
  0x1a   :  { %531 = vmatpush1.bf16.xpose.msra.mxu0 %v4502_v5  ;;  %v4479_v20 = vcombine.high %v139_v17, %v139_v17  ;;  %100 = vadd.xlane.f32.xlu0 %v99_v14  ;;  %v4481_v23 = vcombine.high %v140_v19, %v140_v19  ;;  %v4528_v27 = vcombine.low %v176_v13, %v188_v16  ;;  %v178_v33 = vld [vmem:[%s7218_s6 + $0xd8] sm:$0xff]  ;;  %v141_v35 = vld [vmem:[%s7219_s2 + $0x10] sm:$0xff] }
  0x1b   :  { %532 = vmatprep.subr.bf16.mxu0 %v4527_v15  ;;  %572 = vmatprep.subr.bf16.mxu1 %v4529_v18  ;;  %v4478_v32 = vcombine.low %v139_v17, %v139_v17  ;;  %v190_v34 = vld [vmem:[%s7218_s6 + $0x138] sm:$0xff]  ;;  %v4480_v37 = vcombine.low %v140_v19, %v140_v19  ;;  %v4531_v40 = vcombine.high %v177_v30, %v189_v31 }
  0x1c   :  { %562 = vmatprep.mubr.bf16.mxu0 %v4479_v20  ;;  %602 = vmatprep.mubr.bf16.mxu1 %v4481_v23  ;;  %v142_v38 = vld [vmem:[%s7219_s2 + $0x18] sm:$0xff]  ;;  %v4533_v41 = vcombine.high %v178_v33, %v190_v34  ;;  %v4483_v42 = vcombine.high %v141_v35, %v141_v35 }
  0x1d   :  { %v4485_v43 = vcombine.high %v142_v38, %v142_v38 }
  0x21   :  { %573 = vmatpush1.bf16.xpose.msra.mxu1 %v4528_v27 }
  0x22   :  { %533 = vmatpush1.bf16.xpose.msra.mxu0 %v4526_v26  ;;  %650 = vmatprep.subr.bf16.mxu1 %v4509_v29 }
  0x23   :  { %610 = vmatprep.subr.bf16.mxu0 %v4507_v28 }
  0x28   :  { %603 = vmatmul.mubr.bf16.vlgmr.msra.gmra.mrb[0].mxu1 %v4480_v37 }
  0x29   :  { %563 = vmatmul.mubr.bf16.vlgmr.msra.gmra.mrb[0].mxu0 %v4478_v32 }
  0x2a   :  { %611 = vmatpush1.bf16.xpose.msra.mxu0 %v4506_v36 }
  0x2b   :  { %33 = vsyncpa [#allocation3], 0  ;;  %651 = vmatpush1.bf16.xpose.msra.mxu1 %v4508_v39  ;;  %612 = vmatprep.subr.bf16.mxu0 %v4531_v40  ;;  %v155_v44 = vld [vmem:[%s7218_s6 + $0x20] sm:$0xff]  ;;  %v156_v46 = vld [vmem:[%s7218_s6 + $0x28] sm:$0xff]  ;;  %v4530_v48 = vcombine.low %v177_v30, %v189_v31  ;;  %v4532_v49 = vcombine.low %v178_v33, %v190_v34  ;;  %v4482_v54 = vcombine.low %v141_v35, %v141_v35  ;;  %s7220_s11 = sld [smem:[#allocation12_spill]]  ;;  %s7221_s12 = sld [smem:[#allocation9_spill]] }
  0x2c   :  { %652 = vmatprep.subr.bf16.mxu1 %v4533_v41  ;;  %642 = vmatprep.mubr.bf16.mxu0 %v4483_v42  ;;  %v167_v45 = vld [vmem:[%s7218_s6 + $0x80] sm:$0xff]  ;;  %v168_v47 = vld [vmem:[%s7218_s6 + $0x88] sm:$0xff]  ;;  %v4484_v59 = vcombine.low %v142_v38, %v142_v38  ;;  %v157_v3 = vld [vmem:[%s7218_s6 + $0x30] sm:$0xff]  ;;  %s7222_s8 = sld [smem:[#allocation10_spill]]  ;;  %s7223_s3 = sld [smem:[#allocation7_spill]]  ;;  %vm5764_vm1 = vmmov 0  }
  0x2d   :  { %682 = vmatprep.mubr.bf16.mxu1 %v4485_v43  ;;  %v4511_v50 = vcombine.high %v155_v44, %v167_v45  ;;  %v4513_v51 = vcombine.high %v156_v46, %v168_v47  ;;  %v179_v52 = vld [vmem:[%s7218_s6 + $0xe0] sm:$0xff]  ;;  %v180_v55 = vld [vmem:[%s7218_s6 + $0xe8] sm:$0xff]  ;;  %v4510_v58 = vcombine.low %v155_v44, %v167_v45  ;;  %v4512_v61 = vcombine.low %v156_v46, %v168_v47  ;;  %v169_v4 = vld [vmem:[%s7218_s6 + $0x90] sm:$0xff]  ;;  %s7224_s0 = sld [smem:[#allocation15_spill]]  ;;  %s7225_s7 = sld [smem:[#allocation17_spill]] }
  0x2e   :  { %v191_v53 = vld [vmem:[%s7218_s6 + $0x140] sm:$0xff]  ;;  %v192_v56 = vld [vmem:[%s7218_s6 + $0x148] sm:$0xff]  ;;  %v158_v5 = vld [vmem:[%s7218_s6 + $0x38] sm:$0xff]  ;;  %v4515_v10 = vcombine.high %v157_v3, %v169_v4  ;;  %v4514_v18 = vcombine.low %v157_v3, %v169_v4  ;;  %s7226_s29 = sld [smem:[#allocation13_spill]]  ;;  %s7227_s4 = sld [smem:[#allocation14_spill]]  ;;  %vm1473_vm13 = vcmask 195584  }
  0x2f   :  { %v143_v57 = vld [vmem:[%s7219_s2 + $0x20] sm:$0xff]  ;;  %v144_v60 = vld [vmem:[%s7219_s2 + $0x28] sm:$0xff]  ;;  %v4535_v62 = vcombine.high %v179_v52, %v191_v53  ;;  %v4537_v63 = vcombine.high %v180_v55, %v192_v56  ;;  %v170_v6 = vld [vmem:[%s7218_s6 + $0x98] sm:$0xff]  ;;  %v4534_v7 = vcombine.low %v179_v52, %v191_v53  ;;  %v4536_v9 = vcombine.low %v180_v55, %v192_v56 }
  0x30   :  { %v4487_v1 = vcombine.high %v143_v57, %v143_v57  ;;  %v4489_v2 = vcombine.high %v144_v60, %v144_v60  ;;  %v4517_v11 = vcombine.high %v158_v5, %v170_v6  ;;  %v181_v12 = vld [vmem:[%s7218_s6 + $0xf0] sm:$0xff]  ;;  %v4486_v14 = vcombine.low %v143_v57, %v143_v57  ;;  %v182_v15 = vld [vmem:[%s7218_s6 + $0xf8] sm:$0xff]  ;;  %v159_v26 = vld [vmem:[%s7218_s6 + $0x40] sm:$0xff] }
  0x31   :  { %v193_v13 = vld [vmem:[%s7218_s6 + $0x150] sm:$0xff]  ;;  %v194_v16 = vld [vmem:[%s7218_s6 + $0x158] sm:$0xff]  ;;  %v4488_v19 = vcombine.low %v144_v60, %v144_v60  ;;  %v4516_v21 = vcombine.low %v158_v5, %v170_v6  ;;  %v171_v27 = vld [vmem:[%s7218_s6 + $0xa0] sm:$0xff]  ;;  %vm2590_vm14 = vcmask 523264   ;;  %vm4344_vm15 = vcmask 1040384  }
  0x32   :  { %613 = vmatpush1.bf16.xpose.msra.mxu0 %v4530_v48  ;;  %v145_v17 = vld [vmem:[%s7219_s2 + $0x30] sm:$0xff]  ;;  %v146_v20 = vld [vmem:[%s7219_s2 + $0x38] sm:$0xff]  ;;  %v4539_v22 = vcombine.high %v181_v12, %v193_v13  ;;  %v4541_v23 = vcombine.high %v182_v15, %v194_v16  ;;  %v160_v28 = vld [vmem:[%s7218_s6 + $0x48] sm:$0xff]  ;;  %v4538_v30 = vcombine.low %v181_v12, %v193_v13  ;;  %v4540_v31 = vcombine.low %v182_v15, %v194_v16 }
  0x33   :  { %653 = vmatpush1.bf16.xpose.msra.mxu1 %v4532_v49  ;;  %690 = vmatprep.subr.bf16.mxu0 %v4511_v50  ;;  %v4491_v24 = vcombine.high %v145_v17, %v145_v17  ;;  %v4493_v25 = vcombine.high %v146_v20, %v146_v20  ;;  %v172_v29 = vld [vmem:[%s7218_s6 + $0xa8] sm:$0xff]  ;;  %v4519_v32 = vcombine.high %v159_v26, %v171_v27  ;;  %v183_v34 = vld [vmem:[%s7218_s6 + $0x100] sm:$0xff]  ;;  %v161_v48 = vld [vmem:[%s7218_s6 + $0x50] sm:$0xff] }
  0x34   :  { %730 = vmatprep.subr.bf16.mxu1 %v4513_v51  ;;  %v4521_v33 = vcombine.high %v160_v28, %v172_v29  ;;  %v195_v35 = vld [vmem:[%s7218_s6 + $0x160] sm:$0xff]  ;;  %v4490_v36 = vcombine.low %v145_v17, %v145_v17  ;;  %v184_v37 = vld [vmem:[%s7218_s6 + $0x108] sm:$0xff]  ;;  %v4518_v40 = vcombine.low %v159_v26, %v171_v27  ;;  %v4492_v41 = vcombine.low %v146_v20, %v146_v20  ;;  %v173_v49 = vld [vmem:[%s7218_s6 + $0xb0] sm:$0xff] }
  0x35   :  { %v196_v38 = vld [vmem:[%s7218_s6 + $0x168] sm:$0xff]  ;;  %v147_v39 = vld [vmem:[%s7219_s2 + $0x40] sm:$0xff]  ;;  %v4520_v43 = vcombine.low %v160_v28, %v172_v29  ;;  %v4543_v44 = vcombine.high %v183_v34, %v195_v35  ;;  %v162_v50 = vld [vmem:[%s7218_s6 + $0x58] sm:$0xff]  ;;  %v4542_v52 = vcombine.low %v183_v34, %v195_v35 }
  0x36   :  { %v148_v42 = vld [vmem:[%s7219_s2 + $0x48] sm:$0xff]  ;;  %v4545_v45 = vcombine.high %v184_v37, %v196_v38  ;;  %v4495_v46 = vcombine.high %v147_v39, %v147_v39  ;;  %v174_v51 = vld [vmem:[%s7218_s6 + $0xb8] sm:$0xff]  ;;  %v4544_v53 = vcombine.low %v184_v37, %v196_v38  ;;  %v185_v56 = vld [vmem:[%s7218_s6 + $0x110] sm:$0xff] }
  0x37   :  { %v4497_v47 = vcombine.high %v148_v42, %v148_v42  ;;  %v4525_v55 = vcombine.high %v162_v50, %v174_v51  ;;  %v197_v57 = vld [vmem:[%s7218_s6 + $0x170] sm:$0xff]  ;;  %v198_v60 = vld [vmem:[%s7218_s6 + $0x178] sm:$0xff]  ;;  %vm6260_vm12 = vmpackc.low %vm95_vm0, %vm95_vm0 }
  0x38   :  { %v4547_v3 = vcombine.high %v185_v56, %v197_v57 }
  0x39   :  { %643 = vmatmul.mubr.bf16.vlgmr.msra.gmra.mrb[4].mxu0 %v4482_v54  ;;  %v4523_v54 = vcombine.high %v161_v48, %v173_v49 }
  0x3a   :  { %691 = vmatpush1.bf16.xpose.msra.mxu0 %v4510_v58  ;;  %683 = vmatmul.mubr.bf16.vlgmr.msra.gmra.mrb[4].mxu1 %v4484_v59  ;;  %v4494_v58 = vcombine.low %v147_v39, %v147_v39  ;;  %v186_v59 = vld [vmem:[%s7218_s6 + $0x118] sm:$0xff]  ;;  %s7231_s6 = sld [smem:[#allocation8_spill]] }
  0x3b   :  { %731 = vmatpush1.bf16.xpose.msra.mxu1 %v4512_v61  ;;  %692 = vmatprep.subr.bf16.mxu0 %v4535_v62  ;;  %v149_v61 = vld [vmem:[%s7219_s2 + $0x50] sm:$0xff]  ;;  %v4522_v62 = vcombine.low %v161_v48, %v173_v49  ;;  %v4549_v4 = vcombine.high %v186_v59, %v198_v60 }
  0x3c   :  { %732 = vmatprep.subr.bf16.mxu1 %v4537_v63  ;;  %722 = vmatprep.mubr.bf16.mxu0 %v4487_v1  ;;  %v4496_v63 = vcombine.low %v148_v42, %v148_v42  ;;  %v150_v1 = vld [vmem:[%s7219_s2 + $0x58] sm:$0xff]  ;;  %v4499_v5 = vcombine.high %v149_v61, %v149_v61 }
  0x3d   :  { %762 = vmatprep.mubr.bf16.mxu1 %v4489_v2  ;;  %v4524_v2 = vcombine.low %v162_v50, %v174_v51  ;;  %v4501_v6 = vcombine.high %v150_v1, %v150_v1 }
  0x42   :  { %693 = vmatpush1.bf16.xpose.msra.mxu0 %v4534_v7  ;;  %v4546_v7 = vcombine.low %v185_v56, %v197_v57 }
  0x43   :  { %733 = vmatpush1.bf16.xpose.msra.mxu1 %v4536_v9  ;;  %770 = vmatprep.subr.bf16.mxu0 %v4515_v10  ;;  %v4548_v9 = vcombine.low %v186_v59, %v198_v60  ;;  %v4498_v10 = vcombine.low %v149_v61, %v149_v61 }
  0x44   :  { %810 = vmatprep.subr.bf16.mxu1 %v4517_v11  ;;  %v4500_v11 = vcombine.low %v150_v1, %v150_v1 }
  0x49   :  { %723 = vmatmul.mubr.bf16.vlgmr.msra.gmra.mrb[8].mxu0 %v4486_v14 }
  0x4a   :  { %771 = vmatpush1.bf16.xpose.msra.mxu0 %v4514_v18  ;;  %763 = vmatmul.mubr.bf16.vlgmr.msra.gmra.mrb[8].mxu1 %v4488_v19 }
  0x4b   :  { %811 = vmatpush1.bf16.xpose.msra.mxu1 %v4516_v21  ;;  %772 = vmatprep.subr.bf16.mxu0 %v4539_v22 }
  0x4c   :  { %812 = vmatprep.subr.bf16.mxu1 %v4541_v23  ;;  %802 = vmatprep.mubr.bf16.mxu0 %v4491_v24 }
  0x4d   :  { %842 = vmatprep.mubr.bf16.mxu1 %v4493_v25 }
  0x52   :  { %773 = vmatpush1.bf16.xpose.msra.mxu0 %v4538_v30 }
  0x53   :  { %813 = vmatpush1.bf16.xpose.msra.mxu1 %v4540_v31  ;;  %850 = vmatprep.subr.bf16.mxu0 %v4519_v32 }
  0x54   :  { %890 = vmatprep.subr.bf16.mxu1 %v4521_v33 }
  0x59   :  { %803 = vmatmul.mubr.bf16.vlgmr.msra.gmra.mrb[12].mxu0 %v4490_v36 }
  0x5a   :  { %851 = vmatpush1.bf16.xpose.msra.mxu0 %v4518_v40  ;;  %843 = vmatmul.mubr.bf16.vlgmr.msra.gmra.mrb[12].mxu1 %v4492_v41 }
  0x5b   :  { %891 = vmatpush1.bf16.xpose.msra.mxu1 %v4520_v43  ;;  %852 = vmatprep.subr.bf16.mxu0 %v4543_v44 }
  0x5c   :  { %892 = vmatprep.subr.bf16.mxu1 %v4545_v45  ;;  %882 = vmatprep.mubr.bf16.mxu0 %v4495_v46 }
  0x5d   :  { %922 = vmatprep.mubr.bf16.mxu1 %v4497_v47 }
  0x62   :  { %853 = vmatpush1.bf16.xpose.msra.mxu0 %v4542_v52 }
  0x63   :  { %893 = vmatpush1.bf16.xpose.msra.mxu1 %v4544_v53  ;;  %930 = vmatprep.subr.bf16.mxu0 %v4523_v54 }
  0x64   :  { %970 = vmatprep.subr.bf16.mxu1 %v4525_v55 }
  0x69   :  { %883 = vmatmul.mubr.bf16.vlgmr.msra.gmra.mrb[16].mxu0 %v4494_v58 }
  0x6a   :  { %931 = vmatpush1.bf16.xpose.msra.mxu0 %v4522_v62  ;;  %923 = vmatmul.mubr.bf16.vlgmr.msra.gmra.mrb[16].mxu1 %v4496_v63 }
  0x6b   :  { %971 = vmatpush1.bf16.xpose.msra.mxu1 %v4524_v2  ;;  %932 = vmatprep.subr.bf16.mxu0 %v4547_v3 }
  0x6c   :  { %972 = vmatprep.subr.bf16.mxu1 %v4549_v4  ;;  %962 = vmatprep.mubr.bf16.mxu0 %v4499_v5 }
  0x6d   :  { %1002 = vmatprep.mubr.bf16.mxu1 %v4501_v6 }
  0x72   :  { %933 = vmatpush1.bf16.xpose.msra.mxu0 %v4546_v7 }
  0x73   :  { %973 = vmatpush1.bf16.xpose.msra.mxu1 %v4548_v9 }
  0x79   :  { %963 = vmatmul.mubr.bf16.vlgmr.msra.gmra.mrb[20].mxu0 %v4498_v10 }
  0x7a   :  { %1003 = vmatmul.mubr.bf16.vlgmr.msra.gmra.mrb[20].mxu1 %v4500_v11 }
  0xa3   :  { %v98_v12 = vpop.xlane.xlu0 %97 }
  0xa4   :  { %v103_v13 = vmul.f32 0.03125, %v98_v12 }
  0xa6   :  { %v6107_v14 = vsub.f32 %v5915_v0, %v103_v13  ;;  %v4477_v0 = vld [vmem:[%s7220_s11] ss:$0 sm:$0xff] }
  0xa7   :  { %v101_v15 = vpop.xlane.xlu0 %100 }
  0xa8   :  { %v104_v16 = vmul.f32 0.03125, %v101_v15  ;;  %v107_v17 = vmul.f32 %v6107_v14, %v6107_v14 }
  0xaa   :  { %v6112_v18 = vsub.f32 %v5934_v8, %v104_v16  ;;  %v109_v19 = vsel %vm95_vm0, %v107_v17, 0.0  ;;  %v4475_v17 = vld [vmem:[%s7221_s12] ss:$0 sm:$0xff] }
  0xab   :  { %110 = vadd.xlane.f32.xlu1 %v109_v19 }
  0xac   :  { %v108_v20 = vmul.f32 %v6112_v18, %v6112_v18 }
  0xae   :  { %v112_v21 = vsel %vm95_vm0, %v108_v20, 0.0  ;;  %v4476_v20 = vld [vmem:[%s7222_s8] ss:$0 sm:$0xff] }
  0xaf   :  { %113 = vadd.xlane.f32.xlu1 %v112_v21 }
  0xfb   :  { %v604_v25 = vpop.f32.mrb[0].mxu1 }
  0xfc   :  { %v564_v22 = vpop.f32.mrb[0].mxu0  ;;  %v606_v8 = vpop.f32.mrb[1].mxu1 }
  0xfd   :  { %v565_v23 = vadd.f32 %v4477_v0, %v564_v22  ;;  %v566_v24 = vpop.f32.mrb[1].mxu0  ;;  %v607_v29 = vpop.f32.mrb[2].mxu1 }
  0xfe   :  { %v567_v26 = vpop.f32.mrb[2].mxu0  ;;  %v608_v30 = vpop.f32.mrb[3].mxu1 }
  0xff   :  { %v605_v27 = vadd.f32 %v604_v25, %v565_v23  ;;  %v568_v28 = vpop.f32.mrb[3].mxu0  ;;  %v1010_v26 = vld [vmem:[%s7223_s3] sm:$0xff]  ;;  %s7230_s3 = sld [smem:[#allocation16_spill]] }
 0x10c   :  { %v644_v31 = vpop.f32.mrb[4].mxu0 }
 0x10d   :  { %v645_v32 = vadd.f32 %v644_v31, %v605_v27  ;;  %v684_v33 = vpop.f32.mrb[4].mxu1  ;;  %v646_v34 = vpop.f32.mrb[5].mxu0 }
 0x10e   :  { %v647_v35 = vpop.f32.mrb[6].mxu0  ;;  %v686_v36 = vpop.f32.mrb[5].mxu1 }
 0x10f   :  { %v685_v37 = vadd.f32 %v684_v33, %v645_v32  ;;  %v648_v38 = vpop.f32.mrb[7].mxu0  ;;  %v687_v39 = vpop.f32.mrb[6].mxu1 }
 0x110   :  { %v688_v40 = vpop.f32.mrb[7].mxu1 }
 0x11c   :  { %v724_v41 = vpop.f32.mrb[8].mxu0 }
 0x11d   :  { %v725_v42 = vadd.f32 %v724_v41, %v685_v37  ;;  %v764_v43 = vpop.f32.mrb[8].mxu1  ;;  %v726_v44 = vpop.f32.mrb[9].mxu0 }
 0x11e   :  { %v727_v45 = vpop.f32.mrb[10].mxu0  ;;  %v766_v46 = vpop.f32.mrb[9].mxu1 }
 0x11f   :  { %v765_v47 = vadd.f32 %v764_v43, %v725_v42  ;;  %v728_v48 = vpop.f32.mrb[11].mxu0  ;;  %v767_v49 = vpop.f32.mrb[10].mxu1 }
 0x120   :  { %v768_v50 = vpop.f32.mrb[11].mxu1 }
 0x12c   :  { %v804_v51 = vpop.f32.mrb[12].mxu0 }
 0x12d   :  { %v805_v52 = vadd.f32 %v804_v51, %v765_v47  ;;  %v844_v53 = vpop.f32.mrb[12].mxu1  ;;  %v806_v54 = vpop.f32.mrb[13].mxu0 }
 0x12e   :  { %v807_v55 = vpop.f32.mrb[14].mxu0  ;;  %v846_v56 = vpop.f32.mrb[13].mxu1  ;;  %v1077_v54 = vld [vmem:[%s7224_s0 + $0x8] sm:$0xff] }
 0x12f   :  { %v845_v57 = vadd.f32 %v844_v53, %v805_v52  ;;  %v808_v58 = vpop.f32.mrb[15].mxu0  ;;  %v847_v59 = vpop.f32.mrb[14].mxu1  ;;  %v1076_v53 = vld [vmem:[%s7224_s0] sm:$0xff] }
 0x130   :  { %v848_v60 = vpop.f32.mrb[15].mxu1  ;;  %v1176_v55 = vld [vmem:[%s7225_s7] sm:$0xff]  ;;  %v5389_v56 = vpack.c.bf16 %v1077_v54, %v1076_v53  ;;  %v5763_v58 = vmov 0.0|0.0  }
 0x131   :  { %5388 = vmatprep.subr.bf16.mxu0 %v5763_v58  ;;  %5394 = vmatprep.subr.bf16.mxu1 %v5763_v58  ;;  %v1078_v60 = vld [vmem:[%s7224_s0 + $0x10] sm:$0xff] }
 0x132   :  { %5390 = vmatpush3.bf16.msra.mxu0 %v5389_v56 }
 0x133   :  { %5391 = vmatprep.subr.bf16.mxu0 %v5763_v58 }
 0x138   :  { %v111_v61 = vpop.xlane.xlu1 %110 }
 0x139   :  { %v115_v62 = vmul.f32 0.03125, %v111_v61  ;;  %v1079_v61 = vld [vmem:[%s7224_s0 + $0x18] sm:$0xff] }
 0x13b   :  { %v117_v1 = vadd.f32 1e-12, %v115_v62  ;;  %v1178_v62 = vld [vmem:[%s7225_s7 + $0x10] sm:$0xff] }
 0x13c   :  { %v884_v63 = vpop.f32.mrb[16].mxu0  ;;  %v114_v5 = vpop.xlane.xlu1 %113 }
 0x13d   :  { %v885_v2 = vadd.f32 %v884_v63, %v845_v57  ;;  %v924_v3 = vpop.f32.mrb[16].mxu1  ;;  %v886_v4 = vpop.f32.mrb[17].mxu0  ;;  %5598 = vrsqrt.f32 %v117_v1  ;;  %v116_v9 = vmul.f32 0.03125, %v114_v5  ;;  %v1177_v57 = vld [vmem:[%s7225_s7 + $0x8] sm:$0xff]  ;;  %v5392_v63 = vpack.c.bf16 %v1079_v61, %v1078_v60  ;;  %v1179_v1 = vld [vmem:[%s7225_s7 + $0x18] sm:$0xff] }
 0x13e   :  { %v887_v6 = vpop.f32.mrb[18].mxu0  ;;  %v926_v11 = vpop.f32.mrb[17].mxu1  ;;  %v5395_v59 = vpack.c.bf16 %v1177_v57, %v1176_v55 }
 0x13f   :  { %v925_v7 = vadd.f32 %v924_v3, %v885_v2  ;;  %v888_v10 = vpop.f32.mrb[19].mxu0  ;;  %v927_v12 = vpop.f32.mrb[18].mxu1  ;;  %v118_v13 = vadd.f32 1e-12, %v116_v9  ;;  %v5398_v2 = vpack.c.bf16 %v1179_v1, %v1178_v62  ;;  %v5765_v3 = vmov 0.0   ;;  %5393 = vmatpush3.bf16.msra.mxu0 %v5392_v63 }
 0x140   :  { %v928_v15 = vpop.f32.mrb[19].mxu1  ;;  %5396 = vmatpush3.bf16.msra.mxu1 %v5395_v59  ;;  %4925 = vmatprep.mubr.msk.f32.mxu0 %vm5764_vm1, %v5765_v3 }
 0x141   :  { %5600 = vrsqrt.f32 %v118_v13  ;;  %5397 = vmatprep.subr.bf16.mxu1 %v5763_v58  ;;  %4942 = vmatprep.mubr.msk.f32.mxu1 %vm5764_vm1, %v5765_v3 }
 0x142   :  { %5400 = vmatprep.subr.bf16.mxu0 %v5763_v58 }
 0x144   :  { %5399 = vmatpush3.bf16.msra.mxu1 %v5398_v2 }
 0x145   :  { %5406 = vmatprep.subr.bf16.mxu1 %v5763_v58 }
 0x147   :  { %v5599_v16 = vpop.eup %5598 }
 0x148   :  { %v121_v19 = vmul.f32 %v5599_v16, %v6107_v14  ;;  %v4550_v16 = vld [vmem:[%s7226_s29] ss:$0 sm:$0xff] }
 0x14a   :  { %v129_v0 = vmul.f32 %v4475_v17, %v121_v19  ;;  %v4551_v19 = vld [vmem:[%s7227_s4] ss:$0 sm:$0xff] }
 0x14b   :  { %v5601_v22 = vpop.eup %5600 }
 0x14c   :  { %v964_v21 = vpop.f32.mrb[20].mxu0  ;;  %v6131_v8 = vadd.f32 %v4476_v20, %v129_v0  ;;  %v122_v27 = vmul.f32 %v5601_v22, %v6112_v18 }
 0x14d   :  { %v965_v23 = vadd.f32 %v964_v21, %v925_v7  ;;  %v1004_v24 = vpop.f32.mrb[20].mxu1  ;;  %v966_v25 = vpop.f32.mrb[21].mxu0  ;;  %v1268_v21 = vld [vmem:[%s7180_s14 + $0x8] sm:$0xff] }
 0x14e   :  { %v967_v28 = vpop.f32.mrb[22].mxu0  ;;  %v1006_v14 = vpop.f32.mrb[21].mxu1  ;;  %v1019_v32 = vsel %vm95_vm0, %v6131_v8, 0.0  ;;  %v130_v33 = vmul.f32 %v4475_v17, %v122_v27 }
 0x14f   :  { %v1005_v29 = vadd.f32 %v1004_v24, %v965_v23  ;;  %v968_v30 = vpop.f32.mrb[23].mxu0  ;;  %v1007_v31 = vpop.f32.mrb[22].mxu1  ;;  %1020 = vadd.xlane.f32.xlu0 %v1019_v32  ;;  %v1269_v28 = vld [vmem:[%s7180_s14 + $0x10] sm:$0xff]  ;;  %v1270_v14 = vld [vmem:[%s7180_s14 + $0x18] sm:$0xff] }
 0x150   :  { %v1008_v34 = vpop.f32.mrb[23].mxu1  ;;  %v6138_v36 = vadd.f32 %v4476_v20, %v130_v33  ;;  %v1267_v20 = vld [vmem:[%s7180_s14] sm:$0xff]  ;;  %v5404_v32 = vpack.c.bf16 %v1270_v14, %v1269_v28 }
 0x151   :  { %v6136_v35 = vadd.f32 %v1010_v26, %v1005_v29  ;;  %v5401_v25 = vpack.c.bf16 %v1268_v21, %v1267_v20  ;;  %v1015_v34 = vlaneseq }
 0x152   :  { %v1022_v18 = vsel %vm95_vm0, %v6138_v36, 0.0 }
 0x153   :  { %v1025_v37 = vsel %vm95_vm0, %v6136_v35, 0.0  ;;  %1023 = vadd.xlane.f32.xlu1 %v1022_v18 }
 0x154   :  { %1026 = vadd.xlane.f32.xlu0 %v1025_v37  ;;  %v1016_v37 = vand.u32 127, %v1015_v34 }
 0x156   :  { %vm1507_vm2 = vcmp.ge.s32.totalorder %v1016_v37, 8  ;;  %vm1508_vm3 = vcmp.lt.s32.totalorder %v1016_v37, 16  ;;  %vm1824_vm4 = vcmp.ge.s32.totalorder %v1016_v37, 16  ;;  %vm1825_vm5 = vcmp.lt.s32.totalorder %v1016_v37, 24 }
 0x157   :  { %vm2055_vm6 = vcmp.ge.s32.totalorder %v1016_v37, 24  ;;  %vm2056_vm7 = vcmp.lt.s32.totalorder %v1016_v37, 32  ;;  %vm1509_vm8 = vmand %vm1507_vm2, %vm1508_vm3  ;;  %vm1359_vm10 = vcmp.lt.s32.totalorder %v1016_v37, 8 }
 0x158   :  { %vm1826_vm9 = vmand %vm1824_vm4, %vm1825_vm5 }
 0x159   :  { %vm2057_vm11 = vmand %vm2055_vm6, %vm2056_vm7 }
 0x1dc   :  { %v1021_v38 = vpop.xlane.xlu0 %1020 }
 0x1dd   :  { %v1028_v39 = vmul.f32 0.03125, %v1021_v38  ;;  %v4556_v38 = vld [vmem:[%s7179_s13] ss:$0 sm:$0xff] }
 0x1df   :  { %v1031_v40 = vsub.f32 %v6131_v8, %v1028_v39 }
 0x1e0   :  { %v1024_v41 = vpop.xlane.xlu1 %1023 }
 0x1e1   :  { %v1027_v42 = vpop.xlane.xlu0 %1026  ;;  %v1029_v43 = vmul.f32 0.03125, %v1024_v41  ;;  %v1034_v45 = vmul.f32 %v1031_v40, %v1031_v40 }
 0x1e2   :  { %v1030_v44 = vmul.f32 0.03125, %v1027_v42 }
 0x1e3   :  { %v1032_v46 = vsub.f32 %v6138_v36, %v1029_v43  ;;  %v1037_v48 = vsel %vm95_vm0, %v1034_v45, 0.0  ;;  %v6235_v43 = vsel %vm1359_vm10, 1.0, %v5765_v3  ;;  %v6241_v45 = vsel %vm1826_vm9, 1.0, %v5765_v3 }
 0x1e4   :  { %v1033_v47 = vsub.f32 %v6136_v35, %v1030_v44  ;;  %1038 = vadd.xlane.f32.xlu1 %v1037_v48  ;;  %v6238_v44 = vsel %vm1509_vm8, 1.0, %v5765_v3 }
 0x1e5   :  { %v1035_v49 = vmul.f32 %v1032_v46, %v1032_v46 }
 0x1e6   :  { %v1036_v50 = vmul.f32 %v1033_v47, %v1033_v47 }
 0x1e7   :  { %v1040_v51 = vsel %vm95_vm0, %v1035_v49, 0.0 }
 0x1e8   :  { %v1043_v52 = vsel %vm95_vm0, %v1036_v50, 0.0  ;;  %1041 = vadd.xlane.f32.xlu0 %v1040_v51 }
 0x1e9   :  { %1044 = vadd.xlane.f32.xlu1 %v1043_v52 }
 0x271   :  { %v1039_v4 = vpop.xlane.xlu1 %1038 }
 0x272   :  { %v1046_v5 = vmul.f32 0.03125, %v1039_v4 }
 0x274   :  { %v1049_v6 = vadd.f32 1e-12, %v1046_v5 }
 0x275   :  { %v1042_v9 = vpop.xlane.xlu0 %1041 }
 0x276   :  { %v1045_v7 = vpop.xlane.xlu1 %1044  ;;  %5602 = vrsqrt.f32 %v1049_v6  ;;  %v1047_v11 = vmul.f32 0.03125, %v1042_v9  ;;  %v4560_v9 = vld [vmem:[%s7181_s15] ss:$0 sm:$0xff] }
 0x277   :  { %v1048_v10 = vmul.f32 0.03125, %v1045_v7 }
 0x278   :  { %v1050_v13 = vadd.f32 1e-12, %v1047_v11 }
 0x279   :  { %v1051_v12 = vadd.f32 1e-12, %v1048_v10 }
 0x27b   :  { %5604 = vrsqrt.f32 %v1051_v12 }
 0x27c   :  { %5606 = vrsqrt.f32 %v1050_v13 }
 0x280   :  { %v5603_v15 = vpop.eup %5602 }
 0x281   :  { %v1055_v17 = vmul.f32 %v5603_v15, %v1031_v40 }
 0x283   :  { %v1064_v0 = vmul.f32 %v4550_v16, %v1055_v17 }
 0x285   :  { %v5605_v22 = vpop.eup %5604  ;;  %v1073_v24 = vadd.f32 %v4551_v19, %v1064_v0 }
 0x286   :  { %v5607_v23 = vpop.eup %5606  ;;  %v1057_v27 = vmul.f32 %v5605_v22, %v1033_v47 }
 0x287   :  { %v1056_v26 = vmul.f32 %v5607_v23, %v1032_v46  ;;  %4926 = vmatmul.mubr.msk.f32.vlgmr.msra.gmra.mrb[24].mxu0 %vm95_vm0, %v1073_v24  ;;  %4943 = vmatmul.mubr.msk.f32.vlgmr.msra.gmra.mrb[24].mxu1 %vm95_vm0, %v1073_v24  ;;  %v6244_v46 = vsel %vm2057_vm11, 1.0, %v5765_v3 }
 0x288   :  { %4928 = vmatprep.mubr.msk.f32.mxu0 %vm5764_vm1, %v5765_v3  ;;  %4945 = vmatprep.mubr.msk.f32.mxu1 %vm5764_vm1, %v5765_v3  ;;  %v1066_v31 = vmul.f32 %v4550_v16, %v1057_v27 }
 0x289   :  { %v1065_v29 = vmul.f32 %v4550_v16, %v1056_v26  ;;  %5402 = vmatpush3.bf16.msra.mxu0 %v5401_v25  ;;  %v4552_v16 = vld [vmem:[%s7230_s3] ss:$0 sm:$0xff] }
 0x28a   :  { %5403 = vmatprep.subr.bf16.mxu0 %v5763_v58  ;;  %v1075_v33 = vadd.f32 %v4551_v19, %v1066_v31 }
 0x28b   :  { %v1074_v30 = vadd.f32 %v4551_v19, %v1065_v29 }
 0x28d   :  { %4929 = vmatmul.mubr.msk.f32.gmra.mrb[26].mxu0 %vm95_vm0, %v1074_v30  ;;  %4946 = vmatmul.mubr.msk.f32.gmra.mrb[26].mxu1 %vm95_vm0, %v1074_v30 }
 0x28e   :  { %4931 = vmatprep.mubr.msk.f32.mxu0 %vm5764_vm1, %v5765_v3  ;;  %4948 = vmatprep.mubr.msk.f32.mxu1 %vm5764_vm1, %v5765_v3 }
 0x28f   :  { %5405 = vmatpush3.bf16.msra.mxu0 %v5404_v32 }
 0x290   :  { %5410 = vmatprep.subr.bf16.mxu0 %v5763_v58 }
 0x291   :  { %4932 = vmatmul.mubr.msk.f32.gmra.mrb[28].mxu0 %vm95_vm0, %v1075_v33  ;;  %4949 = vmatmul.mubr.msk.f32.gmra.mrb[28].mxu1 %vm95_vm0, %v1075_v33 }
 0x292   :  { %4959 = vmatprep.mubr.msk.f32.mxu0 %vm5764_vm1, %v5765_v3  ;;  %4974 = vmatprep.mubr.msk.f32.mxu1 %vm5764_vm1, %v5765_v3 }
 0x295   :  { %4960 = vmatmul.mubr.msk.f32.vlgmr.msra.gmra.mrb[30].mxu0 %vm95_vm0, %v1073_v24 }
 0x296   :  { %4962 = vmatprep.mubr.msk.f32.mxu0 %vm5764_vm1, %v5765_v3 }
 0x299   :  { %4963 = vmatmul.mubr.msk.f32.gmra.mrb[32].mxu0 %vm95_vm0, %v1074_v30 }
 0x29a   :  { %4965 = vmatprep.mubr.msk.f32.mxu0 %vm5764_vm1, %v5765_v3 }
 0x29d   :  { %4966 = vmatmul.mubr.msk.f32.gmra.mrb[34].mxu0 %vm95_vm0, %v1075_v33 }
 0x29e   :  { %4989 = vmatprep.mubr.msk.f32.mxu0 %vm5764_vm1, %v5765_v3 }
 0x35a   :  { %v1162_v18 = vpop.f32.mrb[24].mxu0  ;;  %v1253_v39 = vpop.f32.mrb[24].mxu1 }
 0x35b   :  { %v4927_v40 = vpop.f32.mrb[25].mxu0  ;;  %v4944_v41 = vpop.f32.mrb[25].mxu1  ;;  %v1254_v42 = vadd.f32 %v4556_v38, %v1253_v39  ;;  %v1163_v28 = vadd.f32 %v4552_v16, %v1162_v18 }
 0x35d   :  { %v1363_v52 = vmul.f32 %v6235_v43, %v1254_v42  ;;  %v1512_v53 = vmul.f32 %v6238_v44, %v1254_v42  ;;  %v1829_v54 = vmul.f32 %v6241_v45, %v1254_v42  ;;  %v6250_v55 = vmul.f32 %v6244_v46, %v1254_v42 }
 0x360   :  { %v1167_v47 = vpop.f32.mrb[26].mxu0  ;;  %v1258_v48 = vpop.f32.mrb[26].mxu1 }
 0x361   :  { %v1259_v49 = vadd.f32 %v4556_v38, %v1258_v48  ;;  %v4930_v50 = vpop.f32.mrb[27].mxu0  ;;  %v4947_v51 = vpop.f32.mrb[27].mxu1  ;;  %v1168_v18 = vadd.f32 %v4552_v16, %v1167_v47 }
 0x363   :  { %v1364_v56 = vmul.f32 %v6235_v43, %v1259_v49  ;;  %v1513_v57 = vmul.f32 %v6238_v44, %v1259_v49  ;;  %v1830_v59 = vmul.f32 %v6241_v45, %v1259_v49  ;;  %v6256_v60 = vmul.f32 %v6244_v46, %v1259_v49  ;;  %v1012_v49 = vld [vmem:[%s7231_s6] sm:$0xff] }
 0x364   :  { %v1172_v61 = vpop.f32.mrb[28].mxu0  ;;  %v1263_v62 = vpop.f32.mrb[28].mxu1 }
 0x365   :  { %v5407_v1 = vpack.c.bf16 %v1364_v56, %v1363_v52  ;;  %v5411_v2 = vpack.c.bf16 %v1513_v57, %v1512_v53  ;;  %v5421_v4 = vpack.c.bf16 %v1830_v59, %v1829_v54  ;;  %v5428_v5 = vpack.c.bf16 %v6256_v60, %v6250_v55  ;;  %v4933_v6 = vpop.f32.mrb[29].mxu0  ;;  %v4950_v7 = vpop.f32.mrb[29].mxu1  ;;  %v1013_v57 = vld [vmem:[%s7231_s6 + $0x8] sm:$0xff] }
 0x366   :  { %v1264_v11 = vadd.f32 %v4556_v38, %v1263_v62  ;;  %v1173_v39 = vadd.f32 %v4552_v16, %v1172_v61  ;;  %v1014_v7 = vld [vmem:[%s7231_s6 + $0x10] sm:$0xff] }
 0x367   :  { %5409 = vmatpush3.bf16.xpose.msk.msra.mxu1 %vm6260_vm12, %v5407_v1  ;;  %5413 = vmatpush3.bf16.xpose.msk.msra.mxu0 %vm6260_vm12, %v5411_v2 }
 0x368   :  { %v1344_v10 = vpop.f32.mrb[30].mxu0  ;;  %4972 = vmatprep.subr.mxu1 %v5765_v3  ;;  %4987 = vmatprep.subr.mxu0 %v5765_v3  ;;  %v1365_v17 = vmul.f32 %v6235_v43, %v1264_v11  ;;  %v1514_v21 = vmul.f32 %v6238_v44, %v1264_v11  ;;  %v1831_v40 = vmul.f32 %v6241_v45, %v1264_v11 }
 0x369   :  { %v4961_v12 = vpop.f32.mrb[31].mxu0  ;;  %v1345_v13 = vadd.f32 %v4560_v9, %v1344_v10  ;;  %v2062_v41 = vmul.f32 %v6244_v46, %v1264_v11 }
 0x36b   :  { %v6281_v0 = vmul.f32 %v6235_v43, %v1345_v13  ;;  %v1515_v22 = vmul.f32 %v6238_v44, %v1345_v13  ;;  %v6285_v23 = vmul.f32 %v6241_v45, %v1345_v13  ;;  %v6299_v14 = vmul.f32 %v6244_v46, %v1345_v13 }
 0x36c   :  { %v1349_v15 = vpop.f32.mrb[32].mxu0 }
 0x36d   :  { %v1350_v19 = vadd.f32 %v4560_v9, %v1349_v15  ;;  %v4964_v20 = vpop.f32.mrb[33].mxu0 }
 0x36f   :  { %v6288_v24 = vmul.f32 %v6235_v43, %v1350_v19  ;;  %v1516_v25 = vmul.f32 %v6238_v44, %v1350_v19  ;;  %v6292_v26 = vmul.f32 %v6241_v45, %v1350_v19  ;;  %v6295_v27 = vmul.f32 %v6244_v46, %v1350_v19  ;;  %4973 = vmatpush3.xpose.msk.msra.mxu1 %vm95_vm0, %v1365_v17 }
 0x370   :  { %4988 = vmatpush3.xpose.msk.msra.mxu0 %vm95_vm0, %v1514_v21  ;;  %v1354_v29 = vpop.f32.mrb[34].mxu0  ;;  %5414 = vmatprep.subr.bf16.mxu1 %v5763_v58 }
 0x371   :  { %v6303_v30 = vadd.f32 %v4560_v9, %v1354_v29  ;;  %v4967_v31 = vpop.f32.mrb[35].mxu0  ;;  %5420 = vmatprep.subr.bf16.mxu0 %v5763_v58  ;;  %v5415_v32 = vpack.c.bf16 %v1516_v25, %v1515_v22  ;;  %v5418_v33 = vpack.c.bf16 %v6288_v24, %v6281_v0  ;;  %v5425_v34 = vpack.c.bf16 %v6292_v26, %v6285_v23 }
 0x372   :  { %4975 = vmatmul.mubr.msk.f32.vlgmr.msra.gmra.mrb[30].mxu1 %vm95_vm0, %v1163_v28  ;;  %v5432_v37 = vpack.c.bf16 %v6295_v27, %v6299_v14 }
 0x373   :  { %4990 = vmatmul.mubr.msk.f32.vlgmr.msra.gmra.mrb[36].mxu0 %vm95_vm0, %v1163_v28  ;;  %5416 = vmatpush3.bf16.msra.mxu1 %v5415_v32  ;;  %v1517_v38 = vmul.f32 %v6238_v44, %v6303_v30 }
 0x374   :  { %5423 = vmatpush3.bf16.xpose.msk.msra.mxu0 %vm6260_vm12, %v5421_v4  ;;  %4977 = vmatprep.mubr.msk.f32.mxu1 %vm5764_vm1, %v5765_v3 }
 0x375   :  { %4992 = vmatprep.mubr.msk.f32.mxu0 %vm5764_vm1, %v5765_v3  ;;  %5002 = vmatprep.subr.mxu1 %v5765_v3 }
 0x376   :  { %4978 = vmatmul.mubr.msk.f32.gmra.mrb[32].mxu1 %vm95_vm0, %v1168_v18  ;;  %5032 = vmatprep.subr.mxu0 %v5765_v3 }
 0x377   :  { %4993 = vmatmul.mubr.msk.f32.gmra.mrb[38].mxu0 %vm95_vm0, %v1168_v18  ;;  %5003 = vmatpush3.msra.mxu1 %v1517_v38 }
 0x378   :  { %4980 = vmatprep.mubr.msk.f32.mxu1 %vm5764_vm1, %v5765_v3  ;;  %4995 = vmatprep.mubr.msk.f32.mxu0 %vm5764_vm1, %v5765_v3 }
 0x379   :  { %5417 = vmatprep.subr.bf16.mxu1 %v5763_v58 }
 0x37a   :  { %4981 = vmatmul.mubr.msk.f32.gmra.mrb[34].mxu1 %vm95_vm0, %v1173_v39 }
 0x37b   :  { %4996 = vmatmul.mubr.msk.f32.gmra.mrb[40].mxu0 %vm95_vm0, %v1173_v39  ;;  %5004 = vmatprep.mubr.msk.f32.mxu1 %vm5764_vm1, %v5765_v3 }
 0x37c   :  { %5033 = vmatpush3.xpose.msk.msra.mxu0 %vm95_vm0, %v1831_v40  ;;  %5034 = vmatprep.mubr.msk.f32.mxu0 %vm5764_vm1, %v5765_v3 }
 0x37d   :  { %5427 = vmatprep.subr.bf16.mxu0 %v5763_v58 }
 0x37f   :  { %5035 = vmatmul.mubr.msk.f32.vlgmr.msra.gmra.mrb[42].mxu0 %vm95_vm0, %v1163_v28 }
 0x380   :  { %5430 = vmatpush3.bf16.xpose.msk.msra.mxu0 %vm6260_vm12, %v5428_v5  ;;  %5037 = vmatprep.mubr.msk.f32.mxu0 %vm5764_vm1, %v5765_v3 }
 0x381   :  { %5062 = vmatprep.subr.mxu0 %v5765_v3 }
 0x383   :  { %5038 = vmatmul.mubr.msk.f32.gmra.mrb[44].mxu0 %vm95_vm0, %v1168_v18 }
 0x384   :  { %5040 = vmatprep.mubr.msk.f32.mxu0 %vm5764_vm1, %v5765_v3 }
 0x387   :  { %5041 = vmatmul.mubr.msk.f32.gmra.mrb[46].mxu0 %vm95_vm0, %v1173_v39 }
 0x388   :  { %5063 = vmatpush3.xpose.msk.msra.mxu0 %vm95_vm0, %v2062_v41  ;;  %5064 = vmatprep.mubr.msk.f32.mxu0 %vm5764_vm1, %v5765_v3 }
 0x389   :  { %5434 = vmatprep.subr.bf16.mxu0 %v5763_v58 }
 0x38b   :  { %5065 = vmatmul.mubr.msk.f32.vlgmr.msra.gmra.mrb[48].mxu0 %vm95_vm0, %v1163_v28 }
 0x38c   :  { %5067 = vmatprep.mubr.msk.f32.mxu0 %vm5764_vm1, %v5765_v3 }
 0x38f   :  { %5068 = vmatmul.mubr.msk.f32.gmra.mrb[50].mxu0 %vm95_vm0, %v1168_v18 }
 0x390   :  { %5070 = vmatprep.mubr.msk.f32.mxu0 %vm5764_vm1, %v5765_v3 }
 0x393   :  { %5071 = vmatmul.mubr.msk.f32.gmra.mrb[52].mxu0 %vm95_vm0, %v1173_v39 }
 0x394   :  { %5096 = vmatprep.mubr.msk.f32.mxu0 %vm5764_vm1, %v5765_v3 }
 0x445   :  { %v1453_v42 = vpop.f32.mrb[30].mxu1 }
 0x446   :  { %v1593_v47 = vpop.f32.mrb[36].mxu0  ;;  %v4976_v48 = vpop.f32.mrb[31].mxu1  ;;  %v1467_v54 = vmul.f32 0.35355338, %v1453_v42 }
 0x447   :  { %v1607_v50 = vmul.f32 0.35355338, %v1593_v47  ;;  %v4991_v51 = vpop.f32.mrb[37].mxu0 }
 0x448   :  { %v6379_v6 = vadd.f32 %v1467_v54, %v1012_v49 }
 0x449   :  { %v1458_v52 = vpop.f32.mrb[32].mxu1  ;;  %v6370_v53 = vadd.f32 %v1607_v50, %v1012_v49 }
 0x44a   :  { %v1598_v55 = vpop.f32.mrb[38].mxu0  ;;  %v4979_v56 = vpop.f32.mrb[33].mxu1  ;;  %v1468_v2 = vmul.f32 0.35355338, %v1458_v52  ;;  %v1474_v16 = vsel %vm1473_vm13, %v6379_v6, -inf }
 0x44b   :  { %v1608_v59 = vmul.f32 0.35355338, %v1598_v55  ;;  %v4994_v60 = vpop.f32.mrb[39].mxu0  ;;  %v1613_v61 = vsel %vm1473_vm13, %v6370_v53, -inf }
 0x44c   :  { %1614 = vmax.xlane.f32.xlu0 %v1613_v61  ;;  %v1471_v22 = vadd.f32 %v1468_v2, %v1013_v57 }
 0x44d   :  { %v1463_v62 = vpop.f32.mrb[34].mxu1  ;;  %v6377_v1 = vadd.f32 %v1608_v59, %v1013_v57 }
 0x44e   :  { %v1603_v4 = vpop.f32.mrb[40].mxu0  ;;  %v4982_v5 = vpop.f32.mrb[35].mxu1  ;;  %v1469_v9 = vmul.f32 0.35355338, %v1463_v62  ;;  %v1477_v32 = vsel %vm1473_vm13, %v1471_v22, -inf }
 0x44f   :  { %v1609_v10 = vmul.f32 0.35355338, %v1603_v4  ;;  %v4997_v11 = vpop.f32.mrb[41].mxu0  ;;  %v1616_v12 = vsel %vm1473_vm13, %v6377_v1, -inf }
 0x450   :  { %1617 = vmax.xlane.f32.xlu1 %v1616_v12  ;;  %v1472_v21 = vadd.f32 %v1469_v9, %v1014_v7 }
 0x451   :  { %v1612_v13 = vadd.f32 %v1609_v10, %v1014_v7 }
 0x452   :  { %v1910_v15 = vpop.f32.mrb[42].mxu0  ;;  %v1480_v31 = vsel %vm1473_vm13, %v1472_v21, -inf }
 0x453   :  { %v1924_v17 = vmul.f32 0.35355338, %v1910_v15  ;;  %v5036_v19 = vpop.f32.mrb[43].mxu0  ;;  %v1619_v20 = vsel %vm1473_vm13, %v1612_v13, -inf }
 0x454   :  { %1475 = vmax.xlane.f32.xlu1 %v1474_v16  ;;  %1620 = vmax.xlane.f32.xlu0 %v1619_v20 }
 0x455   :  { %v6391_v18 = vadd.f32 %v1924_v17, %v1012_v49 }
 0x456   :  { %v1915_v25 = vpop.f32.mrb[44].mxu0 }
 0x457   :  { %v1925_v28 = vmul.f32 0.35355338, %v1915_v25  ;;  %v5039_v29 = vpop.f32.mrb[45].mxu0  ;;  %v1930_v42 = vsel %vm1473_vm13, %v6391_v18, -inf }
 0x458   :  { %1481 = vmax.xlane.f32.xlu1 %v1480_v31  ;;  %1478 = vmax.xlane.f32.xlu0 %v1477_v32 }
 0x459   :  { %v1928_v38 = vadd.f32 %v1925_v28, %v1013_v57 }
 0x45a   :  { %v1920_v39 = vpop.f32.mrb[46].mxu0 }
 0x45b   :  { %v1926_v40 = vmul.f32 0.35355338, %v1920_v39  ;;  %v5042_v41 = vpop.f32.mrb[47].mxu0  ;;  %v1933_v47 = vsel %vm1473_vm13, %v1928_v38, -inf }
 0x45c   :  { %1931 = vmax.xlane.f32.xlu0 %v1930_v42  ;;  %1934 = vmax.xlane.f32.xlu1 %v1933_v47 }
 0x45d   :  { %v1929_v48 = vadd.f32 %v1926_v40, %v1014_v7 }
 0x45e   :  { %v2141_v50 = vpop.f32.mrb[48].mxu0 }
 0x45f   :  { %v2155_v51 = vmul.f32 0.35355338, %v2141_v50  ;;  %v5066_v52 = vpop.f32.mrb[49].mxu0  ;;  %v1936_v54 = vsel %vm1473_vm13, %v1929_v48, -inf }
 0x460   :  { %1937 = vmax.xlane.f32.xlu0 %v1936_v54 }
 0x461   :  { %v6397_v55 = vadd.f32 %v2155_v51, %v1012_v49 }
 0x462   :  { %v2146_v56 = vpop.f32.mrb[50].mxu0 }
 0x463   :  { %v2156_v59 = vmul.f32 0.35355338, %v2146_v56  ;;  %v5069_v60 = vpop.f32.mrb[51].mxu0  ;;  %v2161_v61 = vsel %vm1473_vm13, %v6397_v55, -inf }
 0x464   :  { %2162 = vmax.xlane.f32.xlu1 %v2161_v61 }
 0x465   :  { %v6401_v62 = vadd.f32 %v2156_v59, %v1013_v57 }
 0x466   :  { %v2151_v2 = vpop.f32.mrb[52].mxu0 }
 0x467   :  { %v2157_v4 = vmul.f32 0.35355338, %v2151_v2  ;;  %v5072_v5 = vpop.f32.mrb[53].mxu0  ;;  %v2164_v9 = vsel %vm1473_vm13, %v6401_v62, -inf }
 0x468   :  { %2165 = vmax.xlane.f32.xlu0 %v2164_v9 }
 0x469   :  { %v6405_v10 = vadd.f32 %v2157_v4, %v1014_v7 }
 0x46b   :  { %v2167_v49 = vsel %vm1473_vm13, %v6405_v10, -inf }
 0x46c   :  { %2168 = vmax.xlane.f32.xlu1 %v2167_v49 }
 0x4d9   :  { %v1615_v11 = vpop.xlane.xlu0 %1614 }
 0x4da   :  { %v1622_v12 = vsub.f32 %v6370_v53, %v1615_v11 }
 0x4dc   :  { %v1625_v15 = vmul.f32 1.442695, %v1622_v12 }
 0x4dd   :  { %v1618_v16 = vpop.xlane.xlu1 %1617 }
 0x4de   :  { %5608 = vpow2.f32 %v1625_v15  ;;  %v1623_v57 = vsub.f32 %v6377_v1, %v1618_v16 }
 0x4e0   :  { %v1627_v17 = vmul.f32 1.442695, %v1623_v57 }
 0x4e1   :  { %v1476_v19 = vpop.xlane.xlu1 %1475  ;;  %v1621_v20 = vpop.xlane.xlu0 %1620 }
 0x4e2   :  { %5610 = vpow2.f32 %v1627_v17  ;;  %v1483_v25 = vsub.f32 %v6379_v6, %v1476_v19  ;;  %v1624_v7 = vsub.f32 %v1612_v13, %v1621_v20 }
 0x4e4   :  { %v1486_v28 = vmul.f32 1.442695, %v1483_v25  ;;  %v1629_v29 = vmul.f32 1.442695, %v1624_v7 }
 0x4e5   :  { %v1482_v31 = vpop.xlane.xlu1 %1481  ;;  %v1479_v32 = vpop.xlane.xlu0 %1478 }
 0x4e6   :  { %5612 = vpow2.f32 %v1486_v28  ;;  %v1485_v39 = vsub.f32 %v1472_v21, %v1482_v31  ;;  %v1484_v40 = vsub.f32 %v1471_v22, %v1479_v32 }
 0x4e7   :  { %5614 = vpow2.f32 %v1629_v29 }
 0x4e8   :  { %v6412_v53 = vpop.eup %5608  ;;  %v1490_v41 = vmul.f32 1.442695, %v1485_v39  ;;  %v1488_v42 = vmul.f32 1.442695, %v1484_v40 }
 0x4e9   :  { %v1932_v1 = vpop.xlane.xlu0 %1931  ;;  %v1935_v47 = vpop.xlane.xlu1 %1934  ;;  %v1631_v50 = vsel %vm1473_vm13, %v6412_v53, 0.0 }
 0x4ea   :  { %5616 = vpow2.f32 %v1490_v41  ;;  %v1939_v6 = vsub.f32 %v6391_v18, %v1932_v1  ;;  %v1940_v13 = vsub.f32 %v1928_v38, %v1935_v47  ;;  %1632 = vadd.xlane.f32.xlu0 %v1631_v50  ;;  %v2286_v41 = vld [vmem:[%s7182_s16] sm:$0xff]  ;;  %v2288_v1 = vld [vmem:[%s7182_s16 + $0x10] sm:$0xff]  ;;  %v2289_v50 = vld [vmem:[%s7182_s16 + $0x18] sm:$0xff] }
 0x4eb   :  { %5618 = vpow2.f32 %v1488_v42  ;;  %v2287_v42 = vld [vmem:[%s7182_s16 + $0x8] sm:$0xff] }
 0x4ec   :  { %v6417_v51 = vpop.eup %5610  ;;  %v1942_v21 = vmul.f32 1.442695, %v1939_v6  ;;  %v1944_v22 = vmul.f32 1.442695, %v1940_v13  ;;  %v5435_v47 = vpack.c.bf16 %v2287_v42, %v2286_v41  ;;  %v5438_v6 = vpack.c.bf16 %v2289_v50, %v2288_v1 }
 0x4ed   :  { %v1938_v52 = vpop.xlane.xlu0 %1937  ;;  %v1634_v54 = vsel %vm1473_vm13, %v6417_v51, 0.0 }
 0x4ee   :  { %5620 = vpow2.f32 %v1942_v21  ;;  %v1941_v56 = vsub.f32 %v1929_v48, %v1938_v52  ;;  %1635 = vadd.xlane.f32.xlu1 %v1634_v54  ;;  %5436 = vmatpush3.bf16.msra.mxu0 %v5435_v47 }
 0x4ef   :  { %5622 = vpow2.f32 %v1944_v22  ;;  %5437 = vmatprep.subr.bf16.mxu0 %v5763_v58 }
 0x4f0   :  { %v6421_v59 = vpop.eup %5612  ;;  %v1946_v60 = vmul.f32 1.442695, %v1941_v56 }
 0x4f1   :  { %v6423_v61 = vpop.eup %5614  ;;  %v2163_v18 = vpop.xlane.xlu1 %2162  ;;  %v1492_v38 = vsel %vm1473_vm13, %v6421_v59, 0.0 }
 0x4f2   :  { %5624 = vpow2.f32 %v1946_v60  ;;  %v2170_v2 = vsub.f32 %v6397_v55, %v2163_v18  ;;  %v1637_v4 = vsel %vm1473_vm13, %v6423_v61, 0.0  ;;  %1493 = vadd.xlane.f32.xlu1 %v1492_v38  ;;  %5439 = vmatpush3.bf16.msra.mxu0 %v5438_v6 }
 0x4f3   :  { %1638 = vadd.xlane.f32.xlu0 %v1637_v4  ;;  %5440 = vmatprep.subr.bf16.mxu0 %v5763_v58 }
 0x4f4   :  { %v6430_v48 = vpop.eup %5616  ;;  %v2173_v5 = vmul.f32 1.442695, %v2170_v2 }
 0x4f5   :  { %v6432_v9 = vpop.eup %5618  ;;  %v2166_v49 = vpop.xlane.xlu0 %2165  ;;  %v1498_v11 = vsel %vm1473_vm13, %v6430_v48, 0.0 }
 0x4f6   :  { %5626 = vpow2.f32 %v2173_v5  ;;  %v2171_v12 = vsub.f32 %v6401_v62, %v2166_v49  ;;  %v1495_v55 = vsel %vm1473_vm13, %v6432_v9, 0.0  ;;  %1499 = vadd.xlane.f32.xlu1 %v1498_v11 }
 0x4f7   :  { %1496 = vadd.xlane.f32.xlu0 %v1495_v55 }
 0x4f8   :  { %v6439_v15 = vpop.eup %5620  ;;  %v2175_v16 = vmul.f32 1.442695, %v2171_v12 }
 0x4f9   :  { %v6441_v57 = vpop.eup %5622  ;;  %v2169_v17 = vpop.xlane.xlu1 %2168  ;;  %v1948_v19 = vsel %vm1473_vm13, %v6439_v15, 0.0 }
 0x4fa   :  { %5628 = vpow2.f32 %v2175_v16  ;;  %v2172_v20 = vsub.f32 %v6405_v10, %v2169_v17  ;;  %v1951_v62 = vsel %vm1473_vm13, %v6441_v57, 0.0 }
 0x4fb   :  { %1949 = vadd.xlane.f32.xlu0 %v1948_v19  ;;  %1952 = vadd.xlane.f32.xlu1 %v1951_v62 }
 0x4fc   :  { %v6448_v25 = vpop.eup %5624  ;;  %v2177_v7 = vmul.f32 1.442695, %v2172_v20 }
 0x4fd   :  { %v1954_v28 = vsel %vm1473_vm13, %v6448_v25, 0.0 }
 0x4fe   :  { %5630 = vpow2.f32 %v2177_v7 }
 0x4ff   :  { %1955 = vadd.xlane.f32.xlu0 %v1954_v28 }
 0x500   :  { %v6452_v29 = vpop.eup %5626 }
 0x501   :  { %v2179_v31 = vsel %vm1473_vm13, %v6452_v29, 0.0 }
 0x502   :  { %2180 = vadd.xlane.f32.xlu1 %v2179_v31 }
 0x504   :  { %v6456_v10 = vpop.eup %5628 }
 0x505   :  { %v2182_v32 = vsel %vm1473_vm13, %v6456_v10, 0.0 }
 0x506   :  { %2183 = vadd.xlane.f32.xlu0 %v2182_v32  ;;  %v4604_v32 = vld [vmem:[%s7183_s17] ss:$0 sm:$0xff] }
 0x508   :  { %v6460_v39 = vpop.eup %5630 }
 0x509   :  { %v2185_v40 = vsel %vm1473_vm13, %v6460_v39, 0.0 }
 0x50a   :  { %2186 = vadd.xlane.f32.xlu1 %v2185_v40 }
 0x577   :  { %v1633_v13 = vpop.xlane.xlu0 %1632 }
 0x578   :  { %5632 = vrcp.f32 %v1633_v13 }
 0x57b   :  { %v1636_v21 = vpop.xlane.xlu1 %1635 }
 0x57c   :  { %5634 = vrcp.f32 %v1636_v21 }
 0x57f   :  { %v1494_v52 = vpop.xlane.xlu1 %1493 }
 0x580   :  { %v1639_v22 = vpop.xlane.xlu0 %1638 }
 0x581   :  { %5636 = vrcp.f32 %v1639_v22 }
 0x582   :  { %v5633_v54 = vpop.eup %5632  ;;  %5638 = vrcp.f32 %v1494_v52 }
 0x583   :  { %v1643_v56 = vmul.f32 %v5633_v54, %v6412_v53  ;;  %v1500_v2 = vpop.xlane.xlu1 %1499  ;;  %v1368_v53 = vmul.f32 %v6235_v43, %v6303_v30 }
 0x584   :  { %v1497_v60 = vpop.xlane.xlu0 %1496 }
 0x585   :  { %5005 = vmatmul.mubr.msk.f32.vlgmr.msra.gmra.mrb[36].mxu1 %vm1473_vm13, %v1643_v56  ;;  %5640 = vrcp.f32 %v1497_v60 }
 0x586   :  { %v5635_v18 = vpop.eup %5634  ;;  %5419 = vmatpush3.bf16.msra.mxu1 %v5418_v33  ;;  %5007 = vmatprep.mubr.msk.f32.mxu1 %vm5764_vm1, %v5765_v3  ;;  %5642 = vrcp.f32 %v1500_v2 }
 0x587   :  { %5017 = vmatprep.subr.mxu1 %v5765_v3  ;;  %v1644_v38 = vmul.f32 %v5635_v18, %v6417_v51 }
 0x588   :  { %v1950_v24 = vpop.xlane.xlu0 %1949  ;;  %v1953_v5 = vpop.xlane.xlu1 %1952 }
 0x589   :  { %5008 = vmatmul.mubr.msk.f32.gmra.mrb[38].mxu1 %vm1473_vm13, %v1644_v38  ;;  %5644 = vrcp.f32 %v1950_v24 }
 0x58a   :  { %5018 = vmatpush3.msra.mxu1 %v1368_v53  ;;  %5010 = vmatprep.mubr.msk.f32.mxu1 %vm5764_vm1, %v5765_v3  ;;  %5646 = vrcp.f32 %v1953_v5 }
 0x58b   :  { %v5637_v0 = vpop.eup %5636  ;;  %5424 = vmatprep.subr.bf16.mxu1 %v5763_v58 }
 0x58c   :  { %v1645_v33 = vmul.f32 %v5637_v0, %v6423_v61  ;;  %v5639_v4 = vpop.eup %5638  ;;  %v1956_v61 = vpop.xlane.xlu0 %1955 }
 0x58d   :  { %v1504_v51 = vmul.f32 %v5639_v4, %v6421_v59  ;;  %v1834_v59 = vmul.f32 %v6241_v45, %v6303_v30  ;;  %5648 = vrcp.f32 %v1956_v61 }
 0x58e   :  { %5011 = vmatmul.mubr.msk.f32.gmra.mrb[40].mxu1 %vm1473_vm13, %v1645_v33 }
 0x58f   :  { %5019 = vmatprep.mubr.msk.f32.mxu1 %vm5764_vm1, %v5765_v3  ;;  %v5641_v49 = vpop.eup %5640  ;;  %v2181_v23 = vpop.xlane.xlu1 %2180 }
 0x590   :  { %v1505_v11 = vmul.f32 %v5641_v49, %v6432_v9  ;;  %v5643_v12 = vpop.eup %5642  ;;  %5650 = vrcp.f32 %v2181_v23  ;;  %v2450_v23 = vld [vmem:[%s7186_s20 + $0x10] sm:$0xff] }
 0x591   :  { %v1506_v26 = vmul.f32 %v5643_v12, %v6430_v48  ;;  %v2449_v12 = vld [vmem:[%s7186_s20 + $0x8] sm:$0xff] }
 0x592   :  { %5020 = vmatmul.mubr.msk.f32.vlgmr.msra.gmra.mrb[36].mxu1 %vm1473_vm13, %v1504_v51 }
 0x593   :  { %5426 = vmatpush3.bf16.msra.mxu1 %v5425_v34  ;;  %5022 = vmatprep.mubr.msk.f32.mxu1 %vm5764_vm1, %v5765_v3  ;;  %v5645_v34 = vpop.eup %5644  ;;  %v2184_v55 = vpop.xlane.xlu0 %2183 }
 0x594   :  { %5047 = vmatprep.subr.mxu1 %v5765_v3  ;;  %v1960_v9 = vmul.f32 %v5645_v34, %v6439_v15  ;;  %v5647_v16 = vpop.eup %5646  ;;  %5652 = vrcp.f32 %v2184_v55  ;;  %v2065_v15 = vmul.f32 %v6244_v46, %v6303_v30 }
 0x595   :  { %v1961_v17 = vmul.f32 %v5647_v16, %v6441_v57 }
 0x596   :  { %5023 = vmatmul.mubr.msk.f32.gmra.mrb[38].mxu1 %vm1473_vm13, %v1505_v11  ;;  %v2448_v11 = vld [vmem:[%s7186_s20] sm:$0xff] }
 0x597   :  { %5048 = vmatpush3.msra.mxu1 %v1834_v59  ;;  %5025 = vmatprep.mubr.msk.f32.mxu1 %vm5764_vm1, %v5765_v3  ;;  %v2187_v48 = vpop.xlane.xlu1 %2186  ;;  %v5649_v19 = vpop.eup %5648  ;;  %v5441_v59 = vpack.c.bf16 %v2449_v12, %v2448_v11 }
 0x598   :  { %5431 = vmatprep.subr.bf16.mxu1 %v5763_v58  ;;  %5654 = vrcp.f32 %v2187_v48  ;;  %v1962_v27 = vmul.f32 %v5649_v19, %v6448_v25 }
 0x59a   :  { %5026 = vmatmul.mubr.msk.f32.gmra.mrb[40].mxu1 %vm1473_vm13, %v1506_v26  ;;  %v5651_v14 = vpop.eup %5650  ;;  %v2451_v26 = vld [vmem:[%s7186_s20 + $0x18] sm:$0xff] }
 0x59b   :  { %5049 = vmatprep.mubr.msk.f32.mxu1 %vm5764_vm1, %v5765_v3  ;;  %v5444_v34 = vpack.c.bf16 %v2451_v26, %v2450_v23 }
 0x59e   :  { %5050 = vmatmul.mubr.msk.f32.vlgmr.msra.gmra.mrb[36].mxu1 %vm1473_vm13, %v1960_v9  ;;  %v5653_v30 = vpop.eup %5652 }
 0x59f   :  { %5433 = vmatpush3.bf16.msra.mxu1 %v5432_v37  ;;  %5052 = vmatprep.mubr.msk.f32.mxu1 %vm5764_vm1, %v5765_v3  ;;  %v2191_v37 = vmul.f32 %v5651_v14, %v6452_v29  ;;  %v2192_v57 = vmul.f32 %v5653_v30, %v6456_v10  ;;  %v4608_v30 = vld [vmem:[%s7184_s18] ss:$0 sm:$0xff] }
 0x5a0   :  { %5077 = vmatprep.subr.mxu1 %v5765_v3 }
 0x5a2   :  { %5053 = vmatmul.mubr.msk.f32.gmra.mrb[38].mxu1 %vm1473_vm13, %v1961_v17  ;;  %v5655_v20 = vpop.eup %5654 }
 0x5a3   :  { %5078 = vmatpush3.msra.mxu1 %v2065_v15  ;;  %5055 = vmatprep.mubr.msk.f32.mxu1 %vm5764_vm1, %v5765_v3  ;;  %v2193_v62 = vmul.f32 %v5655_v20, %v6460_v39  ;;  %v4609_v20 = vld [vmem:[%s7185_s19] ss:$0 sm:$0xff] }
 0x5a4   :  { %5446 = vmatprep.subr.bf16.mxu1 %v5763_v58 }
 0x5a6   :  { %5056 = vmatmul.mubr.msk.f32.gmra.mrb[40].mxu1 %vm1473_vm13, %v1962_v27 }
 0x5a7   :  { %5079 = vmatprep.mubr.msk.f32.mxu1 %vm5764_vm1, %v5765_v3 }
 0x5aa   :  { %5080 = vmatmul.mubr.msk.f32.vlgmr.msra.gmra.mrb[36].mxu1 %vm1473_vm13, %v2191_v37 }
 0x5ab   :  { %5082 = vmatprep.mubr.msk.f32.mxu1 %vm5764_vm1, %v5765_v3 }
 0x5ae   :  { %5083 = vmatmul.mubr.msk.f32.gmra.mrb[38].mxu1 %vm1473_vm13, %v2192_v57 }
 0x5af   :  { %5085 = vmatprep.mubr.msk.f32.mxu1 %vm5764_vm1, %v5765_v3 }
 0x5b2   :  { %5086 = vmatmul.mubr.msk.f32.gmra.mrb[40].mxu1 %vm1473_vm13, %v2193_v62 }
 0x5b3   :  { %5138 = vmatprep.mubr.msk.f32.mxu1 %vm5764_vm1, %v5765_v3 }
 0x67d   :  { %v2269_v25 = vpop.f32.mrb[36].mxu1 }
 0x67e   :  { %v5081_v7 = vpop.f32.mrb[37].mxu1  ;;  %5097 = vmatmul.mubr.msk.f32.vlgmr.msra.gmra.mrb[54].mxu0 %vm95_vm0, %v2269_v25 }
 0x67f   :  { %5099 = vmatprep.mubr.msk.f32.mxu0 %vm5764_vm1, %v5765_v3  ;;  %5442 = vmatpush3.bf16.msra.mxu0 %v5441_v59 }
 0x680   :  { %5443 = vmatprep.subr.bf16.mxu0 %v5763_v58 }
 0x681   :  { %v2274_v28 = vpop.f32.mrb[38].mxu1 }
 0x682   :  { %v5084_v29 = vpop.f32.mrb[39].mxu1  ;;  %5100 = vmatmul.mubr.msk.f32.gmra.mrb[56].mxu0 %vm95_vm0, %v2274_v28 }
 0x683   :  { %5102 = vmatprep.mubr.msk.f32.mxu0 %vm5764_vm1, %v5765_v3  ;;  %5445 = vmatpush3.bf16.msra.mxu0 %v5444_v34 }
 0x684   :  { %5458 = vmatprep.subr.bf16.mxu0 %v5763_v58 }
 0x685   :  { %v2279_v31 = vpop.f32.mrb[40].mxu1 }
 0x686   :  { %v5087_v10 = vpop.f32.mrb[41].mxu1  ;;  %5103 = vmatmul.mubr.msk.f32.gmra.mrb[58].mxu0 %vm95_vm0, %v2279_v31 }
 0x687   :  { %5113 = vmatprep.mubr.msk.f32.mxu0 %vm5764_vm1, %v5765_v3 }
 0x751   :  { %v2372_v39 = vpop.f32.mrb[54].mxu0 }
 0x752   :  { %v2373_v40 = vadd.f32 %v4604_v32, %v2372_v39  ;;  %v5098_v41 = vpop.f32.mrb[55].mxu0 }
 0x753   :  { %v2575_v41 = vld [vmem:[%s7188_s22] sm:$0xff] }
 0x754   :  { %v6560_v42 = vadd.f32 %v2373_v40, %v6131_v8 }
 0x755   :  { %v2377_v1 = vpop.f32.mrb[56].mxu0 }
 0x756   :  { %v2378_v47 = vadd.f32 %v4604_v32, %v2377_v1  ;;  %v5101_v50 = vpop.f32.mrb[57].mxu0  ;;  %v2391_v6 = vsel %vm95_vm0, %v6560_v42, 0.0  ;;  %v2576_v1 = vld [vmem:[%s7188_s22 + $0x8] sm:$0xff] }
 0x757   :  { %2392 = vadd.xlane.f32.xlu0 %v2391_v6  ;;  %v2577_v50 = vld [vmem:[%s7188_s22 + $0x10] sm:$0xff]  ;;  %v2578_v6 = vld [vmem:[%s7188_s22 + $0x18] sm:$0xff] }
 0x758   :  { %v6565_v13 = vadd.f32 %v2378_v47, %v6138_v36  ;;  %v5447_v47 = vpack.c.bf16 %v2576_v1, %v2575_v41 }
 0x759   :  { %v2382_v21 = vpop.f32.mrb[58].mxu0 }
 0x75a   :  { %v2383_v22 = vadd.f32 %v4604_v32, %v2382_v21  ;;  %v5104_v52 = vpop.f32.mrb[59].mxu0  ;;  %v2394_v54 = vsel %vm95_vm0, %v6565_v13, 0.0  ;;  %5448 = vmatpush3.bf16.msra.mxu1 %v5447_v47  ;;  %v5450_v21 = vpack.c.bf16 %v2578_v6, %v2577_v50 }
 0x75b   :  { %2395 = vadd.xlane.f32.xlu1 %v2394_v54  ;;  %5449 = vmatprep.subr.bf16.mxu1 %v5763_v58  ;;  %v2580_v52 = vld [vmem:[%s7188_s22 + $0x28] sm:$0xff] }
 0x75c   :  { %v6570_v8 = vadd.f32 %v2383_v22, %v6136_v35  ;;  %v2579_v22 = vld [vmem:[%s7188_s22 + $0x20] sm:$0xff] }
 0x75d   :  { %v5453_v54 = vpack.c.bf16 %v2580_v52, %v2579_v22 }
 0x75e   :  { %v2397_v56 = vsel %vm95_vm0, %v6570_v8, 0.0  ;;  %5451 = vmatpush3.bf16.msra.mxu1 %v5450_v21 }
 0x75f   :  { %2398 = vadd.xlane.f32.xlu0 %v2397_v56  ;;  %5452 = vmatprep.subr.bf16.mxu1 %v5763_v58  ;;  %v2581_v56 = vld [vmem:[%s7188_s22 + $0x30] sm:$0xff] }
 0x762   :  { %5454 = vmatpush3.bf16.msra.mxu1 %v5453_v54 }
 0x763   :  { %5455 = vmatprep.subr.bf16.mxu1 %v5763_v58 }
 0x7e4   :  { %v2393_v60 = vpop.xlane.xlu0 %2392 }
 0x7e5   :  { %v2400_v18 = vmul.f32 0.03125, %v2393_v60  ;;  %v2582_v60 = vld [vmem:[%s7188_s22 + $0x38] sm:$0xff] }
 0x7e7   :  { %v2403_v38 = vsub.f32 %v6560_v42, %v2400_v18  ;;  %v5456_v18 = vpack.c.bf16 %v2582_v60, %v2581_v56 }
 0x7e8   :  { %v2396_v36 = vpop.xlane.xlu1 %2395 }
 0x7e9   :  { %v2401_v2 = vmul.f32 0.03125, %v2396_v36  ;;  %v2406_v53 = vmul.f32 %v2403_v38, %v2403_v38  ;;  %5457 = vmatpush3.bf16.msra.mxu1 %v5456_v18 }
 0x7ea   :  { %5464 = vmatprep.subr.bf16.mxu1 %v5763_v58 }
 0x7eb   :  { %v2404_v0 = vsub.f32 %v6565_v13, %v2401_v2  ;;  %v2409_v24 = vsel %vm95_vm0, %v2406_v53, 0.0 }
 0x7ec   :  { %2410 = vadd.xlane.f32.xlu1 %v2409_v24  ;;  %v2399_v33 = vpop.xlane.xlu0 %2398 }
 0x7ed   :  { %v2402_v4 = vmul.f32 0.03125, %v2399_v33  ;;  %v2407_v35 = vmul.f32 %v2404_v0, %v2404_v0 }
 0x7ef   :  { %v2405_v51 = vsub.f32 %v6570_v8, %v2402_v4  ;;  %v2412_v5 = vsel %vm95_vm0, %v2407_v35, 0.0 }
 0x7f0   :  { %2413 = vadd.xlane.f32.xlu0 %v2412_v5 }
 0x7f1   :  { %v2408_v49 = vmul.f32 %v2405_v51, %v2405_v51 }
 0x7f3   :  { %v2415_v61 = vsel %vm95_vm0, %v2408_v49, 0.0 }
 0x7f4   :  { %2416 = vadd.xlane.f32.xlu1 %v2415_v61 }
 0x879   :  { %v2411_v9 = vpop.xlane.xlu1 %2410 }
 0x87a   :  { %v2418_v55 = vmul.f32 0.03125, %v2411_v9 }
 0x87c   :  { %v2421_v16 = vadd.f32 1e-12, %v2418_v55 }
 0x87d   :  { %v2414_v48 = vpop.xlane.xlu0 %2413 }
 0x87e   :  { %5656 = vrsqrt.f32 %v2421_v16  ;;  %v2419_v17 = vmul.f32 0.03125, %v2414_v48 }
 0x880   :  { %v2422_v19 = vadd.f32 1e-12, %v2419_v17 }
 0x881   :  { %v2417_v15 = vpop.xlane.xlu1 %2416 }
 0x882   :  { %5658 = vrsqrt.f32 %v2422_v19  ;;  %v2420_v27 = vmul.f32 0.03125, %v2417_v15 }
 0x884   :  { %v2423_v14 = vadd.f32 1e-12, %v2420_v27 }
 0x886   :  { %5660 = vrsqrt.f32 %v2423_v14 }
 0x888   :  { %v5657_v37 = vpop.eup %5656 }
 0x889   :  { %v2427_v57 = vmul.f32 %v5657_v37, %v2403_v38  ;;  %v4610_v38 = vld [vmem:[%s7187_s21] ss:$0 sm:$0xff] }
 0x88b   :  { %v2436_v62 = vmul.f32 %v4608_v30, %v2427_v57 }
 0x88c   :  { %v5659_v25 = vpop.eup %5658 }
 0x88d   :  { %v2445_v7 = vadd.f32 %v4609_v20, %v2436_v62  ;;  %v2428_v28 = vmul.f32 %v5659_v25, %v2404_v0 }
 0x88f   :  { %5114 = vmatmul.mubr.msk.f32.vlgmr.msra.gmra.mrb[60].mxu0 %vm95_vm0, %v2445_v7  ;;  %v2437_v29 = vmul.f32 %v4608_v30, %v2428_v28 }
 0x890   :  { %v5661_v31 = vpop.eup %5660  ;;  %5116 = vmatprep.mubr.msk.f32.mxu0 %vm5764_vm1, %v5765_v3 }
 0x891   :  { %v2446_v10 = vadd.f32 %v4609_v20, %v2437_v29  ;;  %v2429_v32 = vmul.f32 %v5661_v31, %v2405_v51  ;;  %v4614_v31 = vld [vmem:[%s7189_s23] ss:$0 sm:$0xff] }
 0x893   :  { %5117 = vmatmul.mubr.msk.f32.gmra.mrb[62].mxu0 %vm95_vm0, %v2446_v10  ;;  %v2438_v39 = vmul.f32 %v4608_v30, %v2429_v32 }
 0x894   :  { %5119 = vmatprep.mubr.msk.f32.mxu0 %vm5764_vm1, %v5765_v3 }
 0x895   :  { %v2447_v40 = vadd.f32 %v4609_v20, %v2438_v39 }
 0x897   :  { %5120 = vmatmul.mubr.msk.f32.gmra.mrb[64].mxu0 %vm95_vm0, %v2447_v40 }
 0x898   :  { %5155 = vmatprep.mubr.msk.f32.mxu0 %vm5764_vm1, %v5765_v3 }
 0x962   :  { %v2534_v36 = vpop.f32.mrb[60].mxu0 }
 0x963   :  { %v2535_v2 = vadd.f32 %v4610_v38, %v2534_v36  ;;  %v5115_v53 = vpop.f32.mrb[61].mxu0 }
 0x965   :  { %v2548_v0 = vmul.f32 %v2535_v2, %v2535_v2 }
 0x966   :  { %v2539_v24 = vpop.f32.mrb[62].mxu0 }
 0x967   :  { %v2551_v33 = vmul.f32 %v2548_v0, %v2535_v2  ;;  %v2540_v4 = vadd.f32 %v4610_v38, %v2539_v24  ;;  %v5118_v35 = vpop.f32.mrb[63].mxu0 }
 0x969   :  { %v2554_v51 = vmul.f32 0.044715, %v2551_v33  ;;  %v2549_v5 = vmul.f32 %v2540_v4, %v2540_v4 }
 0x96a   :  { %v2544_v49 = vpop.f32.mrb[64].mxu0 }
 0x96b   :  { %v2557_v61 = vadd.f32 %v2554_v51, %v2535_v2  ;;  %v2552_v11 = vmul.f32 %v2549_v5, %v2540_v4  ;;  %v2545_v12 = vadd.f32 %v4610_v38, %v2544_v49  ;;  %v5121_v59 = vpop.f32.mrb[65].mxu0  ;;  %v4631_v49 = vld [vmem:[%s7225_s7 + $0x20] sm:$0xff] }
 0x96c   :  { %v4623_v59 = vld [vmem:[%s7224_s0 + $0x28] sm:$0xff] }
 0x96d   :  { %v2560_v23 = vmul.f32 0.7978846, %v2557_v61  ;;  %v2555_v26 = vmul.f32 0.044715, %v2552_v11  ;;  %v2550_v34 = vmul.f32 %v2545_v12, %v2545_v12  ;;  %v4632_v61 = vld [vmem:[%s7225_s7 + $0x28] sm:$0xff]  ;;  %v4622_v11 = vld [vmem:[%s7224_s0 + $0x20] sm:$0xff] }
 0x96f   :  { %5662 = vtanh.f32 %v2560_v23  ;;  %v2558_v9 = vadd.f32 %v2555_v26, %v2540_v4  ;;  %v2553_v55 = vmul.f32 %v2550_v34, %v2545_v12  ;;  %v5459_v23 = vpack.c.bf16 %v4623_v59, %v4622_v11  ;;  %v4624_v26 = vld [vmem:[%s7224_s0 + $0x30] sm:$0xff]  ;;  %v4625_v34 = vld [vmem:[%s7224_s0 + $0x38] sm:$0xff] }
 0x971   :  { %v2561_v16 = vmul.f32 0.7978846, %v2558_v9  ;;  %v2556_v48 = vmul.f32 0.044715, %v2553_v55  ;;  %5460 = vmatpush3.bf16.msra.mxu0 %v5459_v23  ;;  %v4633_v9 = vld [vmem:[%s7225_s7 + $0x30] sm:$0xff]  ;;  %v5462_v55 = vpack.c.bf16 %v4625_v34, %v4624_v26 }
 0x972   :  { %5461 = vmatprep.subr.bf16.mxu0 %v5763_v58 }
 0x973   :  { %5664 = vtanh.f32 %v2561_v16  ;;  %v2559_v17 = vadd.f32 %v2556_v48, %v2545_v12  ;;  %v4634_v16 = vld [vmem:[%s7225_s7 + $0x38] sm:$0xff] }
 0x974   :  { %v5468_v48 = vpack.c.bf16 %v4634_v16, %v4633_v9 }
 0x975   :  { %v2562_v19 = vmul.f32 0.7978846, %v2559_v17  ;;  %5463 = vmatpush3.bf16.msra.mxu0 %v5462_v55 }
 0x976   :  { %5470 = vmatprep.subr.bf16.mxu0 %v5763_v58 }
 0x977   :  { %5666 = vtanh.f32 %v2562_v19 }
 0x979   :  { %v5663_v15 = vpop.eup %5662 }
 0x97a   :  { %v2566_v27 = vadd.f32 1.0, %v5663_v15 }
 0x97c   :  { %v2569_v14 = vmul.f32 0.5, %v2566_v27 }
 0x97d   :  { %v5665_v37 = vpop.eup %5664 }
 0x97e   :  { %v2572_v30 = vmul.f32 %v2569_v14, %v2535_v2  ;;  %v2567_v57 = vadd.f32 1.0, %v5665_v37 }
 0x980   :  { %5139 = vmatmul.mubr.msk.f32.vlgmr.msra.gmra.mrb[42].mxu1 %vm2590_vm14, %v2572_v30  ;;  %v2570_v20 = vmul.f32 0.5, %v2567_v57 }
 0x981   :  { %v5667_v62 = vpop.eup %5666  ;;  %5141 = vmatprep.mubr.msk.f32.mxu1 %vm5764_vm1, %v5765_v3 }
 0x982   :  { %v2573_v25 = vmul.f32 %v2570_v20, %v2540_v4  ;;  %v2568_v7 = vadd.f32 1.0, %v5667_v62 }
 0x984   :  { %5142 = vmatmul.mubr.msk.f32.gmra.mrb[44].mxu1 %vm2590_vm14, %v2573_v25  ;;  %v2571_v28 = vmul.f32 0.5, %v2568_v7  ;;  %v4620_v25 = vld [vmem:[%s7226_s29 + $0x1] ss:$0 sm:$0xff] }
 0x985   :  { %5144 = vmatprep.mubr.msk.f32.mxu1 %vm5764_vm1, %v5765_v3 }
 0x986   :  { %v2574_v29 = vmul.f32 %v2571_v28, %v2545_v12  ;;  %v5465_v12 = vpack.c.bf16 %v4632_v61, %v4631_v49  ;;  %v4621_v28 = vld [vmem:[%s7227_s4 + $0x1] ss:$0 sm:$0xff] }
 0x988   :  { %5145 = vmatmul.mubr.msk.f32.gmra.mrb[46].mxu1 %vm2590_vm14, %v2574_v29  ;;  %v4640_v29 = vld [vmem:[%s7180_s14 + $0x20] sm:$0xff] }
 0x989   :  { %5172 = vmatprep.mubr.msk.f32.mxu1 %vm5764_vm1, %v5765_v3  ;;  %5466 = vmatpush3.bf16.msra.mxu1 %v5465_v12 }
 0x98a   :  { %5467 = vmatprep.subr.bf16.mxu1 %v5763_v58 }
 0x98d   :  { %5469 = vmatpush3.bf16.msra.mxu1 %v5468_v48 }
 0x98e   :  { %5476 = vmatprep.subr.bf16.mxu1 %v5763_v58 }
 0xa53   :  { %v2666_v10 = vpop.f32.mrb[42].mxu1 }
 0xa54   :  { %v2667_v32 = vadd.f32 %v4614_v31, %v2666_v10  ;;  %v5140_v39 = vpop.f32.mrb[43].mxu1 }
 0xa56   :  { %v6653_v40 = vadd.f32 %v2667_v32, %v6560_v42 }
 0xa57   :  { %v2671_v41 = vpop.f32.mrb[44].mxu1 }
 0xa58   :  { %v2672_v1 = vadd.f32 %v4614_v31, %v2671_v41  ;;  %v5143_v47 = vpop.f32.mrb[45].mxu1  ;;  %v2687_v50 = vsel %vm95_vm0, %v6653_v40, 0.0 }
 0xa59   :  { %2688 = vadd.xlane.f32.xlu0 %v2687_v50  ;;  %v4642_v47 = vld [vmem:[%s7180_s14 + $0x30] sm:$0xff]  ;;  %v4643_v50 = vld [vmem:[%s7180_s14 + $0x38] sm:$0xff] }
 0xa5a   :  { %v6658_v6 = vadd.f32 %v2672_v1, %v6565_v13 }
 0xa5b   :  { %v2676_v21 = vpop.f32.mrb[46].mxu1 }
 0xa5c   :  { %v2677_v22 = vadd.f32 %v4614_v31, %v2676_v21  ;;  %v5146_v52 = vpop.f32.mrb[47].mxu1  ;;  %v2690_v54 = vsel %vm95_vm0, %v6658_v6, 0.0  ;;  %v4641_v31 = vld [vmem:[%s7180_s14 + $0x28] sm:$0xff]  ;;  %s5766_s14 = smov [#allocation2]  }
 0xa5d   :  { %2691 = vadd.xlane.f32.xlu1 %v2690_v54  ;;  %v5471_v1 = vpack.c.bf16 %v4641_v31, %v4640_v29  ;;  %s4467_s4 = sshll.u32 %s5766_s14, 4  ;;  %s4468_s4 = int_to_ptr.vmem [resolvable:$true] %s4467_s4 }
 0xa5e   :  { %v6663_v42 = vadd.f32 %v2677_v22, %v6570_v8  ;;  %p5744_p1 = scmp.lt.s32.totalorder %s4468_s4, %s4468_s4 }
 0xa60   :  { %v2693_v56 = vsel %vm95_vm0, %v6663_v42, 0.0 }
 0xa61   :  { %2694 = vadd.xlane.f32.xlu0 %v2693_v56  ;;  %v5474_v56 = vpack.c.bf16 %v4643_v50, %v4642_v47 }
 0xae6   :  { %v2689_v60 = vpop.xlane.xlu0 %2688 }
 0xae7   :  { %v2696_v18 = vmul.f32 0.03125, %v2689_v60 }
 0xae9   :  { %v2699_v38 = vsub.f32 %v6653_v40, %v2696_v18 }
 0xaea   :  { %v2692_v13 = vpop.xlane.xlu1 %2691 }
 0xaeb   :  { %v2697_v36 = vmul.f32 0.03125, %v2692_v13  ;;  %v2702_v2 = vmul.f32 %v2699_v38, %v2699_v38 }
 0xaed   :  { %v2700_v53 = vsub.f32 %v6658_v6, %v2697_v36  ;;  %v2705_v0 = vsel %vm95_vm0, %v2702_v2, 0.0 }
 0xaee   :  { %2706 = vadd.xlane.f32.xlu1 %v2705_v0  ;;  %v2695_v24 = vpop.xlane.xlu0 %2694 }
 0xaef   :  { %v2698_v33 = vmul.f32 0.03125, %v2695_v24  ;;  %v2703_v8 = vmul.f32 %v2700_v53, %v2700_v53 }
 0xaf1   :  { %v2701_v4 = vsub.f32 %v6663_v42, %v2698_v33  ;;  %v2708_v35 = vsel %vm95_vm0, %v2703_v8, 0.0 }
 0xaf2   :  { %2709 = vadd.xlane.f32.xlu0 %v2708_v35 }
 0xaf3   :  { %v2704_v51 = vmul.f32 %v2701_v4, %v2701_v4 }
 0xaf5   :  { %v2711_v5 = vsel %vm95_vm0, %v2704_v51, 0.0 }
 0xaf6   :  { %2712 = vadd.xlane.f32.xlu1 %v2711_v5 }
 0xb7b   :  { %v2707_v17 = vpop.xlane.xlu1 %2706 }
 0xb7c   :  { %v2714_v19 = vmul.f32 0.03125, %v2707_v17 }
 0xb7e   :  { %v2717_v15 = vadd.f32 1e-12, %v2714_v19 }
 0xb7f   :  { %v2710_v27 = vpop.xlane.xlu0 %2709 }
 0xb80   :  { %5668 = vrsqrt.f32 %v2717_v15  ;;  %v2715_v14 = vmul.f32 0.03125, %v2710_v27  ;;  %v4645_v15 = vld [vmem:[%s7181_s15 + $0x1] ss:$0 sm:$0xff] }
 0xb82   :  { %v2718_v37 = vadd.f32 1e-12, %v2715_v14 }
 0xb83   :  { %v2713_v30 = vpop.xlane.xlu1 %2712 }
 0xb84   :  { %5670 = vrsqrt.f32 %v2718_v37  ;;  %v2716_v57 = vmul.f32 0.03125, %v2713_v30 }
 0xb86   :  { %v2719_v20 = vadd.f32 1e-12, %v2716_v57 }
 0xb88   :  { %5672 = vrsqrt.f32 %v2719_v20  ;;  %v4627_v20 = vld [vmem:[%s7230_s3 + $0x1] ss:$0 sm:$0xff] }
 0xb8a   :  { %v5669_v62 = vpop.eup %5668 }
 0xb8b   :  { %v2723_v7 = vmul.f32 %v5669_v62, %v2699_v38  ;;  %v4636_v38 = vld [vmem:[%s7179_s13 + $0x1] ss:$0 sm:$0xff] }
 0xb8d   :  { %v2732_v10 = vmul.f32 %v4620_v25, %v2723_v7 }
 0xb8e   :  { %v5671_v32 = vpop.eup %5670 }
 0xb8f   :  { %v2741_v39 = vadd.f32 %v4621_v28, %v2732_v10  ;;  %v2724_v41 = vmul.f32 %v5671_v32, %v2700_v53 }
 0xb91   :  { %5156 = vmatmul.mubr.msk.f32.vlgmr.msra.gmra.mrb[66].mxu0 %vm95_vm0, %v2741_v39  ;;  %5173 = vmatmul.mubr.msk.f32.vlgmr.msra.gmra.mrb[48].mxu1 %vm95_vm0, %v2741_v39  ;;  %v2733_v21 = vmul.f32 %v4620_v25, %v2724_v41 }
 0xb92   :  { %v5673_v22 = vpop.eup %5672  ;;  %5158 = vmatprep.mubr.msk.f32.mxu0 %vm5764_vm1, %v5765_v3  ;;  %5175 = vmatprep.mubr.msk.f32.mxu1 %vm5764_vm1, %v5765_v3 }
 0xb93   :  { %v2742_v52 = vadd.f32 %v4621_v28, %v2733_v21  ;;  %5472 = vmatpush3.bf16.msra.mxu0 %v5471_v1  ;;  %v2725_v54 = vmul.f32 %v5673_v22, %v2701_v4 }
 0xb94   :  { %5473 = vmatprep.subr.bf16.mxu0 %v5763_v58 }
 0xb95   :  { %5159 = vmatmul.mubr.msk.f32.gmra.mrb[68].mxu0 %vm95_vm0, %v2742_v52  ;;  %5176 = vmatmul.mubr.msk.f32.gmra.mrb[50].mxu1 %vm95_vm0, %v2742_v52  ;;  %v2734_v60 = vmul.f32 %v4620_v25, %v2725_v54 }
 0xb96   :  { %5161 = vmatprep.mubr.msk.f32.mxu0 %vm5764_vm1, %v5765_v3  ;;  %5178 = vmatprep.mubr.msk.f32.mxu1 %vm5764_vm1, %v5765_v3 }
 0xb97   :  { %v2743_v18 = vadd.f32 %v4621_v28, %v2734_v60  ;;  %5475 = vmatpush3.bf16.msra.mxu0 %v5474_v56 }
 0xb98   :  { %5480 = vmatprep.subr.bf16.mxu0 %v5763_v58 }
 0xb99   :  { %5162 = vmatmul.mubr.msk.f32.gmra.mrb[70].mxu0 %vm95_vm0, %v2743_v18  ;;  %5179 = vmatmul.mubr.msk.f32.gmra.mrb[52].mxu1 %vm95_vm0, %v2743_v18 }
 0xb9a   :  { %5189 = vmatprep.mubr.msk.f32.mxu0 %vm5764_vm1, %v5765_v3  ;;  %5204 = vmatprep.mubr.msk.f32.mxu1 %vm5764_vm1, %v5765_v3 }
 0xb9d   :  { %5190 = vmatmul.mubr.msk.f32.vlgmr.msra.gmra.mrb[72].mxu0 %vm95_vm0, %v2741_v39 }
 0xb9e   :  { %5192 = vmatprep.mubr.msk.f32.mxu0 %vm5764_vm1, %v5765_v3 }
 0xba1   :  { %5193 = vmatmul.mubr.msk.f32.gmra.mrb[74].mxu0 %vm95_vm0, %v2742_v52 }
 0xba2   :  { %5195 = vmatprep.mubr.msk.f32.mxu0 %vm5764_vm1, %v5765_v3 }
 0xba5   :  { %5196 = vmatmul.mubr.msk.f32.gmra.mrb[76].mxu0 %vm95_vm0, %v2743_v18 }
 0xba6   :  { %5219 = vmatprep.mubr.msk.f32.mxu0 %vm5764_vm1, %v5765_v3 }
 0xc64   :  { %v2832_v13 = vpop.f32.mrb[66].mxu0  ;;  %v2925_v36 = vpop.f32.mrb[48].mxu1 }
 0xc65   :  { %v5157_v2 = vpop.f32.mrb[67].mxu0  ;;  %v5174_v53 = vpop.f32.mrb[49].mxu1  ;;  %v2926_v0 = vadd.f32 %v4636_v38, %v2925_v36  ;;  %v2833_v47 = vadd.f32 %v4627_v20, %v2832_v13 }
 0xc67   :  { %v3032_v51 = vmul.f32 %v6235_v43, %v2926_v0  ;;  %v3175_v5 = vmul.f32 %v6238_v44, %v2926_v0  ;;  %v3487_v49 = vmul.f32 %v6241_v45, %v2926_v0  ;;  %v6755_v61 = vmul.f32 %v6244_v46, %v2926_v0 }
 0xc68   :  { %v2837_v24 = vpop.f32.mrb[68].mxu0  ;;  %v2930_v33 = vpop.f32.mrb[50].mxu1 }
 0xc69   :  { %v2931_v8 = vadd.f32 %v4636_v38, %v2930_v33  ;;  %v5160_v4 = vpop.f32.mrb[69].mxu0  ;;  %v5177_v35 = vpop.f32.mrb[51].mxu1 }
 0xc6a   :  { %v5736_v4 = vld [vmem:[%s7231_s6] sm:$0xff] }
 0xc6b   :  { %v3033_v11 = vmul.f32 %v6235_v43, %v2931_v8  ;;  %v3176_v12 = vmul.f32 %v6238_v44, %v2931_v8  ;;  %v3488_v59 = vmul.f32 %v6241_v45, %v2931_v8  ;;  %v6761_v23 = vmul.f32 %v6244_v46, %v2931_v8 }
 0xc6c   :  { %v2842_v26 = vpop.f32.mrb[70].mxu0  ;;  %v2935_v34 = vpop.f32.mrb[52].mxu1 }
 0xc6d   :  { %v5477_v9 = vpack.c.bf16 %v3033_v11, %v3032_v51  ;;  %v5481_v55 = vpack.c.bf16 %v3176_v12, %v3175_v5  ;;  %v5491_v16 = vpack.c.bf16 %v3488_v59, %v3487_v49  ;;  %v5498_v48 = vpack.c.bf16 %v6761_v23, %v6755_v61  ;;  %v5163_v17 = vpop.f32.mrb[71].mxu0  ;;  %v5180_v19 = vpop.f32.mrb[53].mxu1  ;;  %v5737_v23 = vld [vmem:[%s7231_s6 + $0x8] sm:$0xff] }
 0xc6e   :  { %v2936_v14 = vadd.f32 %v4636_v38, %v2935_v34  ;;  %v2838_v38 = vadd.f32 %v4627_v20, %v2837_v24  ;;  %v2843_v36 = vadd.f32 %v4627_v20, %v2842_v26 }
 0xc6f   :  { %5479 = vmatpush3.bf16.xpose.msk.msra.mxu1 %vm6260_vm12, %v5477_v9  ;;  %5483 = vmatpush3.bf16.xpose.msk.msra.mxu0 %vm6260_vm12, %v5481_v55 }
 0xc70   :  { %v3018_v27 = vpop.f32.mrb[72].mxu0  ;;  %5202 = vmatprep.subr.mxu1 %v5765_v3  ;;  %5217 = vmatprep.subr.mxu0 %v5765_v3  ;;  %v3034_v62 = vmul.f32 %v6235_v43, %v2936_v14  ;;  %v3177_v28 = vmul.f32 %v6238_v44, %v2936_v14  ;;  %v3489_v2 = vmul.f32 %v6241_v45, %v2936_v14 }
 0xc71   :  { %v5191_v37 = vpop.f32.mrb[73].mxu0  ;;  %v3019_v30 = vadd.f32 %v4645_v15, %v3018_v27  ;;  %v6880_v27 = vld [vmem:[%s7231_s6 + $0x10] sm:$0xff] }
 0xc73   :  { %v6780_v29 = vmul.f32 %v6235_v43, %v3019_v30  ;;  %v3178_v31 = vmul.f32 %v6238_v44, %v3019_v30  ;;  %v6784_v10 = vmul.f32 %v6241_v45, %v3019_v30  ;;  %v6798_v50 = vmul.f32 %v6244_v46, %v3019_v30 }
 0xc74   :  { %v3023_v57 = vpop.f32.mrb[74].mxu0 }
 0xc75   :  { %v3024_v25 = vadd.f32 %v4645_v15, %v3023_v57  ;;  %v5194_v7 = vpop.f32.mrb[75].mxu0 }
 0xc77   :  { %v6787_v32 = vmul.f32 %v6235_v43, %v3024_v25  ;;  %v3179_v39 = vmul.f32 %v6238_v44, %v3024_v25  ;;  %v6791_v41 = vmul.f32 %v6241_v45, %v3024_v25  ;;  %v6794_v1 = vmul.f32 %v6244_v46, %v3024_v25  ;;  %5203 = vmatpush3.xpose.msk.msra.mxu1 %vm95_vm0, %v3034_v62 }
 0xc78   :  { %5218 = vmatpush3.xpose.msk.msra.mxu0 %vm95_vm0, %v3177_v28  ;;  %v3028_v21 = vpop.f32.mrb[76].mxu0  ;;  %5484 = vmatprep.subr.bf16.mxu1 %v5763_v58 }
 0xc79   :  { %v6802_v22 = vadd.f32 %v4645_v15, %v3028_v21  ;;  %v5197_v52 = vpop.f32.mrb[77].mxu0  ;;  %5490 = vmatprep.subr.bf16.mxu0 %v5763_v58  ;;  %v5485_v54 = vpack.c.bf16 %v3179_v39, %v3178_v31  ;;  %v5488_v56 = vpack.c.bf16 %v6787_v32, %v6780_v29  ;;  %v5495_v60 = vpack.c.bf16 %v6791_v41, %v6784_v10 }
 0xc7a   :  { %5205 = vmatmul.mubr.msk.f32.vlgmr.msra.gmra.mrb[54].mxu1 %vm95_vm0, %v2833_v47  ;;  %v5502_v18 = vpack.c.bf16 %v6794_v1, %v6798_v50 }
 0xc7b   :  { %5220 = vmatmul.mubr.msk.f32.vlgmr.msra.gmra.mrb[78].mxu0 %vm95_vm0, %v2833_v47  ;;  %5486 = vmatpush3.bf16.msra.mxu1 %v5485_v54  ;;  %v3180_v13 = vmul.f32 %v6238_v44, %v6802_v22  ;;  %v3715_v44 = vmul.f32 %v6244_v46, %v2936_v14 }
 0xc7c   :  { %5493 = vmatpush3.bf16.xpose.msk.msra.mxu0 %vm6260_vm12, %v5491_v16  ;;  %5207 = vmatprep.mubr.msk.f32.mxu1 %vm5764_vm1, %v5765_v3 }
 0xc7d   :  { %5222 = vmatprep.mubr.msk.f32.mxu0 %vm5764_vm1, %v5765_v3  ;;  %5232 = vmatprep.subr.mxu1 %v5765_v3 }
 0xc7e   :  { %5208 = vmatmul.mubr.msk.f32.gmra.mrb[56].mxu1 %vm95_vm0, %v2838_v38  ;;  %5262 = vmatprep.subr.mxu0 %v5765_v3 }
 0xc7f   :  { %5223 = vmatmul.mubr.msk.f32.gmra.mrb[80].mxu0 %vm95_vm0, %v2838_v38  ;;  %5233 = vmatpush3.msra.mxu1 %v3180_v13 }
 0xc80   :  { %5210 = vmatprep.mubr.msk.f32.mxu1 %vm5764_vm1, %v5765_v3  ;;  %5225 = vmatprep.mubr.msk.f32.mxu0 %vm5764_vm1, %v5765_v3 }
 0xc81   :  { %5487 = vmatprep.subr.bf16.mxu1 %v5763_v58 }
 0xc82   :  { %5211 = vmatmul.mubr.msk.f32.gmra.mrb[58].mxu1 %vm95_vm0, %v2843_v36 }
 0xc83   :  { %5226 = vmatmul.mubr.msk.f32.gmra.mrb[82].mxu0 %vm95_vm0, %v2843_v36  ;;  %5234 = vmatprep.mubr.msk.f32.mxu1 %vm5764_vm1, %v5765_v3 }
 0xc84   :  { %5263 = vmatpush3.xpose.msk.msra.mxu0 %vm95_vm0, %v3489_v2  ;;  %5264 = vmatprep.mubr.msk.f32.mxu0 %vm5764_vm1, %v5765_v3 }
 0xc85   :  { %5497 = vmatprep.subr.bf16.mxu0 %v5763_v58 }
 0xc87   :  { %5265 = vmatmul.mubr.msk.f32.vlgmr.msra.gmra.mrb[84].mxu0 %vm95_vm0, %v2833_v47 }
 0xc88   :  { %5500 = vmatpush3.bf16.xpose.msk.msra.mxu0 %vm6260_vm12, %v5498_v48  ;;  %5267 = vmatprep.mubr.msk.f32.mxu0 %vm5764_vm1, %v5765_v3 }
 0xc89   :  { %5292 = vmatprep.subr.mxu0 %v5765_v3 }
 0xc8b   :  { %5268 = vmatmul.mubr.msk.f32.gmra.mrb[86].mxu0 %vm95_vm0, %v2838_v38 }
 0xc8c   :  { %5270 = vmatprep.mubr.msk.f32.mxu0 %vm5764_vm1, %v5765_v3 }
 0xc8f   :  { %5271 = vmatmul.mubr.msk.f32.gmra.mrb[88].mxu0 %vm95_vm0, %v2843_v36 }
 0xc90   :  { %5293 = vmatpush3.xpose.msk.msra.mxu0 %vm95_vm0, %v3715_v44  ;;  %5294 = vmatprep.mubr.msk.f32.mxu0 %vm5764_vm1, %v5765_v3 }
 0xc91   :  { %5504 = vmatprep.subr.bf16.mxu0 %v5763_v58 }
 0xc93   :  { %5295 = vmatmul.mubr.msk.f32.vlgmr.msra.gmra.mrb[90].mxu0 %vm95_vm0, %v2833_v47 }
 0xc94   :  { %5297 = vmatprep.mubr.msk.f32.mxu0 %vm5764_vm1, %v5765_v3 }
 0xc97   :  { %5298 = vmatmul.mubr.msk.f32.gmra.mrb[92].mxu0 %vm95_vm0, %v2838_v38 }
 0xc98   :  { %5300 = vmatprep.mubr.msk.f32.mxu0 %vm5764_vm1, %v5765_v3 }
 0xc9b   :  { %5301 = vmatmul.mubr.msk.f32.gmra.mrb[94].mxu0 %vm95_vm0, %v2843_v36 }
 0xc9c   :  { %5326 = vmatprep.mubr.msk.f32.mxu0 %vm5764_vm1, %v5765_v3 }
 0xd4d   :  { %v3122_v63 = vpop.f32.mrb[54].mxu1 }
 0xd4e   :  { %v3256_v53 = vpop.f32.mrb[78].mxu0  ;;  %v5206_v0 = vpop.f32.mrb[55].mxu1  ;;  %v3136_v51 = vmul.f32 0.35355338, %v3122_v63 }
 0xd4f   :  { %v3270_v24 = vmul.f32 0.35355338, %v3256_v53  ;;  %v5221_v33 = vpop.f32.mrb[79].mxu0 }
 0xd50   :  { %v3139_v16 = vadd.f32 %v5736_v4, %v3136_v51 }
 0xd51   :  { %v3127_v8 = vpop.f32.mrb[56].mxu1  ;;  %v6869_v35 = vadd.f32 %v5736_v4, %v3270_v24 }
 0xd52   :  { %v3261_v5 = vpop.f32.mrb[80].mxu0  ;;  %v5209_v49 = vpop.f32.mrb[57].mxu1  ;;  %v3137_v34 = vmul.f32 0.35355338, %v3127_v8  ;;  %v3142_v30 = vsel %vm1473_vm13, %v3139_v16, -inf }
 0xd53   :  { %v3271_v61 = vmul.f32 0.35355338, %v3261_v5  ;;  %v5224_v11 = vpop.f32.mrb[81].mxu0  ;;  %v3276_v12 = vsel %vm1473_vm13, %v6869_v35, -inf }
 0xd54   :  { %3277 = vmax.xlane.f32.xlu0 %v3276_v12  ;;  %v3140_v7 = vadd.f32 %v5737_v23, %v3137_v34 }
 0xd55   :  { %v3132_v59 = vpop.f32.mrb[58].mxu1  ;;  %v3274_v26 = vadd.f32 %v5737_v23, %v3271_v61 }
 0xd56   :  { %v3266_v9 = vpop.f32.mrb[82].mxu0  ;;  %v5212_v55 = vpop.f32.mrb[59].mxu1  ;;  %v3138_v48 = vmul.f32 0.35355338, %v3132_v59  ;;  %v3145_v21 = vsel %vm1473_vm13, %v3140_v7, -inf }
 0xd57   :  { %v3272_v17 = vmul.f32 0.35355338, %v3266_v9  ;;  %v5227_v19 = vpop.f32.mrb[83].mxu0  ;;  %v3279_v15 = vsel %vm1473_vm13, %v3274_v26, -inf }
 0xd58   :  { %3280 = vmax.xlane.f32.xlu1 %v3279_v15  ;;  %v3141_v25 = vadd.f32 %v6880_v27, %v3138_v48 }
 0xd59   :  { %v3275_v14 = vadd.f32 %v6880_v27, %v3272_v17 }
 0xd5a   :  { %v3568_v37 = vpop.f32.mrb[84].mxu0  ;;  %v3148_v47 = vsel %vm1473_vm13, %v3141_v25, -inf }
 0xd5b   :  { %v3582_v57 = vmul.f32 0.35355338, %v3568_v37  ;;  %v5266_v20 = vpop.f32.mrb[85].mxu0  ;;  %v3282_v62 = vsel %vm1473_vm13, %v3275_v14, -inf }
 0xd5c   :  { %3143 = vmax.xlane.f32.xlu1 %v3142_v30  ;;  %3283 = vmax.xlane.f32.xlu0 %v3282_v62 }
 0xd5d   :  { %v3585_v52 = vadd.f32 %v5736_v4, %v3582_v57 }
 0xd5e   :  { %v3573_v28 = vpop.f32.mrb[86].mxu0 }
 0xd5f   :  { %v3583_v31 = vmul.f32 0.35355338, %v3573_v28  ;;  %v5269_v39 = vpop.f32.mrb[87].mxu0  ;;  %v3588_v2 = vsel %vm1473_vm13, %v3585_v52, -inf }
 0xd60   :  { %3149 = vmax.xlane.f32.xlu1 %v3148_v47  ;;  %3146 = vmax.xlane.f32.xlu0 %v3145_v21 }
 0xd61   :  { %v3586_v54 = vadd.f32 %v5737_v23, %v3583_v31 }
 0xd62   :  { %v3578_v38 = vpop.f32.mrb[88].mxu0 }
 0xd63   :  { %v3584_v13 = vmul.f32 0.35355338, %v3578_v38  ;;  %v5272_v36 = vpop.f32.mrb[89].mxu0  ;;  %v3591_v44 = vsel %vm1473_vm13, %v3586_v54, -inf }
 0xd64   :  { %3589 = vmax.xlane.f32.xlu0 %v3588_v2  ;;  %3592 = vmax.xlane.f32.xlu1 %v3591_v44 }
 0xd65   :  { %v3587_v63 = vadd.f32 %v6880_v27, %v3584_v13 }
 0xd66   :  { %v3794_v53 = vpop.f32.mrb[90].mxu0 }
 0xd67   :  { %v3808_v0 = vmul.f32 0.35355338, %v3794_v53  ;;  %v5296_v24 = vpop.f32.mrb[91].mxu0  ;;  %v3594_v33 = vsel %vm1473_vm13, %v3587_v63, -inf }
 0xd68   :  { %3595 = vmax.xlane.f32.xlu0 %v3594_v33 }
 0xd69   :  { %v3811_v8 = vadd.f32 %v5736_v4, %v3808_v0 }
 0xd6a   :  { %v3799_v51 = vpop.f32.mrb[92].mxu0 }
 0xd6b   :  { %v3809_v5 = vmul.f32 0.35355338, %v3799_v51  ;;  %v5299_v49 = vpop.f32.mrb[93].mxu0  ;;  %v3814_v61 = vsel %vm1473_vm13, %v3811_v8, -inf }
 0xd6c   :  { %3815 = vmax.xlane.f32.xlu1 %v3814_v61 }
 0xd6d   :  { %v6893_v11 = vadd.f32 %v5737_v23, %v3809_v5 }
 0xd6e   :  { %v6895_v12 = vpop.f32.mrb[94].mxu0 }
 0xd6f   :  { %v5302_v59 = vpop.f32.mrb[95].mxu0  ;;  %v3817_v34 = vsel %vm1473_vm13, %v6893_v11, -inf }
 0xd70   :  { %3818 = vmax.xlane.f32.xlu0 %v3817_v34 }
 0xde1   :  { %v3278_v9 = vpop.xlane.xlu0 %3277 }
 0xde2   :  { %v3285_v55 = vsub.f32 %v6869_v35, %v3278_v9 }
 0xde4   :  { %v3288_v48 = vmul.f32 1.442695, %v3285_v55 }
 0xde5   :  { %v3281_v4 = vpop.xlane.xlu1 %3280 }
 0xde6   :  { %5674 = vpow2.f32 %v3288_v48  ;;  %v3286_v17 = vsub.f32 %v3274_v26, %v3281_v4 }
 0xde8   :  { %v3290_v19 = vmul.f32 1.442695, %v3286_v17 }
 0xde9   :  { %v3144_v15 = vpop.xlane.xlu1 %3143  ;;  %v3284_v37 = vpop.xlane.xlu0 %3283 }
 0xdea   :  { %5676 = vpow2.f32 %v3290_v19  ;;  %v3151_v23 = vsub.f32 %v3139_v16, %v3144_v15  ;;  %v3287_v30 = vsub.f32 %v3275_v14, %v3284_v37  ;;  %v3810_v15 = vmul.f32 0.35355338, %v6895_v12 }
 0xdec   :  { %v3154_v57 = vmul.f32 1.442695, %v3151_v23  ;;  %v3292_v20 = vmul.f32 1.442695, %v3287_v30 }
 0xded   :  { %v3150_v62 = vpop.xlane.xlu1 %3149  ;;  %v3147_v28 = vpop.xlane.xlu0 %3146 }
 0xdee   :  { %5678 = vpow2.f32 %v3154_v57  ;;  %v3153_v31 = vsub.f32 %v3141_v25, %v3150_v62  ;;  %v3152_v39 = vsub.f32 %v3140_v7, %v3147_v28  ;;  %v3813_v57 = vadd.f32 %v6880_v27, %v3810_v15 }
 0xdef   :  { %5680 = vpow2.f32 %v3292_v20 }
 0xdf0   :  { %v6900_v47 = vpop.eup %5674  ;;  %v3158_v35 = vmul.f32 1.442695, %v3153_v31  ;;  %v3156_v21 = vmul.f32 1.442695, %v3152_v39  ;;  %v3820_v28 = vsel %vm1473_vm13, %v3813_v57, -inf }
 0xdf1   :  { %v3590_v38 = vpop.xlane.xlu0 %3589  ;;  %v3593_v26 = vpop.xlane.xlu1 %3592  ;;  %v3294_v13 = vsel %vm1473_vm13, %v6900_v47, 0.0 }
 0xdf2   :  { %5682 = vpow2.f32 %v3158_v35  ;;  %v3597_v16 = vsub.f32 %v3585_v52, %v3590_v38  ;;  %v3598_v14 = vsub.f32 %v3586_v54, %v3593_v26  ;;  %3295 = vadd.xlane.f32.xlu1 %v3294_v13 }
 0xdf3   :  { %5684 = vpow2.f32 %v3156_v21 }
 0xdf4   :  { %v6904_v36 = vpop.eup %5676  ;;  %v3600_v2 = vmul.f32 1.442695, %v3597_v16  ;;  %v3602_v25 = vmul.f32 1.442695, %v3598_v14 }
 0xdf5   :  { %v3596_v7 = vpop.xlane.xlu0 %3595  ;;  %v3297_v44 = vsel %vm1473_vm13, %v6904_v36, 0.0 }
 0xdf6   :  { %5686 = vpow2.f32 %v3600_v2  ;;  %v3599_v53 = vsub.f32 %v3587_v63, %v3596_v7  ;;  %3298 = vadd.xlane.f32.xlu0 %v3297_v44 }
 0xdf7   :  { %5688 = vpow2.f32 %v3602_v25 }
 0xdf8   :  { %v6908_v0 = vpop.eup %5678  ;;  %v3604_v24 = vmul.f32 1.442695, %v3599_v53 }
 0xdf9   :  { %v6910_v33 = vpop.eup %5680  ;;  %v3816_v52 = vpop.xlane.xlu1 %3815  ;;  %v3160_v54 = vsel %vm1473_vm13, %v6908_v0, 0.0 }
 0xdfa   :  { %5690 = vpow2.f32 %v3604_v24  ;;  %v3823_v51 = vsub.f32 %v3811_v8, %v3816_v52  ;;  %v3300_v5 = vsel %vm1473_vm13, %v6910_v33, 0.0  ;;  %3161 = vadd.xlane.f32.xlu0 %v3160_v54 }
 0xdfb   :  { %3301 = vadd.xlane.f32.xlu1 %v3300_v5 }
 0xdfc   :  { %v6916_v49 = vpop.eup %5682  ;;  %v3826_v63 = vmul.f32 1.442695, %v3823_v51 }
 0xdfd   :  { %v6918_v61 = vpop.eup %5684  ;;  %v3819_v59 = vpop.xlane.xlu0 %3818  ;;  %v3166_v34 = vsel %vm1473_vm13, %v6916_v49, 0.0 }
 0xdfe   :  { %5692 = vpow2.f32 %v3826_v63  ;;  %v3824_v9 = vsub.f32 %v6893_v11, %v3819_v59  ;;  %v3163_v8 = vsel %vm1473_vm13, %v6918_v61, 0.0  ;;  %3167 = vadd.xlane.f32.xlu0 %v3166_v34  ;;  %v4685_v59 = vld [vmem:[%s7182_s16 + $0x20] sm:$0xff]  ;;  %v4686_v34 = vld [vmem:[%s7182_s16 + $0x28] sm:$0xff] }
 0xdff   :  { %3164 = vadd.xlane.f32.xlu1 %v3163_v8  ;;  %v5505_v8 = vpack.c.bf16 %v4686_v34, %v4685_v59 }
 0xe00   :  { %v6925_v55 = vpop.eup %5686  ;;  %v3828_v48 = vmul.f32 1.442695, %v3824_v9  ;;  %v4687_v9 = vld [vmem:[%s7182_s16 + $0x30] sm:$0xff] }
 0xe01   :  { %v6927_v4 = vpop.eup %5688  ;;  %v3606_v17 = vsel %vm1473_vm13, %v6925_v55, 0.0  ;;  %5506 = vmatpush3.bf16.msra.mxu0 %v5505_v8 }
 0xe02   :  { %5694 = vpow2.f32 %v3828_v48  ;;  %v3609_v19 = vsel %vm1473_vm13, %v6927_v4, 0.0  ;;  %5507 = vmatprep.subr.bf16.mxu0 %v5763_v58 }
 0xe03   :  { %3607 = vadd.xlane.f32.xlu1 %v3606_v17  ;;  %3610 = vadd.xlane.f32.xlu0 %v3609_v19 }
 0xe04   :  { %v6933_v11 = vpop.eup %5690 }
 0xe05   :  { %v3612_v37 = vsel %vm1473_vm13, %v6933_v11, 0.0 }
 0xe07   :  { %3613 = vadd.xlane.f32.xlu1 %v3612_v37 }
 0xe08   :  { %v6938_v23 = vpop.eup %5692 }
 0xe09   :  { %v3832_v30 = vsel %vm1473_vm13, %v6938_v23, 0.0 }
 0xe0a   :  { %3833 = vadd.xlane.f32.xlu0 %v3832_v30 }
 0xe0c   :  { %v6943_v20 = vpop.eup %5694 }
 0xe0d   :  { %v3835_v62 = vsel %vm1473_vm13, %v6943_v20, 0.0 }
 0xe0e   :  { %3836 = vadd.xlane.f32.xlu1 %v3835_v62  ;;  %3821 = vmax.xlane.f32.xlu0 %v3820_v28 }
 0xe7f   :  { %v3296_v12 = vpop.xlane.xlu1 %3295 }
 0xe80   :  { %5696 = vrcp.f32 %v3296_v12 }
 0xe83   :  { %v3299_v31 = vpop.xlane.xlu0 %3298 }
 0xe84   :  { %5698 = vrcp.f32 %v3299_v31 }
 0xe87   :  { %v3162_v39 = vpop.xlane.xlu0 %3161 }
 0xe88   :  { %v3302_v35 = vpop.xlane.xlu1 %3301 }
 0xe89   :  { %5700 = vrcp.f32 %v3302_v35 }
 0xe8a   :  { %v5697_v21 = vpop.eup %5696  ;;  %5702 = vrcp.f32 %v3162_v39 }
 0xe8b   :  { %v3306_v27 = vmul.f32 %v5697_v21, %v6900_v47  ;;  %v3168_v26 = vpop.xlane.xlu0 %3167  ;;  %v3037_v47 = vmul.f32 %v6235_v43, %v6802_v22 }
 0xe8c   :  { %v3165_v38 = vpop.xlane.xlu1 %3164 }
 0xe8d   :  { %5235 = vmatmul.mubr.msk.f32.vlgmr.msra.gmra.mrb[60].mxu1 %vm1473_vm13, %v3306_v27  ;;  %5704 = vrcp.f32 %v3165_v38 }
 0xe8e   :  { %v5699_v13 = vpop.eup %5698  ;;  %5489 = vmatpush3.bf16.msra.mxu1 %v5488_v56  ;;  %5237 = vmatprep.mubr.msk.f32.mxu1 %vm5764_vm1, %v5765_v3  ;;  %5706 = vrcp.f32 %v3168_v26 }
 0xe8f   :  { %5247 = vmatprep.subr.mxu1 %v5765_v3  ;;  %v3307_v16 = vmul.f32 %v5699_v13, %v6904_v36 }
 0xe90   :  { %v3611_v29 = vpop.xlane.xlu0 %3610  ;;  %v3608_v32 = vpop.xlane.xlu1 %3607 }
 0xe91   :  { %5238 = vmatmul.mubr.msk.f32.gmra.mrb[62].mxu1 %vm1473_vm13, %v3307_v16  ;;  %5708 = vrcp.f32 %v3608_v32 }
 0xe92   :  { %5248 = vmatpush3.msra.mxu1 %v3037_v47  ;;  %5240 = vmatprep.mubr.msk.f32.mxu1 %vm5764_vm1, %v5765_v3  ;;  %5710 = vrcp.f32 %v3611_v29 }
 0xe93   :  { %v5701_v14 = vpop.eup %5700  ;;  %5494 = vmatprep.subr.bf16.mxu1 %v5763_v58 }
 0xe94   :  { %v3308_v56 = vmul.f32 %v5701_v14, %v6910_v33  ;;  %v5703_v2 = vpop.eup %5702  ;;  %v3614_v44 = vpop.xlane.xlu1 %3613 }
 0xe95   :  { %v3172_v43 = vmul.f32 %v5703_v2, %v6908_v0  ;;  %v3492_v0 = vmul.f32 %v6241_v45, %v6802_v22  ;;  %5712 = vrcp.f32 %v3614_v44 }
 0xe96   :  { %5241 = vmatmul.mubr.msk.f32.gmra.mrb[64].mxu1 %vm1473_vm13, %v3308_v56 }
 0xe97   :  { %v3834_v36 = vpop.xlane.xlu0 %3833  ;;  %5249 = vmatprep.mubr.msk.f32.mxu1 %vm5764_vm1, %v5765_v3  ;;  %v5705_v25 = vpop.eup %5704 }
 0xe98   :  { %v3173_v24 = vmul.f32 %v5705_v25, %v6918_v61  ;;  %v5707_v33 = vpop.eup %5706 }
 0xe99   :  { %v3174_v10 = vmul.f32 %v5707_v33, %v6916_v49  ;;  %v3718_v49 = vmul.f32 %v6244_v46, %v6802_v22 }
 0xe9a   :  { %5250 = vmatmul.mubr.msk.f32.vlgmr.msra.gmra.mrb[60].mxu1 %vm1473_vm13, %v3172_v43 }
 0xe9b   :  { %5496 = vmatpush3.bf16.msra.mxu1 %v5495_v60  ;;  %v3822_v7 = vpop.xlane.xlu0 %3821  ;;  %5252 = vmatprep.mubr.msk.f32.mxu1 %vm5764_vm1, %v5765_v3  ;;  %v5709_v41 = vpop.eup %5708 }
 0xe9c   :  { %v3825_v53 = vsub.f32 %v3813_v57, %v3822_v7  ;;  %5277 = vmatprep.subr.mxu1 %v5765_v3  ;;  %v3618_v45 = vmul.f32 %v5709_v41, %v6925_v55  ;;  %v3837_v60 = vpop.xlane.xlu1 %3836  ;;  %v5711_v54 = vpop.eup %5710  ;;  %v4688_v55 = vld [vmem:[%s7182_s16 + $0x38] sm:$0xff] }
 0xe9d   :  { %v3619_v51 = vmul.f32 %v5711_v54, %v6927_v4  ;;  %v5508_v48 = vpack.c.bf16 %v4688_v55, %v4687_v9 }
 0xe9e   :  { %v3830_v52 = vmul.f32 1.442695, %v3825_v53  ;;  %5253 = vmatmul.mubr.msk.f32.gmra.mrb[62].mxu1 %vm1473_vm13, %v3173_v24  ;;  %v4698_v53 = vld [vmem:[%s7186_s20 + $0x20] sm:$0xff]  ;;  %v4699_v24 = vld [vmem:[%s7186_s20 + $0x28] sm:$0xff] }
 0xe9f   :  { %5278 = vmatpush3.msra.mxu1 %v3492_v0  ;;  %5255 = vmatprep.mubr.msk.f32.mxu1 %vm5764_vm1, %v5765_v3  ;;  %v5713_v5 = vpop.eup %5712  ;;  %v5511_v33 = vpack.c.bf16 %v4699_v24, %v4698_v53  ;;  %v4701_v0 = vld [vmem:[%s7186_s20 + $0x38] sm:$0xff] }
 0xea0   :  { %5714 = vpow2.f32 %v3830_v52  ;;  %5501 = vmatprep.subr.bf16.mxu1 %v5763_v58  ;;  %v3620_v50 = vmul.f32 %v5713_v5, %v6933_v11  ;;  %5509 = vmatpush3.bf16.msra.mxu0 %v5508_v48 }
 0xea1   :  { %5716 = vrcp.f32 %v3834_v36  ;;  %5510 = vmatprep.subr.bf16.mxu0 %v5763_v58 }
 0xea2   :  { %5256 = vmatmul.mubr.msk.f32.gmra.mrb[64].mxu1 %vm1473_vm13, %v3174_v10  ;;  %5718 = vrcp.f32 %v3837_v60 }
 0xea3   :  { %5279 = vmatprep.mubr.msk.f32.mxu1 %vm5764_vm1, %v5765_v3 }
 0xea6   :  { %5280 = vmatmul.mubr.msk.f32.vlgmr.msra.gmra.mrb[60].mxu1 %vm1473_vm13, %v3618_v45 }
 0xea7   :  { %5503 = vmatpush3.bf16.msra.mxu1 %v5502_v18  ;;  %5282 = vmatprep.mubr.msk.f32.mxu1 %vm5764_vm1, %v5765_v3 }
 0xea8   :  { %5307 = vmatprep.subr.mxu1 %v5765_v3 }
 0xeaa   :  { %v5715_v63 = vpop.eup %5714  ;;  %5283 = vmatmul.mubr.msk.f32.gmra.mrb[62].mxu1 %vm1473_vm13, %v3619_v51 }
 0xeab   :  { %5308 = vmatpush3.msra.mxu1 %v3718_v49  ;;  %5285 = vmatprep.mubr.msk.f32.mxu1 %vm5764_vm1, %v5765_v3  ;;  %v3838_v1 = vsel %vm1473_vm13, %v5715_v63, 0.0  ;;  %v5717_v18 = vpop.eup %5716 }
 0xeac   :  { %3839 = vadd.xlane.f32.xlu1 %v3838_v1  ;;  %5516 = vmatprep.subr.bf16.mxu1 %v5763_v58  ;;  %v3844_v46 = vmul.f32 %v5717_v18, %v6938_v23  ;;  %v5719_v22 = vpop.eup %5718 }
 0xead   :  { %v3845_v61 = vmul.f32 %v5719_v22, %v6943_v20  ;;  %v4690_v20 = vld [vmem:[%s7183_s17 + $0x1] ss:$0 sm:$0xff] }
 0xeae   :  { %5286 = vmatmul.mubr.msk.f32.gmra.mrb[64].mxu1 %vm1473_vm13, %v3620_v50 }
 0xeaf   :  { %5309 = vmatprep.mubr.msk.f32.mxu1 %vm5764_vm1, %v5765_v3 }
 0xeb2   :  { %5310 = vmatmul.mubr.msk.f32.vlgmr.msra.gmra.mrb[60].mxu1 %vm1473_vm13, %v3844_v46  ;;  %v4696_v46 = vld [vmem:[%s7184_s18 + $0x1] ss:$0 sm:$0xff] }
 0xeb3   :  { %5312 = vmatprep.mubr.msk.f32.mxu1 %vm5764_vm1, %v5765_v3 }
 0xeb6   :  { %5313 = vmatmul.mubr.msk.f32.gmra.mrb[62].mxu1 %vm1473_vm13, %v3845_v61  ;;  %v4697_v61 = vld [vmem:[%s7185_s19 + $0x1] ss:$0 sm:$0xff] }
 0xeb7   :  { %5315 = vmatprep.mubr.msk.f32.mxu1 %vm5764_vm1, %v5765_v3 }
 0xf39   :  { %v3840_v4 = vpop.xlane.xlu1 %3839 }
 0xf3a   :  { %5720 = vrcp.f32 %v3840_v4  ;;  %v4707_v4 = vld [vmem:[%s7188_s22 + $0x40] sm:$0xff] }
 0xf44   :  { %v5721_v17 = vpop.eup %5720 }
 0xf45   :  { %v3846_v19 = vmul.f32 %v5721_v17, %v5715_v63  ;;  %v4708_v17 = vld [vmem:[%s7188_s22 + $0x48] sm:$0xff] }
 0xf47   :  { %5316 = vmatmul.mubr.msk.f32.gmra.mrb[64].mxu1 %vm1473_vm13, %v3846_v19  ;;  %v5517_v19 = vpack.c.bf16 %v4708_v17, %v4707_v4 }
 0xf48   :  { %5368 = vmatprep.mubr.msk.f32.mxu1 %vm5764_vm1, %v5765_v3 }
 0xf49   :  { %5518 = vmatpush3.bf16.msra.mxu1 %v5517_v19 }
 0xf4a   :  { %5519 = vmatprep.subr.bf16.mxu1 %v5763_v58 }
 0xf85   :  { %v3922_v11 = vpop.f32.mrb[60].mxu1 }
 0xf86   :  { %v5311_v15 = vpop.f32.mrb[61].mxu1  ;;  %5327 = vmatmul.mubr.msk.f32.vlgmr.msra.gmra.mrb[96].mxu0 %vm95_vm0, %v3922_v11  ;;  %v4709_v11 = vld [vmem:[%s7188_s22 + $0x50] sm:$0xff] }
 0xf87   :  { %5329 = vmatprep.mubr.msk.f32.mxu0 %vm5764_vm1, %v5765_v3  ;;  %5512 = vmatpush3.bf16.msra.mxu0 %v5511_v33  ;;  %v4710_v15 = vld [vmem:[%s7188_s22 + $0x58] sm:$0xff] }
 0xf88   :  { %5513 = vmatprep.subr.bf16.mxu0 %v5763_v58 }
 0xf89   :  { %v3927_v37 = vpop.f32.mrb[62].mxu1 }
 0xf8a   :  { %v5314_v23 = vpop.f32.mrb[63].mxu1  ;;  %5330 = vmatmul.mubr.msk.f32.gmra.mrb[98].mxu0 %vm95_vm0, %v3927_v37  ;;  %v5520_v37 = vpack.c.bf16 %v4710_v15, %v4709_v11 }
 0xf8b   :  { %5332 = vmatprep.mubr.msk.f32.mxu0 %vm5764_vm1, %v5765_v3  ;;  %v4711_v23 = vld [vmem:[%s7188_s22 + $0x60] sm:$0xff] }
 0xf8c   :  { %5521 = vmatpush3.bf16.msra.mxu1 %v5520_v37 }
 0xf8d   :  { %5522 = vmatprep.subr.bf16.mxu1 %v5763_v58 }
0x101a   :  { %v3932_v30 = vpop.f32.mrb[64].mxu1 }
0x101b   :  { %v5317_v57 = vpop.f32.mrb[65].mxu1  ;;  %5333 = vmatmul.mubr.msk.f32.gmra.mrb[100].mxu0 %vm95_vm0, %v3932_v30  ;;  %v4712_v30 = vld [vmem:[%s7188_s22 + $0x68] sm:$0xff] }
0x101c   :  { %5343 = vmatprep.mubr.msk.f32.mxu0 %vm5764_vm1, %v5765_v3  ;;  %v5523_v57 = vpack.c.bf16 %v4712_v30, %v4711_v23 }
0x101e   :  { %5524 = vmatpush3.bf16.msra.mxu1 %v5523_v57 }
0x101f   :  { %5525 = vmatprep.subr.bf16.mxu1 %v5763_v58 }
0x1059   :  { %v4027_v62 = vpop.f32.mrb[96].mxu0 }
0x105a   :  { %v4028_v28 = vadd.f32 %v4690_v20, %v4027_v62  ;;  %v5328_v12 = vpop.f32.mrb[97].mxu0  ;;  %v4714_v62 = vld [vmem:[%s7188_s22 + $0x78] sm:$0xff] }
0x105c   :  { %v7044_v31 = vadd.f32 %v4028_v28, %v6653_v40 }
0x105d   :  { %v4032_v39 = vpop.f32.mrb[98].mxu0 }
0x105e   :  { %v4033_v35 = vadd.f32 %v4690_v20, %v4032_v39  ;;  %v5331_v21 = vpop.f32.mrb[99].mxu0  ;;  %v4048_v27 = vsel %vm95_vm0, %v7044_v31, 0.0 }
0x105f   :  { %4049 = vadd.xlane.f32.xlu0 %v4048_v27 }
0x1060   :  { %v7049_v38 = vadd.f32 %v4033_v35, %v6658_v6 }
0x1062   :  { %v4051_v26 = vsel %vm95_vm0, %v7049_v38, 0.0 }
0x1063   :  { %4052 = vadd.xlane.f32.xlu1 %v4051_v26 }
0x10ec   :  { %v4050_v13 = vpop.xlane.xlu0 %4049 }
0x10ed   :  { %v4057_v16 = vmul.f32 0.03125, %v4050_v13 }
0x10ee   :  { %v4037_v47 = vpop.f32.mrb[100].mxu0 }
0x10ef   :  { %v4060_v40 = vsub.f32 %v7044_v31, %v4057_v16  ;;  %v4038_v14 = vadd.f32 %v4690_v20, %v4037_v47  ;;  %v5334_v29 = vpop.f32.mrb[101].mxu0  ;;  %v4713_v20 = vld [vmem:[%s7188_s22 + $0x70] sm:$0xff]  ;;  %v4703_v16 = vld [vmem:[%s7187_s21 + $0x1] ss:$0 sm:$0xff] }
0x10f0   :  { %v4053_v32 = vpop.xlane.xlu1 %4052  ;;  %v5526_v28 = vpack.c.bf16 %v4714_v62, %v4713_v20 }
0x10f1   :  { %v4058_v56 = vmul.f32 0.03125, %v4053_v32  ;;  %v4063_v2 = vmul.f32 %v4060_v40, %v4060_v40  ;;  %v4043_v6 = vadd.f32 %v4038_v14, %v6663_v42  ;;  %v4700_v42 = vld [vmem:[%s7186_s20 + $0x30] sm:$0xff] }
0x10f2   :  { %v5514_v52 = vpack.c.bf16 %v4701_v0, %v4700_v42  ;;  %5527 = vmatpush3.bf16.msra.mxu1 %v5526_v28 }
0x10f3   :  { %v4061_v36 = vsub.f32 %v7049_v38, %v4058_v56  ;;  %v4066_v43 = vsel %vm95_vm0, %v4063_v2, 0.0  ;;  %v4054_v44 = vsel %vm95_vm0, %v4043_v6, 0.0 }
0x10f4   :  { %4067 = vadd.xlane.f32.xlu0 %v4066_v43  ;;  %5515 = vmatpush3.bf16.msra.mxu0 %v5514_v52 }
0x10f5   :  { %v4064_v25 = vmul.f32 %v4061_v36, %v4061_v36  ;;  %5528 = vmatprep.subr.bf16.mxu0 %v5763_v58 }
0x10f7   :  { %v4069_v7 = vsel %vm95_vm0, %v4064_v25, 0.0 }
0x10f8   :  { %4070 = vadd.xlane.f32.xlu1 %v4069_v7  ;;  %4055 = vadd.xlane.f32.xlu0 %v4054_v44 }
0x1181   :  { %v4068_v10 = vpop.xlane.xlu0 %4067 }
0x1182   :  { %v4075_v41 = vmul.f32 0.03125, %v4068_v10 }
0x1184   :  { %v4078_v45 = vadd.f32 1e-12, %v4075_v41 }
0x1185   :  { %v4071_v60 = vpop.xlane.xlu1 %4070  ;;  %v4056_v54 = vpop.xlane.xlu0 %4055 }
0x1186   :  { %5722 = vrsqrt.f32 %v4078_v45  ;;  %v4076_v51 = vmul.f32 0.03125, %v4071_v60  ;;  %v4059_v5 = vmul.f32 0.03125, %v4056_v54 }
0x1188   :  { %v4079_v49 = vadd.f32 1e-12, %v4076_v51  ;;  %v4062_v63 = vsub.f32 %v4043_v6, %v4059_v5 }
0x118a   :  { %5724 = vrsqrt.f32 %v4079_v49  ;;  %v4065_v1 = vmul.f32 %v4062_v63, %v4062_v63 }
0x118c   :  { %v4072_v50 = vsel %vm95_vm0, %v4065_v1, 0.0 }
0x118d   :  { %4073 = vadd.xlane.f32.xlu1 %v4072_v50 }
0x1190   :  { %v5723_v18 = vpop.eup %5722 }
0x1191   :  { %v4084_v22 = vmul.f32 %v5723_v18, %v4060_v40 }
0x1193   :  { %v4093_v59 = vmul.f32 %v4696_v46, %v4084_v22 }
0x1194   :  { %v5725_v34 = vpop.eup %5724 }
0x1195   :  { %v4102_v9 = vadd.f32 %v4697_v61, %v4093_v59  ;;  %v4085_v8 = vmul.f32 %v5725_v34, %v4061_v36 }
0x1197   :  { %5344 = vmatmul.mubr.msk.f32.vlgmr.msra.gmra.mrb[102].mxu0 %vm95_vm0, %v4102_v9  ;;  %v4094_v55 = vmul.f32 %v4696_v46, %v4085_v8 }
0x1198   :  { %5346 = vmatprep.mubr.msk.f32.mxu0 %vm5764_vm1, %v5765_v3 }
0x1199   :  { %v4103_v48 = vadd.f32 %v4697_v61, %v4094_v55 }
0x119b   :  { %5347 = vmatmul.mubr.msk.f32.gmra.mrb[104].mxu0 %vm95_vm0, %v4103_v48 }
0x119c   :  { %5349 = vmatprep.mubr.msk.f32.mxu0 %vm5764_vm1, %v5765_v3 }
0x121a   :  { %v4074_v12 = vpop.xlane.xlu1 %4073 }
0x121b   :  { %v4077_v39 = vmul.f32 0.03125, %v4074_v12 }
0x121d   :  { %v4080_v35 = vadd.f32 1e-12, %v4077_v39 }
0x121f   :  { %5726 = vrsqrt.f32 %v4080_v35 }
0x1229   :  { %v5727_v21 = vpop.eup %5726 }
0x122a   :  { %v4086_v27 = vmul.f32 %v5727_v21, %v4062_v63  ;;  %v4378_v21 = vld [vmem:[%s7192_s26 + $0x10] sm:$0xff] }
0x122c   :  { %v4095_v26 = vmul.f32 %v4696_v46, %v4086_v27  ;;  %v4379_v27 = vld [vmem:[%s7192_s26 + $0x18] sm:$0xff] }
0x122e   :  { %v4104_v13 = vadd.f32 %v4697_v61, %v4095_v26  ;;  %v5532_v26 = vpack.c.bf16 %v4379_v27, %v4378_v21 }
0x1230   :  { %5350 = vmatmul.mubr.msk.f32.gmra.mrb[106].mxu0 %vm95_vm0, %v4104_v13 }
0x1231   :  { %5385 = vmatprep.mubr.msk.f32.mxu0 %vm5764_vm1, %v5765_v3 }
0x126a   :  { %v4193_v47 = vpop.f32.mrb[102].mxu0 }
0x126b   :  { %v4194_v40 = vadd.f32 %v4703_v16, %v4193_v47  ;;  %v5345_v14 = vpop.f32.mrb[103].mxu0 }
0x126c   :  { %v4720_v14 = vld [vmem:[%s7190_s24] ss:$0 sm:$0xff]  ;;  %s5739_s24 = scalar_lea.vmem %s4468_s4, 32 }
0x126d   :  { %v4207_v29 = vmul.f32 %v4194_v40, %v4194_v40  ;;  %p5740_p0 = scmp.ne.s32.totalorder %s4468_s4, %s5739_s24  ;;  %p5745_p2 = scmp.lt.s32.totalorder %s5739_s24, %s5739_s24 }
0x126e   :  { %v4198_v32 = vpop.f32.mrb[104].mxu0 }
0x126f   :  { %v4210_v56 = vmul.f32 %v4207_v29, %v4194_v40  ;;  %v4199_v2 = vadd.f32 %v4703_v16, %v4198_v32  ;;  %v5348_v36 = vpop.f32.mrb[105].mxu0  ;;  %v4721_v29 = vld [vmem:[%s7191_s25] ss:$0 sm:$0xff]  ;;  %p5746_p3 = por %p5745_p2, %p5744_p1 }
0x1271   :  { %v4213_v43 = vmul.f32 0.044715, %v4210_v56  ;;  %v4208_v6 = vmul.f32 %v4199_v2, %v4199_v2  ;;  %p5747_p4 = pnand %p5746_p3, %p5740_p0 }
0x1273   :  { %v4216_v25 = vadd.f32 %v4213_v43, %v4194_v40  ;;  %v4211_v7 = vmul.f32 %v4208_v6, %v4199_v2 }
0x1275   :  { %v4219_v44 = vmul.f32 0.7978846, %v4216_v25  ;;  %v4214_v53 = vmul.f32 0.044715, %v4211_v7 }
0x1277   :  { %5728 = vtanh.f32 %v4219_v44  ;;  %v4217_v24 = vadd.f32 %v4214_v53, %v4199_v2 }
0x1279   :  { %v4220_v33 = vmul.f32 0.7978846, %v4217_v24 }
0x127b   :  { %5730 = vtanh.f32 %v4220_v33 }
0x1281   :  { %v5729_v42 = vpop.eup %5728 }
0x1282   :  { %v4225_v0 = vadd.f32 1.0, %v5729_v42 }
0x1284   :  { %v4228_v52 = vmul.f32 0.5, %v4225_v0 }
0x1285   :  { %v5731_v10 = vpop.eup %5730 }
0x1286   :  { %v4231_v41 = vmul.f32 %v4228_v52, %v4194_v40  ;;  %v4226_v45 = vadd.f32 1.0, %v5731_v10 }
0x1288   :  { %5369 = vmatmul.mubr.msk.f32.vlgmr.msra.gmra.mrb[66].mxu1 %vm2590_vm14, %v4231_v41  ;;  %v4229_v60 = vmul.f32 0.5, %v4226_v45 }
0x1289   :  { %5371 = vmatprep.mubr.msk.f32.mxu1 %vm5764_vm1, %v5765_v3 }
0x128a   :  { %v4232_v54 = vmul.f32 %v4229_v60, %v4199_v2  ;;  %v4722_v2 = vld [vmem:[%s7193_s27] ss:$0 sm:$0xff] }
0x128c   :  { %5372 = vmatmul.mubr.msk.f32.gmra.mrb[68].mxu1 %vm2590_vm14, %v4232_v54 }
0x128d   :  { %5374 = vmatprep.mubr.msk.f32.mxu1 %vm5764_vm1, %v5765_v3  ;;  %v4716_v3 = vld [vmem:[%s7189_s23 + $0x1] ss:$0 sm:$0xff]  ;;  %vm4348_vm1 = vcmask 254976  }
0x1303   :  { %v4203_v51 = vpop.f32.mrb[106].mxu0 }
0x1304   :  { %v4204_v5 = vadd.f32 %v4703_v16, %v4203_v51  ;;  %v5351_v49 = vpop.f32.mrb[107].mxu0 }
0x1306   :  { %v4209_v63 = vmul.f32 %v4204_v5, %v4204_v5 }
0x1308   :  { %v4212_v1 = vmul.f32 %v4209_v63, %v4204_v5 }
0x130a   :  { %v4215_v50 = vmul.f32 0.044715, %v4212_v1 }
0x130c   :  { %v4218_v18 = vadd.f32 %v4215_v50, %v4204_v5 }
0x130e   :  { %v4221_v46 = vmul.f32 0.7978846, %v4218_v18 }
0x1310   :  { %5732 = vtanh.f32 %v4221_v46 }
0x131a   :  { %v5733_v22 = vpop.eup %5732 }
0x131b   :  { %v4227_v61 = vadd.f32 1.0, %v5733_v22 }
0x131d   :  { %v4230_v59 = vmul.f32 0.5, %v4227_v61 }
0x131f   :  { %v4233_v34 = vmul.f32 %v4230_v59, %v4204_v5 }
0x1321   :  { %5375 = vmatmul.mubr.msk.f32.gmra.mrb[70].mxu1 %vm2590_vm14, %v4233_v34 }
0x135b   :  { %v4326_v9 = vpop.f32.mrb[66].mxu1 }
0x135c   :  { %v5370_v8 = vpop.f32.mrb[67].mxu1  ;;  %v4327_v48 = vadd.f32 %v4716_v3, %v4326_v9 }
0x135e   :  { %v4339_v11 = vadd.f32 %v4327_v48, %v7044_v31  ;;  %v4377_v31 = vld [vmem:[%s7192_s26 + $0x8] sm:$0xff] }
0x135f   :  { %v4331_v55 = vpop.f32.mrb[68].mxu1 }
0x1360   :  { %v4332_v4 = vadd.f32 %v4716_v3, %v4331_v55  ;;  %v5373_v17 = vpop.f32.mrb[69].mxu1 }
0x1362   :  { %v4340_v19 = vadd.f32 %v4332_v4, %v7049_v38  ;;  %v4376_v38 = vld [vmem:[%s7192_s26] sm:$0xff] }
0x1363   :  { %v5529_v35 = vpack.c.bf16 %v4377_v31, %v4376_v38 }
0x1364   :  { %v4342_v15 = vrot.slane %v4340_v19, 7 }
0x1365   :  { %5530 = vmatpush3.bf16.msra.mxu0 %v5529_v35 }
0x1366   :  { %v4345_v37 = vsel %vm4344_vm15, %v4339_v11, %v4342_v15  ;;  %5531 = vmatprep.subr.bf16.mxu0 %v5763_v58 }
0x1367   :  { %v4349_v23 = vsel %vm4348_vm1, %v4345_v37, 0.0 }
0x1368   :  { %4350 = vadd.xlane.f32.xlu0 %v4349_v23 }
0x1369   :  { %5533 = vmatpush3.bf16.msra.mxu0 %v5532_v26 }
0x13f4   :  { %v4336_v30 = vpop.f32.mrb[70].mxu1 }
0x13f5   :  { %v4351_v57 = vpop.xlane.xlu0 %4350  ;;  %v5376_v20 = vpop.f32.mrb[71].mxu1 }
0x13f6   :  { %v4352_v62 = vmul.f32 0.03125, %v4351_v57 }
0x13f8   :  { %v4353_v28 = vsub.f32 %v4345_v37, %v4352_v62 }
0x13fa   :  { %v4354_v12 = vmul.f32 %v4353_v28, %v4353_v28 }
0x13fc   :  { %v4355_v39 = vsel %vm4348_vm1, %v4354_v12, 0.0 }
0x13fd   :  { %4356 = vadd.xlane.f32.xlu1 %v4355_v39 }
0x148a   :  { %v4357_v13 = vpop.xlane.xlu1 %4356 }
0x148b   :  { %v4358_v16 = vmul.f32 0.03125, %v4357_v13 }
0x148d   :  { %v4359_v47 = vadd.f32 1e-12, %v4358_v16 }
0x148f   :  { %5734 = vrsqrt.f32 %v4359_v47 }
0x1499   :  { %v5735_v40 = vpop.eup %5734 }
0x149a   :  { %v4361_v58 = vmul.f32 %v5735_v40, %v4353_v28 }
0x149c   :  { %v4368_v32 = vmul.f32 %v4720_v14, %v4361_v58 }
0x149e   :  { %v4375_v56 = vadd.f32 %v4721_v29, %v4368_v32 }
0x14a0   :  { %5386 = vmatmul.mubr.msk.f32.vlgmr.msra.gmra.mrb[108].mxu0 %vm95_vm0, %v4375_v56 }
0x1573   :  { %v4456_v36 = vpop.f32.mrb[108].mxu0 }
0x1574   :  { %v4457_v43 = vadd.f32 %v4722_v2, %v4456_v36  ;;  %v5387_v6 = vpop.f32.mrb[109].mxu0 }
0x1576   :  { %4460 = vst [vmem:[#allocation2] sm:$0x3] %v4457_v43 }
0x1577   :  { %5750 = shalt.err (!%p5747_p4)
}
0x1578   :  { %s5751_s13 = scalar_lea.hbm %s7194_s28, 32 }
0x1579   :  { %p5752_p5 = scmp.ne.s32.totalorder %s7194_s28, %s5751_s13  ;;  %p5755_p6 = scmp.lt.u32.totalorder %s5751_s13, %s7194_s28 }
0x157b   :  { %p5757_p7 = pnand %p5755_p6, %p5752_p5 }
0x157d   :  { %5760 = shalt.err (!%p5757_p7)
}
0x157e   :  { %4470 = dma.vmem_to_hbm [thread:$0]  %s4468_s4, 32, %s7194_s28, [#allocation3]  }
0x157f   :  { %5761 = dma.done.wait [#allocation3], 32  }
0x1580   :  { %5762 = vsyncadd [#allocation3], 4294967264 }
0x1581   :  { %4474 = vsyncpa [#allocation3], 1 }

</bundles_post_ra>
